<compile_context>
chip_gen: v6e
topology: v6e:2x2x1
jax: 0.10.0
libtpu: 0.0.40
codegen_flags: <defaults>
</compile_context>

<pallas_src>
import math
from functools import partial

import numpy as np
import jax
import jax.numpy as jnp
from jax.experimental import pallas as pl
from jax.experimental.pallas import tpu as pltpu

# ----------------------- config (mirrors argparse.Namespace fields) -----------------------
SIGNAL_WINDOW_SIZE = 16        # power of 2
MF_TIME_SLICE_INTERVAL = 1     # required so dwt_output_length matches the forward pass
MF_MAXPOOL_SIZE = 1
MF_NEGATIVE_SLOPE = 0.02
MF_DROPOUT_RATE = 0.4          # unused at inference
RAW_NUM_FILTERS = 8
FFT_NUM_FILTERS = 8
DWT_NUM_FILTERS = 8
DWT_WAVELET = "db1"            # Haar
DWT_LEVEL = 1

assert MF_MAXPOOL_SIZE == 1, "only mf_maxpool_size == 1 supported"
assert MF_TIME_SLICE_INTERVAL == 1, "only mf_time_slice_interval == 1 supported"

SPATIAL = 8
S2 = SPATIAL * SPATIAL                       # 64
T = SIGNAL_WINDOW_SIZE                       # temporal length
K = T // 2 + 1                               # rfft output length (9)
KP = K + (K % 2)                             # padded so KP*S2 is a multiple of 128 (10)
DWT_LEN = T                                  # db1, J=1, even length: len(lo)+len(hi) = T
N_FEAT = RAW_NUM_FILTERS + FFT_NUM_FILTERS + DWT_NUM_FILTERS

BATCH_BLOCK = 512                            # batch-tile rows per grid step (multiple of 8)
VMEM_LIMIT_BYTES = 48 * 1024 * 1024          # v7x-safe (64 MiB physical); plenty on v5e/v6e


def _round_up(a, m):
    return -(-a // m) * m


# ------------------------------- fused forward kernel --------------------------------------
def _fused_kernel(x_ref, bfft_ref, wrd_ref, brd_ref, wf_ref, bf_ref,
                  w1rd_ref, w1f_ref, b1_ref, w2_ref, b2_ref, w3_ref, b3_ref,
                  out_ref, *, negative_slope, kp_cols):
    def leaky(v):
        return jnp.where(v >= 0, v, negative_slope * v)

    dot = partial(jnp.dot, preferred_element_type=jnp.float32)

    x = x_ref[...]                                     # (nb, T*S2) f32, flattened (t, i, j)

    # FFT branch: rfft along time via one kron(DFT^T, I64) matmul in bf16 (f32 accumulate),
    # then magnitude and conv-as-matmul (f32).
    y = dot(x.astype(jnp.bfloat16), bfft_ref[...])     # (nb, 2*KP*S2) f32 = [re | im]
    re = y[:, :kp_cols]                                # lane-aligned slice (kp_cols = 5*128)
    im = y[:, kp_cols:]
    mag = jnp.sqrt(re * re + im * im)                  # |rfft|, padded bin rows are zero

    # Raw + DWT branches fused into one f32 matmul (Haar analysis folded into the DWT conv
    # weight at prep time). dropout3d = identity in eval.
    rd = leaky(dot(x, wrd_ref[...]) + brd_ref[...])    # (nb, 16) = [raw(8) | dwt(8)]
    ff = leaky(dot(mag, wf_ref[...]) + bf_ref[...])    # (nb, 8)

    # MLP head: fc1 over concat([raw, fft, dwt]) expressed as a sum of two matmuls
    # (avoids an in-kernel lane concatenation). dropout = identity in eval.
    h = leaky(dot(rd, w1rd_ref[...]) + dot(ff, w1f_ref[...]) + b1_ref[...])   # (nb, 128)
    h = leaky(dot(h, w2_ref[...]) + b2_ref[...])                              # (nb, 32)
    out_ref[...] = dot(h, w3_ref[...]) + b3_ref[...]                          # (nb, 1)


def _pick_block(n, batch_block):
    """Batch-tile size: full batch for tiny n, otherwise >= 2 grid steps (v7x megacore)."""
    if n < 16:
        return n
    return max(8, min(batch_block, _round_up(-(-n // 2), 8)))


def multi_features_forward(x, prepped, *, batch_block=BATCH_BLOCK):
    """x: (N, 1, T, 8, 8) float32  ->  (N, 1) float32."""
    n = x.shape[0]
    x_flat = x.reshape(n, T * S2)

    nb = _pick_block(n, batch_block)
    num_blocks = -(-n // nb)
    n_pad = num_blocks * nb
    if n_pad != n:
        # Only for ragged batches (no HBM copy when n is a multiple of the block).
        x_flat = jnp.pad(x_flat, ((0, n_pad - n), (0, 0)))

    # Weights / transform matrices: whole-array VMEM residents (copied once, no per-step
    # pipelining, no double-buffering) -- they are grid-invariant.
    weight_specs = [pl.BlockSpec(memory_space=pltpu.MemorySpace.VMEM)] * len(prepped)

    out = pl.pallas_call(
        partial(_fused_kernel, negative_slope=MF_NEGATIVE_SLOPE, kp_cols=KP * S2),
        out_shape=jax.ShapeDtypeStruct((n_pad, 1), jnp.float32),
        grid=(num_blocks,),
        in_specs=[pl.BlockSpec((nb, T * S2), lambda i: (i, 0))] + weight_specs,
        out_specs=pl.BlockSpec((nb, 1), lambda i: (i, 0)),
        compiler_params=pltpu.CompilerParams(
            dimension_semantics=("parallel",),
            vmem_limit_bytes=VMEM_LIMIT_BYTES,
        ),
    )(x_flat, *prepped)
    return out[:n]


multi_features_forward = partial(jax.jit, static_argnames=("batch_block",))(multi_features_forward)


# ------------------------------ one-time parameter preparation -----------------------------
def build_transform_matrices():
    t = np.arange(T)
    k = np.arange(K)
    ang = 2.0 * np.pi * np.outer(k, t) / T
    cos_p = np.zeros((KP, T), np.float32)
    sin_p = np.zeros((KP, T), np.float32)
    cos_p[:K] = np.cos(ang)                     # Re part of DFT
    sin_p[:K] = np.sin(ang)                     # (-Im) part; sign irrelevant under abs()
    # Haar (db1) single-level analysis matrix: rows [lowpass ; highpass]
    d = np.zeros((T, T), np.float32)
    inv = 1.0 / np.sqrt(2.0)
    half = T // 2
    for i in range(half):
        d[i, 2 * i] = inv
        d[i, 2 * i + 1] = inv
        d[half + i, 2 * i] = inv
        d[half + i, 2 * i + 1] = -inv
    return cos_p, sin_p, d


def prepare_params(params):
    """One-time packing of PyTorch-layout weights into kernel operands (hoisted out of the
    per-call path)."""
    cos_p, sin_p, d = build_transform_matrices()

    # kron(DFT^T, I64): B[t*64+s, k*64+s'] = cos/sin[k, t] * delta(s, s')  -> (1024, 2*KP*64)
    # Stored in bf16: only used on the MXU with f32 accumulation.
    eye = np.eye(S2, dtype=np.float32)
    b_fft = jnp.asarray(np.concatenate(
        [np.kron(cos_p.T, eye), np.kron(sin_p.T, eye)], axis=1)).astype(jnp.bfloat16)

    # raw conv weight flattened (t, i, j) to match input flattening
    wr = params["wraw"].reshape(RAW_NUM_FILTERS, T * S2).T                    # (1024, 8)
    # fold Haar analysis into the DWT conv weight:  x_flat @ wd_eff == dwt(x)_flat @ wd_flat
    wd3 = params["wdwt"].reshape(DWT_NUM_FILTERS, DWT_LEN, S2)                # (F, u, s)
    wd_eff = jnp.einsum("ut,fus->tsf", jnp.asarray(d), wd3).reshape(T * S2, DWT_NUM_FILTERS)
    w_rd = jnp.concatenate([wr, wd_eff], axis=1)                              # (1024, 16)
    b_rd = jnp.concatenate([params["braw"], params["bdwt"]]).reshape(1, -1)   # (1, 16)

    # fft conv weight flattened (k, i, j), padded K -> KP with zero rows
    wf3 = jnp.transpose(params["wfft"].reshape(FFT_NUM_FILTERS, K, S2), (1, 2, 0))
    wf_pad = jnp.zeros((KP, S2, FFT_NUM_FILTERS), jnp.float32).at[:K].set(wf3)
    wf_pad = wf_pad.reshape(KP * S2, FFT_NUM_FILTERS)                         # (640, 8)
    b_f = params["bfft"].reshape(1, -1)

    # split fc1 weight by feature group; [raw | dwt] columns combined to match `rd`
    w1 = params["w1"]                                                         # (128, 24)
    w1rd = jnp.concatenate([w1[:, :RAW_NUM_FILTERS],
                            w1[:, RAW_NUM_FILTERS + FFT_NUM_FILTERS:]], axis=1).T   # (16, 128)
    w1f = w1[:, RAW_NUM_FILTERS:RAW_NUM_FILTERS + FFT_NUM_FILTERS].T                # (8, 128)
    b1 = params["b1"].reshape(1, -1)
    w2 = params["w2"].T
    b2 = params["b2"].reshape(1, -1)
    w3 = params["w3"].T
    b3 = params["b3"].reshape(1, -1)

    return [b_fft, w_rd, b_rd, wf_pad, b_f, w1rd, w1f, b1, w2, b2, w3, b3]


def init_params(key):
    ks = jax.random.split(key, 12)

    def unif(k, shape, fan_in):
        b = 1.0 / math.sqrt(fan_in)
        return jax.random.uniform(k, shape, jnp.float32, -b, b)

    p = {}
    p["wraw"] = unif(ks[0], (RAW_NUM_FILTERS, 1, T, SPATIAL, SPATIAL), T * S2)
    p["braw"] = unif(ks[1], (RAW_NUM_FILTERS,), T * S2)
    p["wfft"] = unif(ks[2], (FFT_NUM_FILTERS, 1, K, SPATIAL, SPATIAL), K * S2)
    p["bfft"] = unif(ks[3], (FFT_NUM_FILTERS,), K * S2)
    p["wdwt"] = unif(ks[4], (DWT_NUM_FILTERS, 1, DWT_LEN, SPATIAL, SPATIAL), DWT_LEN * S2)
    p["bdwt"] = unif(ks[5], (DWT_NUM_FILTERS,), DWT_LEN * S2)
    p["w1"] = unif(ks[6], (128, N_FEAT), N_FEAT)
    p["b1"] = unif(ks[7], (128,), N_FEAT)
    p["w2"] = unif(ks[8], (32, 128), 128)
    p["b2"] = unif(ks[9], (32,), 128)
    p["w3"] = unif(ks[10], (1, 32), 32)
    p["b3"] = unif(ks[11], (1,), 32)
    return p


# ------------------------------ pure-JAX reference for self-check --------------------------
def reference_forward(x, params):
    ns = MF_NEGATIVE_SLOPE
    leaky = lambda v: jnp.where(v >= 0, v, ns * v)
    n = x.shape[0]

    a_raw = x.reshape(n, -1)
    raw = leaky(a_raw @ params["wraw"].reshape(RAW_NUM_FILTERS, -1).T + params["braw"])

    a_fft = jnp.abs(jnp.fft.rfft(x, axis=2)).reshape(n, -1)
    fft = leaky(a_fft @ params["wfft"].reshape(FFT_NUM_FILTERS, -1).T + params["bfft"])

    inv = 1.0 / np.sqrt(2.0)
    lo = (x[:, :, 0::2] + x[:, :, 1::2]) * inv
    hi = (x[:, :, 0::2] - x[:, :, 1::2]) * inv
    a_dwt = jnp.concatenate([lo, hi], axis=2).reshape(n, -1)
    dwt = leaky(a_dwt @ params["wdwt"].reshape(DWT_NUM_FILTERS, -1).T + params["bdwt"])

    h = jnp.concatenate([raw, fft, dwt], axis=1)
    h = leaky(h @ params["w1"].T + params["b1"])
    h = leaky(h @ params["w2"].T + params["b2"])
    return h @ params["w3"].T + params["b3"]


# -------------------------------------------- main -----------------------------------------
if __name__ == "__main__":
    key = jax.random.PRNGKey(0)
    kx, kx2, kx3, kp = jax.random.split(key, 4)

    params = init_params(kp)
    prepped = prepare_params(params)          # one-time weight packing

    # Tolerances: bf16 DFT coefficients / bf16 x in the FFT matmul (f32 accumulate) give
    # ~1e-2-level relative error on the FFT branch; raw/DWT/head stay f32.
    RTOL, ATOL = 2e-2, 2e-2

    # tiny batch: single full-dim block, grid=(1,)
    N = 2
    x = jax.random.normal(kx, (N, 1, SIGNAL_WINDOW_SIZE, SPATIAL, SPATIAL), jnp.float32)
    out = jax.block_until_ready(multi_features_forward(x, prepped))
    assert out.shape == (N, 1) and out.dtype == jnp.float32
    np.testing.assert_allclose(np.asarray(out), np.asarray(reference_forward(x, params)),
                               rtol=RTOL, atol=ATOL)

    # multi-step grid (>=2 steps -> both v7x TensorCores), batch a multiple of the block (no pad)
    N2 = 64
    x2 = jax.random.normal(kx2, (N2, 1, SIGNAL_WINDOW_SIZE, SPATIAL, SPATIAL), jnp.float32)
    out2 = jax.block_until_ready(multi_features_forward(x2, prepped, batch_block=16))
    assert out2.shape == (N2, 1)
    np.testing.assert_allclose(np.asarray(out2), np.asarray(reference_forward(x2, params)),
                               rtol=RTOL, atol=ATOL)

    # ragged batch: exercises the pad-fallback path
    N3 = 20
    x3 = jax.random.normal(kx3, (N3, 1, SIGNAL_WINDOW_SIZE, SPATIAL, SPATIAL), jnp.float32)
    out3 = jax.block_until_ready(multi_features_forward(x3, prepped, batch_block=8))
    assert out3.shape == (N3, 1)
    np.testing.assert_allclose(np.asarray(out3), np.asarray(reference_forward(x3, params)),
                               rtol=RTOL, atol=ATOL)

    print("KERNEL_OK")
</pallas_src>

<mosaic_0001>
module attributes {stable_mosaic.version = 11 : i64} {
  func.func @_fused_kernel(%arg0: i32, %arg1: memref<2x1024xf32, #tpu.memory_space<vmem>>, %arg2: memref<1024x1280xbf16, #tpu.memory_space<vmem>>, %arg3: memref<1024x16xf32, #tpu.memory_space<vmem>>, %arg4: memref<1x16xf32, #tpu.memory_space<vmem>>, %arg5: memref<640x8xf32, #tpu.memory_space<vmem>>, %arg6: memref<1x8xf32, #tpu.memory_space<vmem>>, %arg7: memref<16x128xf32, #tpu.memory_space<vmem>>, %arg8: memref<8x128xf32, #tpu.memory_space<vmem>>, %arg9: memref<1x128xf32, #tpu.memory_space<vmem>>, %arg10: memref<128x32xf32, #tpu.memory_space<vmem>>, %arg11: memref<1x32xf32, #tpu.memory_space<vmem>>, %arg12: memref<32x1xf32, #tpu.memory_space<vmem>>, %arg13: memref<1x1xf32, #tpu.memory_space<vmem>>, %arg14: memref<2x1xf32, #tpu.memory_space<vmem>>) attributes {dimension_semantics = [#tpu.dimension_semantics<parallel>], iteration_bounds = array<i64: 1>, scalar_prefetch = 0 : i64, scratch_operands = 0 : i64, tpu.core_type = #tpu.core_type<tc>, window_params = [{transform_indices = @transform_0, window_bounds = array<i64: 2, 1024>}, {pipeline_mode = #tpu.pipeline_mode<synchronous>, transform_indices = @transform_1, window_bounds = array<i64: 1024, 1280>}, {pipeline_mode = #tpu.pipeline_mode<synchronous>, transform_indices = @transform_2, window_bounds = array<i64: 1024, 16>}, {pipeline_mode = #tpu.pipeline_mode<synchronous>, transform_indices = @transform_3, window_bounds = array<i64: 1, 16>}, {pipeline_mode = #tpu.pipeline_mode<synchronous>, transform_indices = @transform_4, window_bounds = array<i64: 640, 8>}, {pipeline_mode = #tpu.pipeline_mode<synchronous>, transform_indices = @transform_5, window_bounds = array<i64: 1, 8>}, {pipeline_mode = #tpu.pipeline_mode<synchronous>, transform_indices = @transform_6, window_bounds = array<i64: 16, 128>}, {pipeline_mode = #tpu.pipeline_mode<synchronous>, transform_indices = @transform_7, window_bounds = array<i64: 8, 128>}, {pipeline_mode = #tpu.pipeline_mode<synchronous>, transform_indices = @transform_8, window_bounds = array<i64: 1, 128>}, {pipeline_mode = #tpu.pipeline_mode<synchronous>, transform_indices = @transform_9, window_bounds = array<i64: 128, 32>}, {pipeline_mode = #tpu.pipeline_mode<synchronous>, transform_indices = @transform_10, window_bounds = array<i64: 1, 32>}, {pipeline_mode = #tpu.pipeline_mode<synchronous>, transform_indices = @transform_11, window_bounds = array<i64: 32, 1>}, {pipeline_mode = #tpu.pipeline_mode<synchronous>, transform_indices = @transform_12, window_bounds = array<i64: 1, 1>}, {transform_indices = @transform_13, window_bounds = array<i64: 2, 1>}]} {
    %c0 = arith.constant 0 : index
    %c0_0 = arith.constant 0 : index
    %0 = vector.load %arg1[%c0, %c0_0] : memref<2x1024xf32, #tpu.memory_space<vmem>>, vector<2x1024xf32>
    %1 = arith.truncf %0 : vector<2x1024xf32> to vector<2x1024xbf16>
    %c0_1 = arith.constant 0 : index
    %c0_2 = arith.constant 0 : index
    %2 = vector.load %arg2[%c0_1, %c0_2] : memref<1024x1280xbf16, #tpu.memory_space<vmem>>, vector<1024x1280xbf16>
    %cst = arith.constant dense<0.000000e+00> : vector<2x1280xf32>
    %3 = tpu.matmul %1, %2, %cst {dimension_numbers = #tpu.dot_dimension_numbers<[1], [0], [0], [1], [0, 0, 1, 1], [], []>} : vector<2x1024xbf16>, vector<1024x1280xbf16>, vector<2x1280xf32> -> vector<2x1280xf32>
    %4 = vector.extract_strided_slice %3 {offsets = [0, 0], sizes = [2, 640], strides = [1, 1]} : vector<2x1280xf32> to vector<2x640xf32>
    %5 = vector.extract_strided_slice %3 {offsets = [0, 640], sizes = [2, 640], strides = [1, 1]} : vector<2x1280xf32> to vector<2x640xf32>
    %6 = arith.mulf %4, %4 : vector<2x640xf32>
    %7 = arith.mulf %5, %5 : vector<2x640xf32>
    %8 = arith.addf %6, %7 : vector<2x640xf32>
    %9 = math.sqrt %8 : vector<2x640xf32>
    %c0_3 = arith.constant 0 : index
    %c0_4 = arith.constant 0 : index
    %10 = vector.load %arg3[%c0_3, %c0_4] : memref<1024x16xf32, #tpu.memory_space<vmem>>, vector<1024x16xf32>
    %cst_5 = arith.constant dense<0.000000e+00> : vector<2x16xf32>
    %11 = tpu.matmul %0, %10, %cst_5 {dimension_numbers = #tpu.dot_dimension_numbers<[1], [0], [0], [1], [0, 0, 1, 1], [], []>} : vector<2x1024xf32>, vector<1024x16xf32>, vector<2x16xf32> -> vector<2x16xf32>
    %c0_6 = arith.constant 0 : index
    %c0_7 = arith.constant 0 : index
    %12 = vector.load %arg4[%c0_6, %c0_7] : memref<1x16xf32, #tpu.memory_space<vmem>>, vector<1x16xf32>
    %13 = vector.broadcast %12 : vector<1x16xf32> to vector<2x16xf32>
    %14 = arith.addf %11, %13 : vector<2x16xf32>
    %cst_8 = arith.constant 0.000000e+00 : f32
    %15 = vector.broadcast %cst_8 : f32 to vector<2x16xf32>
    %16 = arith.cmpf oge, %14, %15 : vector<2x16xf32>
    %cst_9 = arith.constant 2.000000e-02 : f32
    %17 = vector.broadcast %cst_9 : f32 to vector<2x16xf32>
    %18 = arith.mulf %17, %14 : vector<2x16xf32>
    %19 = arith.select %16, %14, %18 : vector<2x16xi1>, vector<2x16xf32>
    %c0_10 = arith.constant 0 : index
    %c0_11 = arith.constant 0 : index
    %20 = vector.load %arg5[%c0_10, %c0_11] : memref<640x8xf32, #tpu.memory_space<vmem>>, vector<640x8xf32>
    %cst_12 = arith.constant dense<0.000000e+00> : vector<2x8xf32>
    %21 = tpu.matmul %9, %20, %cst_12 {dimension_numbers = #tpu.dot_dimension_numbers<[1], [0], [0], [1], [0, 0, 1, 1], [], []>} : vector<2x640xf32>, vector<640x8xf32>, vector<2x8xf32> -> vector<2x8xf32>
    %c0_13 = arith.constant 0 : index
    %c0_14 = arith.constant 0 : index
    %22 = vector.load %arg6[%c0_13, %c0_14] : memref<1x8xf32, #tpu.memory_space<vmem>>, vector<1x8xf32>
    %23 = vector.broadcast %22 : vector<1x8xf32> to vector<2x8xf32>
    %24 = arith.addf %21, %23 : vector<2x8xf32>
    %cst_15 = arith.constant 0.000000e+00 : f32
    %25 = vector.broadcast %cst_15 : f32 to vector<2x8xf32>
    %26 = arith.cmpf oge, %24, %25 : vector<2x8xf32>
    %cst_16 = arith.constant 2.000000e-02 : f32
    %27 = vector.broadcast %cst_16 : f32 to vector<2x8xf32>
    %28 = arith.mulf %27, %24 : vector<2x8xf32>
    %29 = arith.select %26, %24, %28 : vector<2x8xi1>, vector<2x8xf32>
    %c0_17 = arith.constant 0 : index
    %c0_18 = arith.constant 0 : index
    %30 = vector.load %arg7[%c0_17, %c0_18] : memref<16x128xf32, #tpu.memory_space<vmem>>, vector<16x128xf32>
    %cst_19 = arith.constant dense<0.000000e+00> : vector<2x128xf32>
    %31 = tpu.matmul %19, %30, %cst_19 {dimension_numbers = #tpu.dot_dimension_numbers<[1], [0], [0], [1], [0, 0, 1, 1], [], []>} : vector<2x16xf32>, vector<16x128xf32>, vector<2x128xf32> -> vector<2x128xf32>
    %c0_20 = arith.constant 0 : index
    %c0_21 = arith.constant 0 : index
    %32 = vector.load %arg8[%c0_20, %c0_21] : memref<8x128xf32, #tpu.memory_space<vmem>>, vector<8x128xf32>
    %cst_22 = arith.constant dense<0.000000e+00> : vector<2x128xf32>
    %33 = tpu.matmul %29, %32, %cst_22 {dimension_numbers = #tpu.dot_dimension_numbers<[1], [0], [0], [1], [0, 0, 1, 1], [], []>} : vector<2x8xf32>, vector<8x128xf32>, vector<2x128xf32> -> vector<2x128xf32>
    %34 = arith.addf %31, %33 : vector<2x128xf32>
    %c0_23 = arith.constant 0 : index
    %c0_24 = arith.constant 0 : index
    %35 = vector.load %arg9[%c0_23, %c0_24] : memref<1x128xf32, #tpu.memory_space<vmem>>, vector<1x128xf32>
    %36 = vector.broadcast %35 : vector<1x128xf32> to vector<2x128xf32>
    %37 = arith.addf %34, %36 : vector<2x128xf32>
    %cst_25 = arith.constant 0.000000e+00 : f32
    %38 = vector.broadcast %cst_25 : f32 to vector<2x128xf32>
    %39 = arith.cmpf oge, %37, %38 : vector<2x128xf32>
    %cst_26 = arith.constant 2.000000e-02 : f32
    %40 = vector.broadcast %cst_26 : f32 to vector<2x128xf32>
    %41 = arith.mulf %40, %37 : vector<2x128xf32>
    %42 = arith.select %39, %37, %41 : vector<2x128xi1>, vector<2x128xf32>
    %c0_27 = arith.constant 0 : index
    %c0_28 = arith.constant 0 : index
    %43 = vector.load %arg10[%c0_27, %c0_28] : memref<128x32xf32, #tpu.memory_space<vmem>>, vector<128x32xf32>
    %cst_29 = arith.constant dense<0.000000e+00> : vector<2x32xf32>
    %44 = tpu.matmul %42, %43, %cst_29 {dimension_numbers = #tpu.dot_dimension_numbers<[1], [0], [0], [1], [0, 0, 1, 1], [], []>} : vector<2x128xf32>, vector<128x32xf32>, vector<2x32xf32> -> vector<2x32xf32>
    %c0_30 = arith.constant 0 : index
    %c0_31 = arith.constant 0 : index
    %45 = vector.load %arg11[%c0_30, %c0_31] : memref<1x32xf32, #tpu.memory_space<vmem>>, vector<1x32xf32>
    %46 = vector.broadcast %45 : vector<1x32xf32> to vector<2x32xf32>
    %47 = arith.addf %44, %46 : vector<2x32xf32>
    %cst_32 = arith.constant 0.000000e+00 : f32
    %48 = vector.broadcast %cst_32 : f32 to vector<2x32xf32>
    %49 = arith.cmpf oge, %47, %48 : vector<2x32xf32>
    %cst_33 = arith.constant 2.000000e-02 : f32
    %50 = vector.broadcast %cst_33 : f32 to vector<2x32xf32>
    %51 = arith.mulf %50, %47 : vector<2x32xf32>
    %52 = arith.select %49, %47, %51 : vector<2x32xi1>, vector<2x32xf32>
    %c0_34 = arith.constant 0 : index
    %c0_35 = arith.constant 0 : index
    %53 = vector.load %arg12[%c0_34, %c0_35] : memref<32x1xf32, #tpu.memory_space<vmem>>, vector<32x1xf32>
    %cst_36 = arith.constant dense<0.000000e+00> : vector<2x1xf32>
    %54 = tpu.matmul %52, %53, %cst_36 {dimension_numbers = #tpu.dot_dimension_numbers<[1], [0], [0], [1], [0, 0, 1, 1], [], []>} : vector<2x32xf32>, vector<32x1xf32>, vector<2x1xf32> -> vector<2x1xf32>
    %c0_37 = arith.constant 0 : index
    %c0_38 = arith.constant 0 : index
    %55 = vector.load %arg13[%c0_37, %c0_38] : memref<1x1xf32, #tpu.memory_space<vmem>>, vector<1x1xf32>
    %56 = vector.broadcast %55 : vector<1x1xf32> to vector<2x1xf32>
    %57 = arith.addf %54, %56 : vector<2x1xf32>
    %c0_39 = arith.constant 0 : index
    %c0_40 = arith.constant 0 : index
    %58 = vector.load %arg14[%c0_39, %c0_40] : memref<2x1xf32, #tpu.memory_space<vmem>>, vector<2x1xf32>
    tpu.vector_store %arg14[%c0_39, %c0_40], %57 {strides = array<i32>} : memref<2x1xf32, #tpu.memory_space<vmem>>, vector<2x1xf32>,
    return
  }
  func.func @transform_0(%arg0: i32) -> (i32, i32) {
    %c0_i32 = arith.constant 0 : i32
    %c0_i32_0 = arith.constant 0 : i32
    return %arg0, %c0_i32 : i32, i32
  }
  func.func @transform_1(%arg0: i32) -> (i32, i32) {
    %c0_i32 = arith.constant 0 : i32
    %c0_i32_0 = arith.constant 0 : i32
    %c0_i32_1 = arith.constant 0 : i32
    return %c0_i32, %c0_i32_0 : i32, i32
  }
  func.func @transform_2(%arg0: i32) -> (i32, i32) {
    %c0_i32 = arith.constant 0 : i32
    %c0_i32_0 = arith.constant 0 : i32
    %c0_i32_1 = arith.constant 0 : i32
    return %c0_i32, %c0_i32_0 : i32, i32
  }
  func.func @transform_3(%arg0: i32) -> (i32, i32) {
    %c0_i32 = arith.constant 0 : i32
    %c0_i32_0 = arith.constant 0 : i32
    %c0_i32_1 = arith.constant 0 : i32
    return %c0_i32, %c0_i32_0 : i32, i32
  }
  func.func @transform_4(%arg0: i32) -> (i32, i32) {
    %c0_i32 = arith.constant 0 : i32
    %c0_i32_0 = arith.constant 0 : i32
    %c0_i32_1 = arith.constant 0 : i32
    return %c0_i32, %c0_i32_0 : i32, i32
  }
  func.func @transform_5(%arg0: i32) -> (i32, i32) {
    %c0_i32 = arith.constant 0 : i32
    %c0_i32_0 = arith.constant 0 : i32
    %c0_i32_1 = arith.constant 0 : i32
    return %c0_i32, %c0_i32_0 : i32, i32
  }
  func.func @transform_6(%arg0: i32) -> (i32, i32) {
    %c0_i32 = arith.constant 0 : i32
    %c0_i32_0 = arith.constant 0 : i32
    %c0_i32_1 = arith.constant 0 : i32
    return %c0_i32, %c0_i32_0 : i32, i32
  }
  func.func @transform_7(%arg0: i32) -> (i32, i32) {
    %c0_i32 = arith.constant 0 : i32
    %c0_i32_0 = arith.constant 0 : i32
    %c0_i32_1 = arith.constant 0 : i32
    return %c0_i32, %c0_i32_0 : i32, i32
  }
  func.func @transform_8(%arg0: i32) -> (i32, i32) {
    %c0_i32 = arith.constant 0 : i32
    %c0_i32_0 = arith.constant 0 : i32
    %c0_i32_1 = arith.constant 0 : i32
    return %c0_i32, %c0_i32_0 : i32, i32
  }
  func.func @transform_9(%arg0: i32) -> (i32, i32) {
    %c0_i32 = arith.constant 0 : i32
    %c0_i32_0 = arith.constant 0 : i32
    %c0_i32_1 = arith.constant 0 : i32
    return %c0_i32, %c0_i32_0 : i32, i32
  }
  func.func @transform_10(%arg0: i32) -> (i32, i32) {
    %c0_i32 = arith.constant 0 : i32
    %c0_i32_0 = arith.constant 0 : i32
    %c0_i32_1 = arith.constant 0 : i32
    return %c0_i32, %c0_i32_0 : i32, i32
  }
  func.func @transform_11(%arg0: i32) -> (i32, i32) {
    %c0_i32 = arith.constant 0 : i32
    %c0_i32_0 = arith.constant 0 : i32
    %c0_i32_1 = arith.constant 0 : i32
    return %c0_i32, %c0_i32_0 : i32, i32
  }
  func.func @transform_12(%arg0: i32) -> (i32, i32) {
    %c0_i32 = arith.constant 0 : i32
    %c0_i32_0 = arith.constant 0 : i32
    %c0_i32_1 = arith.constant 0 : i32
    return %c0_i32, %c0_i32_0 : i32, i32
  }
  func.func @transform_13(%arg0: i32) -> (i32, i32) {
    %c0_i32 = arith.constant 0 : i32
    %c0_i32_0 = arith.constant 0 : i32
    return %arg0, %c0_i32 : i32, i32
  }
}

</mosaic_0001>

<bundles_post_ra>
// kernel: multi_features_forward.1
= control target key start
LH: loop header
LB: loop body
LE: loop exit
PB: predicated region body
PF: predicated region fallthrough
CT: control target
= control target key end

     0   :  { %s9126_s0 = inlined_call_operand.vmem [shape: f32[2,1024], index: 0, kind: input, shape index: {}]   ;;  %s9127_s1 = inlined_call_operand.hbm [shape: bf16[1024,1280], index: 1, kind: input, shape index: {}]   ;;  %s9128_s2 = inlined_call_operand.vmem [shape: f32[1024,16], index: 2, kind: input, shape index: {}]   ;;  %s9129_s3 = inlined_call_operand.hbm [shape: f32[1,16], index: 3, kind: input, shape index: {}]   ;;  %s9130_s4 = inlined_call_operand.vmem [shape: f32[640,8], index: 4, kind: input, shape index: {}]   ;;  %s9131_s5 = inlined_call_operand.hbm [shape: f32[1,8], index: 5, kind: input, shape index: {}]   ;;  %s9132_s6 = inlined_call_operand.hbm [shape: f32[16,128], index: 6, kind: input, shape index: {}]   ;;  %s9133_s7 = inlined_call_operand.hbm [shape: f32[8,128], index: 7, kind: input, shape index: {}]   ;;  %s9134_s8 = inlined_call_operand.hbm [shape: f32[1,128], index: 8, kind: input, shape index: {}]   ;;  %s9135_s9 = inlined_call_operand.vmem [shape: f32[128,32], index: 9, kind: input, shape index: {}]   ;;  %s9136_s10 = inlined_call_operand.hbm [shape: f32[1,32], index: 10, kind: input, shape index: {}]   ;;  %s9137_s11 = inlined_call_operand.vmem [shape: f32[32,1], index: 11, kind: input, shape index: {}]   ;;  %s9138_s12 = inlined_call_operand.<no memory space> [shape: f32[1,1], index: 12, kind: input, shape index: {}]   ;;  %s9139_s13 = inlined_call_operand.vmem [shape: f32[2,1], index: 13, kind: output, shape index: {}]  }
   0x1   :  { %v18_v0 = vstv %s9138_s12 }
   0x2   :  { %19 = vst [vmem:[#allocation2] sm:$0x1] %v18_v0 }
   0x3   :  { %20 = vsyncpa [#allocation4], 0 }
   0x4   :  { %21 = vsyncpa [#allocation6], 0 }
   0x5   :  { %22 = vsyncpa [#allocation9], 0 }
   0x6   :  { %23 = vsyncpa [#allocation12], 0  ;;  %s8095_s27 = smov [#allocation5]   ;;  %s8096_s29 = smov [#allocation8]  }
   0x7   :  { %s46_s28 = sshll.u32 %s8095_s27, 4  ;;  %s67_s30 = sshll.u32 %s8096_s29, 4  ;;  %s47_s28 = int_to_ptr.vmem [resolvable:$true] %s46_s28  ;;  %s68_s30 = int_to_ptr.vmem [resolvable:$true] %s67_s30 }
   0x8   :  { %s7955_s14 = scalar_lea.vmem %s47_s28, 16  ;;  %s7959_s15 = scalar_lea.vmem %s47_s28, 32 }
   0x9   :  { %p7956_p0 = scmp.ne.s32.totalorder %s47_s28, %s7955_s14  ;;  %p7960_p1 = scmp.lt.s32.totalorder %s47_s28, %s47_s28 }
   0xa   :  { %p7961_p2 = scmp.lt.s32.totalorder %s7959_s15, %s7955_s14 }
   0xc   :  { %p7962_p3 = por %p7961_p2, %p7960_p1 }
   0xe   :  { %p7963_p4 = pnand %p7962_p3, %p7956_p0 }
  0x10   :  { %7966 = shalt.err (!%p7963_p4)
}
  0x11   :  { %49 = dma.hbm_to_vmem [thread:$0]  %s9129_s3, 16, %s47_s28, [#allocation6]  }
  0x12   :  { %s7975_s17 = scalar_lea.vmem %s68_s30, 256  ;;  %p7980_p6 = scmp.lt.s32.totalorder %s68_s30, %s68_s30 }
  0x13   :  { %p7976_p5 = scmp.ne.s32.totalorder %s68_s30, %s7975_s17  ;;  %p7981_p7 = scmp.lt.s32.totalorder %s7975_s17, %s7975_s17 }
  0x15   :  { %p7982_p8 = por %p7981_p7, %p7980_p6 }
  0x17   :  { %p7983_p9 = pnand %p7982_p8, %p7976_p5 }
  0x19   :  { %7986 = shalt.err (!%p7983_p9)
}
  0x1a   :  { %s8097_s18 = smov 128   ;;  %s8098_s19 = smov 8  }
  0x1b   :  { %73 = dma.hbm_to_vmem [thread:$0]  %s9132_s6, 256, %s68_s30, [#allocation9], %s8097_s18, %s8097_s18, %s8098_s19  }
  0x1c   :  { %s8099_s22 = smov [#allocation11]   ;;  %s8100_s24 = smov [#allocation3]  }
  0x1d   :  { %s90_s23 = sshll.u32 %s8099_s22, 4  ;;  %s31_s25 = sshll.u32 %s8100_s24, 4  ;;  %s91_s23 = int_to_ptr.vmem [resolvable:$true] %s90_s23  ;;  %s32_s25 = int_to_ptr.vmem [resolvable:$true] %s31_s25 }
  0x1e   :  { %s7995_s3 = scalar_lea.vmem %s91_s23, 16  ;;  %s7999_s26 = scalar_lea.vmem %s91_s23, 32 }
  0x1f   :  { %p7996_p10 = scmp.ne.s32.totalorder %s91_s23, %s7995_s3  ;;  %p8000_p11 = scmp.lt.s32.totalorder %s91_s23, %s91_s23 }
  0x20   :  { %p8001_p12 = scmp.lt.s32.totalorder %s7999_s26, %s7995_s3 }
  0x22   :  { %p8002_p13 = por %p8001_p12, %p8000_p11 }
  0x24   :  { %p8003_p0 = pnand %p8002_p13, %p7996_p10 }
  0x26   :  { %8006 = shalt.err (!%p8003_p0)
}
  0x27   :  { %93 = dma.hbm_to_vmem [thread:$0]  %s9134_s8, 16, %s91_s23, [#allocation12]  }
  0x28   :  { %s8015_s29 = scalar_lea.vmem %s32_s25, 81920  ;;  %p8020_p2 = scmp.lt.s32.totalorder %s32_s25, %s32_s25 }
  0x29   :  { %p8016_p1 = scmp.ne.s32.totalorder %s32_s25, %s8015_s29  ;;  %p8021_p3 = scmp.lt.s32.totalorder %s8015_s29, %s8015_s29 }
  0x2b   :  { %p8022_p4 = por %p8021_p3, %p8020_p2 }
  0x2d   :  { %p8023_p5 = pnand %p8022_p4, %p8016_p1 }
  0x2f   :  { %8026 = shalt.err (!%p8023_p5)
}
  0x30   :  { %s8101_s6 = smov 640   ;;  %s8102_s30 = smov 40  }
  0x31   :  { %37 = dma.hbm_to_vmem [thread:$0]  %s9127_s1, 81920, %s32_s25, [#allocation4], %s8101_s6, %s8101_s6, %s8102_s30  }
  0x32   :  { %s8103_s12 = smov [#allocation7]   ;;  %s8104_s17 = smov [#allocation10]  }
  0x33   :  { %s58_s16 = sshll.u32 %s8103_s12, 4  ;;  %s80_s18 = sshll.u32 %s8104_s17, 4  ;;  %s59_s16 = int_to_ptr.vmem [resolvable:$true] %s58_s16  ;;  %s81_s18 = int_to_ptr.vmem [resolvable:$true] %s80_s18 }
  0x34   :  { %s8035_s8 = scalar_lea.vmem %s59_s16, 16  ;;  %s8039_s19 = scalar_lea.vmem %s59_s16, 32 }
  0x35   :  { %p8036_p6 = scmp.ne.s32.totalorder %s59_s16, %s8035_s8  ;;  %p8040_p7 = scmp.lt.s32.totalorder %s59_s16, %s59_s16 }
  0x36   :  { %p8041_p8 = scmp.lt.s32.totalorder %s8039_s19, %s8035_s8 }
  0x38   :  { %p8042_p9 = por %p8041_p8, %p8040_p7 }
  0x3a   :  { %p8043_p10 = pnand %p8042_p9, %p8036_p6 }
  0x3c   :  { %8046 = shalt.err (!%p8043_p10)
}
  0x3d   :  { %61 = dma.hbm_to_vmem [thread:$0]  %s9131_s5, 16, %s59_s16, [#allocation6]  }
  0x3e   :  { %s8055_s22 = scalar_lea.vmem %s81_s18, 128  ;;  %p8060_p12 = scmp.lt.s32.totalorder %s81_s18, %s81_s18 }
  0x3f   :  { %p8056_p11 = scmp.ne.s32.totalorder %s81_s18, %s8055_s22  ;;  %p8061_p13 = scmp.lt.s32.totalorder %s8055_s22, %s8055_s22 }
  0x41   :  { %p8062_p0 = por %p8061_p13, %p8060_p12 }
  0x43   :  { %p8063_p1 = pnand %p8062_p0, %p8056_p11 }
  0x45   :  { %8066 = shalt.err (!%p8063_p1)
}
  0x46   :  { %83 = dma.hbm_to_vmem [thread:$0]  %s9133_s7, 128, %s81_s18, [#allocation9]  }
  0x47   :  { %s8105_s24 = smov [#allocation13]  }
  0x48   :  { %s102_s25 = sshll.u32 %s8105_s24, 4  ;;  %s103_s25 = int_to_ptr.vmem [resolvable:$true] %s102_s25 }
  0x49   :  { %s8075_s3 = scalar_lea.vmem %s103_s25, 16  ;;  %s8079_s26 = scalar_lea.vmem %s103_s25, 32 }
  0x4a   :  { %p8076_p2 = scmp.ne.s32.totalorder %s103_s25, %s8075_s3  ;;  %p8080_p3 = scmp.lt.s32.totalorder %s103_s25, %s103_s25 }
  0x4b   :  { %p8081_p4 = scmp.lt.s32.totalorder %s8079_s26, %s8075_s3 }
  0x4d   :  { %p8082_p5 = por %p8081_p4, %p8080_p3 }
  0x4f   :  { %p8083_p6 = pnand %p8082_p5, %p8076_p2 }
  0x51   :  { %8086 = shalt.err (!%p8083_p6)
}
  0x52   :  { %105 = dma.hbm_to_vmem [thread:$0]  %s9136_s10, 16, %s103_s25, [#allocation12]  }
  0x53   :  { %8087 = dma.done.wait [#allocation4], 81920  }
  0x54   :  { %8088 = vsyncadd [#allocation4], 4294885376 }
  0x55   :  { %8089 = dma.done.wait [#allocation6], 32  }
  0x56   :  { %8090 = vsyncadd [#allocation6], 4294967264 }
  0x57   :  { %8091 = dma.done.wait [#allocation9], 384  }
  0x58   :  { %8092 = vsyncadd [#allocation9], 4294966912 }
  0x59   :  { %8093 = dma.done.wait [#allocation12], 32  }
  0x5a   :  { %8094 = vsyncadd [#allocation12], 4294967264  ;;  %v6975_v1 = vld [vmem:[#allocation3 + $0x234] ss:$40 sps:$4 sm:$0xff]   ;;  %v6979_v3 = vld [vmem:[#allocation3 + $0x230] ss:$40 sps:$4 sm:$0xff]   ;;  %v139_v39 = vlaneseq }
  0x5b   :  { %v6977_v2 = vld [vmem:[#allocation3 + $0x734] ss:$40 sps:$4 sm:$0xff]   ;;  %4025 = vmatprep.subr.bf16.mxu0 %v6975_v1  ;;  %v6980_v4 = vld [vmem:[#allocation3 + $0x730] ss:$40 sps:$4 sm:$0xff]   ;;  %v6981_v5 = vld [vmem:[#allocation3 + $0x1e4] ss:$40 sps:$4 sm:$0xff]  }
  0x5c   :  { %4066 = vmatprep.subr.bf16.mxu1 %v6977_v2  ;;  %4026 = vmatpush1.bf16.msra.mxu0 %v6979_v3  ;;  %v6983_v6 = vld [vmem:[#allocation3 + $0x6e4] ss:$40 sps:$4 sm:$0xff]   ;;  %v6985_v7 = vld [vmem:[#allocation3 + $0x1e0] ss:$40 sps:$4 sm:$0xff]   ;;  %v6987_v9 = vld [vmem:[#allocation3 + $0x194] ss:$40 sps:$4 sm:$0xff]  }
  0x5d   :  { %4067 = vmatpush1.bf16.msra.mxu1 %v6980_v4  ;;  %4027 = vmatprep.subr.bf16.mxu0 %v6981_v5  ;;  %v6986_v8 = vld [vmem:[#allocation3 + $0x6e0] ss:$40 sps:$4 sm:$0xff]   ;;  %v6989_v10 = vld [vmem:[#allocation3 + $0x694] ss:$40 sps:$4 sm:$0xff]   ;;  %v6991_v11 = vld [vmem:[#allocation3 + $0x190] ss:$40 sps:$4 sm:$0xff]  }
  0x5e   :  { %4068 = vmatprep.subr.bf16.mxu1 %v6983_v6  ;;  %v6992_v12 = vld [vmem:[#allocation3 + $0x690] ss:$40 sps:$4 sm:$0xff]   ;;  %v6993_v13 = vld [vmem:[#allocation3 + $0x144] ss:$40 sps:$4 sm:$0xff]   ;;  %v6997_v15 = vld [vmem:[#allocation3 + $0x140] ss:$40 sps:$4 sm:$0xff]  }
  0x5f   :  { %v6995_v14 = vld [vmem:[#allocation3 + $0x644] ss:$40 sps:$4 sm:$0xff]   ;;  %v6998_v16 = vld [vmem:[#allocation3 + $0x640] ss:$40 sps:$4 sm:$0xff]   ;;  %v6999_v17 = vld [vmem:[#allocation3 + $0xf4] ss:$40 sps:$4 sm:$0xff]  }
  0x60   :  { %4028 = vmatpush1.bf16.msra.mxu0 %v6985_v7  ;;  %v7001_v18 = vld [vmem:[#allocation3 + $0x5f4] ss:$40 sps:$4 sm:$0xff]   ;;  %v7003_v19 = vld [vmem:[#allocation3 + $0xf0] ss:$40 sps:$4 sm:$0xff]   ;;  %v7005_v21 = vld [vmem:[#allocation3 + $0xa4] ss:$40 sps:$4 sm:$0xff]  }
  0x61   :  { %4069 = vmatpush1.bf16.msra.mxu1 %v6986_v8  ;;  %4029 = vmatprep.subr.bf16.mxu0 %v6987_v9  ;;  %v7004_v20 = vld [vmem:[#allocation3 + $0x5f0] ss:$40 sps:$4 sm:$0xff]   ;;  %v7007_v22 = vld [vmem:[#allocation3 + $0x5a4] ss:$40 sps:$4 sm:$0xff]   ;;  %v7009_v23 = vld [vmem:[#allocation3 + $0xa0] ss:$40 sps:$4 sm:$0xff]  }
  0x62   :  { %4070 = vmatprep.subr.bf16.mxu1 %v6989_v10  ;;  %v7010_v24 = vld [vmem:[#allocation3 + $0x5a0] ss:$40 sps:$4 sm:$0xff]   ;;  %v7011_v25 = vld [vmem:[#allocation3 + $0x54] ss:$40 sps:$4 sm:$0xff]   ;;  %v7015_v27 = vld [vmem:[#allocation3 + $0x50] ss:$40 sps:$4 sm:$0xff]  }
  0x63   :  { %v7013_v26 = vld [vmem:[#allocation3 + $0x554] ss:$40 sps:$4 sm:$0xff]   ;;  %v7016_v28 = vld [vmem:[#allocation3 + $0x550] ss:$40 sps:$4 sm:$0xff]   ;;  %v7017_v29 = vld [vmem:[#allocation3 + $0x4] ss:$40 sps:$4 sm:$0xff]  }
  0x64   :  { %4030 = vmatpush1.bf16.msra.mxu0 %v6991_v11  ;;  %v7019_v30 = vld [vmem:[#allocation3 + $0x504] ss:$40 sps:$4 sm:$0xff]   ;;  %v7021_v31 = vld [vmem:[#allocation3] ss:$40 sps:$4 sm:$0xff]   ;;  %v7023_v33 = vld [vmem:[#allocation3 + $0x4b4] ss:$40 sps:$4 sm:$0xff]  }
  0x65   :  { %4071 = vmatpush1.bf16.msra.mxu1 %v6992_v12  ;;  %4031 = vmatprep.subr.bf16.mxu0 %v6993_v13  ;;  %v7022_v32 = vld [vmem:[#allocation3 + $0x500] ss:$40 sps:$4 sm:$0xff]   ;;  %v7025_v34 = vld [vmem:[#allocation3 + $0x9b4] ss:$40 sps:$4 sm:$0xff]   ;;  %v7027_v35 = vld [vmem:[#allocation3 + $0x4b0] ss:$40 sps:$4 sm:$0xff]  }
  0x66   :  { %4072 = vmatprep.subr.bf16.mxu1 %v6995_v14  ;;  %v7028_v36 = vld [vmem:[#allocation3 + $0x9b0] ss:$40 sps:$4 sm:$0xff]   ;;  %v8106_v37 = vmov 1983009808   ;;  %v7029_v40 = vld [vmem:[#allocation3 + $0x464] ss:$40 sps:$4 sm:$0xff]  }
  0x67   :  { %v137_v38 = vunpack.c.l.s4 %v8106_v37  ;;  %v7031_v41 = vld [vmem:[#allocation3 + $0x964] ss:$40 sps:$4 sm:$0xff]   ;;  %v7033_v42 = vld [vmem:[#allocation3 + $0x460] ss:$40 sps:$4 sm:$0xff]   ;;  %v140_v44 = vshrl.u32 %v139_v39, 7  ;;  %vm8108_vm4 = vmmov 0  }
  0x68   :  { %4032 = vmatpush1.bf16.msra.mxu0 %v6997_v15  ;;  %v7034_v45 = vld [vmem:[#allocation3 + $0x960] ss:$40 sps:$4 sm:$0xff]   ;;  %v7035_v46 = vld [vmem:[#allocation3 + $0x414] ss:$40 sps:$4 sm:$0xff]   ;;  %v7039_v48 = vld [vmem:[#allocation3 + $0x410] ss:$40 sps:$4 sm:$0xff]  }
  0x69   :  { %4073 = vmatpush1.bf16.msra.mxu1 %v6998_v16  ;;  %4033 = vmatprep.subr.bf16.mxu0 %v6999_v17  ;;  %v138_v43 = vunpack.c.0.s8 %v137_v38  ;;  %v7037_v47 = vld [vmem:[#allocation3 + $0x914] ss:$40 sps:$4 sm:$0xff]   ;;  %v7040_v49 = vld [vmem:[#allocation3 + $0x910] ss:$40 sps:$4 sm:$0xff]   ;;  %v7041_v51 = vld [vmem:[#allocation3 + $0x3c4] ss:$40 sps:$4 sm:$0xff]  }
  0x6a   :  { %4074 = vmatprep.subr.bf16.mxu1 %v7001_v18  ;;  %v7043_v52 = vld [vmem:[#allocation3 + $0x8c4] ss:$40 sps:$4 sm:$0xff]   ;;  %v7045_v54 = vld [vmem:[#allocation3 + $0x3c0] ss:$40 sps:$4 sm:$0xff]   ;;  %v7047_v58 = vld [vmem:[#allocation3 + $0x374] ss:$40 sps:$4 sm:$0xff]  }
  0x6b   :  { %v8203_v50 = vsub.s32 %v138_v43, %v140_v44  ;;  %v131_v53 = vld [vmem:[%s9126_s0] sm:$0xff]  ;;  %v7051_v62 = vld [vmem:[#allocation3 + $0x370] ss:$40 sps:$4 sm:$0xff]   ;;  %v132_v43 = vld [vmem:[%s9126_s0 + $0x8] sm:$0xff]  ;;  %vm5616_vm12 = vcmask 64512   ;;  %vm5690_vm14 = vcmask 130048  }
  0x6c   :  { %4034 = vmatpush1.bf16.msra.mxu0 %v7003_v19  ;;  %v135_v56 = vcombine.high %v131_v53, %v131_v53  ;;  %v7046_v57 = vld [vmem:[#allocation3 + $0x8c0] ss:$40 sps:$4 sm:$0xff]   ;;  %v7049_v59 = vld [vmem:[#allocation3 + $0x874] ss:$40 sps:$4 sm:$0xff]   ;;  %v7052_v1 = vld [vmem:[#allocation3 + $0x870] ss:$40 sps:$4 sm:$0xff]  }
  0x6d   :  { %4075 = vmatpush1.bf16.msra.mxu1 %v7004_v20  ;;  %4035 = vmatprep.subr.bf16.mxu0 %v7005_v21  ;;  %v8209_v55 = vrot.slane %v131_v53, %v8203_v50  ;;  %v7053_v2 = vld [vmem:[#allocation3 + $0x324] ss:$40 sps:$4 sm:$0xff]   ;;  %v7057_v5 = vld [vmem:[#allocation3 + $0x320] ss:$40 sps:$4 sm:$0xff]   ;;  %v7059_v7 = vld [vmem:[#allocation3 + $0x2d4] ss:$40 sps:$4 sm:$0xff]   ;;  %v8246_v44 = vrot.slane %v132_v43, %v8203_v50 }
  0x6e   :  { %4076 = vmatprep.subr.bf16.mxu1 %v7007_v22  ;;  %v8216_v61 = vrot.slane %v135_v56, %v8203_v50  ;;  %v7055_v3 = vld [vmem:[#allocation3 + $0x824] ss:$40 sps:$4 sm:$0xff]   ;;  %v7058_v6 = vld [vmem:[#allocation3 + $0x820] ss:$40 sps:$4 sm:$0xff]   ;;  %v7061_v8 = vld [vmem:[#allocation3 + $0x7d4] ss:$40 sps:$4 sm:$0xff]  }
  0x6f   :  { %v8213_v60 = vcombine.high %v8209_v55, %v8209_v55  ;;  %v7063_v9 = vld [vmem:[#allocation3 + $0x2d0] ss:$40 sps:$4 sm:$0xff]   ;;  %v7065_v11 = vld [vmem:[#allocation3 + $0x284] ss:$40 sps:$4 sm:$0xff]   ;;  %v7069_v13 = vld [vmem:[#allocation3 + $0x280] ss:$40 sps:$4 sm:$0xff]   ;;  %v8234_v17 = vpack.c.bf16 %v8209_v55, %v8209_v55 }
  0x70   :  { %4036 = vmatpush1.bf16.msra.mxu0 %v7009_v23  ;;  %v8224_v0 = vcombine.high %v8216_v61, %v8216_v61  ;;  %v7064_v10 = vld [vmem:[#allocation3 + $0x7d0] ss:$40 sps:$4 sm:$0xff]   ;;  %v7067_v12 = vld [vmem:[#allocation3 + $0x784] ss:$40 sps:$4 sm:$0xff]   ;;  %v7070_v14 = vld [vmem:[#allocation3 + $0x780] ss:$40 sps:$4 sm:$0xff]   ;;  %v8238_v18 = vpack.c.bf16 %v8216_v61, %v8216_v61 }
  0x71   :  { %4077 = vmatpush1.bf16.msra.mxu1 %v7010_v24  ;;  %4037 = vmatprep.subr.bf16.mxu0 %v7011_v25  ;;  %v8220_v63 = vpack.c.bf16 %v8213_v60, %v8213_v60  ;;  %v7074_v15 = vld [vmem:[#allocation3 + $0xc34] ss:$40 sps:$4 sm:$0xff]   ;;  %v7072_v19 = vld [vmem:[#allocation3 + $0xc30] ss:$40 sps:$4 sm:$0xff]   ;;  %v7080_v21 = vld [vmem:[#allocation3 + $0xbe4] ss:$40 sps:$4 sm:$0xff]  }
  0x72   :  { %4078 = vmatprep.subr.bf16.mxu1 %v7013_v26  ;;  %v8228_v4 = vpack.c.bf16 %v8224_v0, %v8224_v0  ;;  %v7077_v16 = vld [vmem:[#allocation3 + $0x1134] ss:$40 sps:$4 sm:$0xff]   ;;  %v7075_v20 = vld [vmem:[#allocation3 + $0x1130] ss:$40 sps:$4 sm:$0xff]   ;;  %v7083_v22 = vld [vmem:[#allocation3 + $0x10e4] ss:$40 sps:$4 sm:$0xff]  }
  0x73   :  { %4057 = vmatprep.mubr.bf16.mxu0 %v8220_v63  ;;  %v7078_v23 = vld [vmem:[#allocation3 + $0xbe0] ss:$40 sps:$4 sm:$0xff]   ;;  %v7086_v25 = vld [vmem:[#allocation3 + $0xb94] ss:$40 sps:$4 sm:$0xff]   ;;  %v7104_v37 = vld [vmem:[#allocation3 + $0xaa4] ss:$40 sps:$4 sm:$0xff]  }
  0x74   :  { %4038 = vmatpush1.bf16.msra.mxu0 %v7015_v27  ;;  %4098 = vmatprep.mubr.bf16.mxu1 %v8228_v4  ;;  %v7081_v24 = vld [vmem:[#allocation3 + $0x10e0] ss:$40 sps:$4 sm:$0xff]   ;;  %v7089_v26 = vld [vmem:[#allocation3 + $0x1094] ss:$40 sps:$4 sm:$0xff]   ;;  %v7084_v27 = vld [vmem:[#allocation3 + $0xb90] ss:$40 sps:$4 sm:$0xff]  }
  0x75   :  { %4079 = vmatpush1.bf16.msra.mxu1 %v7016_v28  ;;  %4039 = vmatprep.subr.bf16.mxu0 %v7017_v29  ;;  %v7087_v28 = vld [vmem:[#allocation3 + $0x1090] ss:$40 sps:$4 sm:$0xff]   ;;  %v7092_v29 = vld [vmem:[#allocation3 + $0xb44] ss:$40 sps:$4 sm:$0xff]   ;;  %v7102_v39 = vld [vmem:[#allocation3 + $0xaa0] ss:$40 sps:$4 sm:$0xff]  }
  0x76   :  { %4080 = vmatprep.subr.bf16.mxu1 %v7019_v30  ;;  %v7095_v30 = vld [vmem:[#allocation3 + $0x1044] ss:$40 sps:$4 sm:$0xff]   ;;  %v7114_v56 = vld [vmem:[#allocation3 + $0xa00] ss:$40 sps:$4 sm:$0xff]  }
  0x77   :  { %v7107_v38 = vld [vmem:[#allocation3 + $0xfa4] ss:$40 sps:$4 sm:$0xff]  }
  0x78   :  { %4040 = vmatpush1.bf16.msra.mxu0 %v7021_v31  ;;  %v7090_v31 = vld [vmem:[#allocation3 + $0xb40] ss:$40 sps:$4 sm:$0xff]  }
  0x79   :  { %4081 = vmatpush1.bf16.msra.mxu1 %v7022_v32  ;;  %4041 = vmatprep.subr.bf16.mxu0 %v7023_v33  ;;  %v7093_v32 = vld [vmem:[#allocation3 + $0x1040] ss:$40 sps:$4 sm:$0xff]   ;;  %v7098_v33 = vld [vmem:[#allocation3 + $0xaf4] ss:$40 sps:$4 sm:$0xff]  }
  0x7a   :  { %4082 = vmatprep.subr.bf16.mxu1 %v7025_v34  ;;  %v7101_v34 = vld [vmem:[#allocation3 + $0xff4] ss:$40 sps:$4 sm:$0xff]  }
  0x7c   :  { %4042 = vmatpush2.bf16.msra.mxu0 %v7027_v35  ;;  %v7096_v35 = vld [vmem:[#allocation3 + $0xaf0] ss:$40 sps:$4 sm:$0xff]  }
  0x7d   :  { %4083 = vmatpush2.bf16.msra.mxu1 %v7028_v36  ;;  %4043 = vmatprep.subr.bf16.mxu0 %v7029_v40  ;;  %v7099_v36 = vld [vmem:[#allocation3 + $0xff0] ss:$40 sps:$4 sm:$0xff]   ;;  %v7105_v40 = vld [vmem:[#allocation3 + $0xfa0] ss:$40 sps:$4 sm:$0xff]  }
  0x7e   :  { %4084 = vmatprep.subr.bf16.mxu1 %v7031_v41  ;;  %v7110_v41 = vld [vmem:[#allocation3 + $0xa54] ss:$40 sps:$4 sm:$0xff]  }
  0x80   :  { %4044 = vmatpush2.bf16.msra.mxu0 %v7033_v42  ;;  %v7113_v42 = vld [vmem:[#allocation3 + $0xf54] ss:$40 sps:$4 sm:$0xff]  }
  0x81   :  { %4085 = vmatpush2.bf16.msra.mxu1 %v7034_v45  ;;  %4045 = vmatprep.subr.bf16.mxu0 %v7035_v46  ;;  %v152_v45 = vcombine.high %v132_v43, %v132_v43  ;;  %v7108_v46 = vld [vmem:[#allocation3 + $0xa50] ss:$40 sps:$4 sm:$0xff]   ;;  %v7183_v43 = vld [vmem:[#allocation3 + $0x19c] ss:$40 sps:$4 sm:$0xff]  }
  0x82   :  { %4086 = vmatprep.subr.bf16.mxu1 %v7037_v47  ;;  %v7111_v47 = vld [vmem:[#allocation3 + $0xf50] ss:$40 sps:$4 sm:$0xff]  }
  0x84   :  { %4046 = vmatpush2.bf16.msra.mxu0 %v7039_v48  ;;  %v8250_v48 = vcombine.high %v8246_v44, %v8246_v44 }
  0x85   :  { %4087 = vmatpush2.bf16.msra.mxu1 %v7040_v49  ;;  %4047 = vmatprep.subr.bf16.mxu0 %v7041_v51  ;;  %v8253_v49 = vrot.slane %v152_v45, %v8203_v50  ;;  %v7116_v51 = vld [vmem:[#allocation3 + $0xa04] ss:$40 sps:$4 sm:$0xff]  }
  0x86   :  { %4088 = vmatprep.subr.bf16.mxu1 %v7043_v52  ;;  %v7119_v52 = vld [vmem:[#allocation3 + $0xf04] ss:$40 sps:$4 sm:$0xff]   ;;  %v8257_v53 = vpack.c.bf16 %v8250_v48, %v8250_v48 }
  0x87   :  { %v7186_v45 = vld [vmem:[#allocation3 + $0x69c] ss:$40 sps:$4 sm:$0xff]  }
  0x88   :  { %4048 = vmatpush2.bf16.msra.mxu0 %v7045_v54  ;;  %v8261_v54 = vcombine.high %v8253_v49, %v8253_v49 }
  0x89   :  { %4089 = vmatpush2.bf16.msra.mxu1 %v7046_v57  ;;  %4049 = vmatprep.subr.bf16.mxu0 %v7047_v58  ;;  %v7117_v57 = vld [vmem:[#allocation3 + $0xf00] ss:$40 sps:$4 sm:$0xff]   ;;  %v7122_v58 = vld [vmem:[#allocation3 + $0xeb4] ss:$40 sps:$4 sm:$0xff]  }
  0x8a   :  { %4090 = vmatprep.subr.bf16.mxu1 %v7049_v59  ;;  %v8265_v50 = vpack.c.bf16 %v8261_v54, %v8261_v54  ;;  %v7125_v59 = vld [vmem:[#allocation3 + $0x13b4] ss:$40 sps:$4 sm:$0xff]  }
  0x8c   :  { %4050 = vmatpush2.bf16.msra.mxu0 %v7051_v62  ;;  %v7120_v62 = vld [vmem:[#allocation3 + $0xeb0] ss:$40 sps:$4 sm:$0xff]  }
  0x8d   :  { %4091 = vmatpush2.bf16.msra.mxu1 %v7052_v1  ;;  %4051 = vmatprep.subr.bf16.mxu0 %v7053_v2  ;;  %v7123_v1 = vld [vmem:[#allocation3 + $0x13b0] ss:$40 sps:$4 sm:$0xff]   ;;  %v7128_v2 = vld [vmem:[#allocation3 + $0xe64] ss:$40 sps:$4 sm:$0xff]  }
  0x8e   :  { %4092 = vmatprep.subr.bf16.mxu1 %v7055_v3  ;;  %v7131_v3 = vld [vmem:[#allocation3 + $0x1364] ss:$40 sps:$4 sm:$0xff]  }
  0x90   :  { %4052 = vmatpush2.bf16.msra.mxu0 %v7057_v5  ;;  %v7126_v5 = vld [vmem:[#allocation3 + $0xe60] ss:$40 sps:$4 sm:$0xff]  }
  0x91   :  { %4093 = vmatpush2.bf16.msra.mxu1 %v7058_v6  ;;  %4053 = vmatprep.subr.bf16.mxu0 %v7059_v7  ;;  %v7129_v6 = vld [vmem:[#allocation3 + $0x1360] ss:$40 sps:$4 sm:$0xff]   ;;  %v7134_v7 = vld [vmem:[#allocation3 + $0xe14] ss:$40 sps:$4 sm:$0xff]  }
  0x92   :  { %4094 = vmatprep.subr.bf16.mxu1 %v7061_v8  ;;  %v7137_v8 = vld [vmem:[#allocation3 + $0x1314] ss:$40 sps:$4 sm:$0xff]  }
  0x94   :  { %4054 = vmatpush2.bf16.msra.mxu0 %v7063_v9  ;;  %v7132_v9 = vld [vmem:[#allocation3 + $0xe10] ss:$40 sps:$4 sm:$0xff]  }
  0x95   :  { %4095 = vmatpush2.bf16.msra.mxu1 %v7064_v10  ;;  %4055 = vmatprep.subr.bf16.mxu0 %v7065_v11  ;;  %v7135_v10 = vld [vmem:[#allocation3 + $0x1310] ss:$40 sps:$4 sm:$0xff]   ;;  %v7140_v11 = vld [vmem:[#allocation3 + $0xdc4] ss:$40 sps:$4 sm:$0xff]  }
  0x96   :  { %4096 = vmatprep.subr.bf16.mxu1 %v7067_v12  ;;  %v7143_v12 = vld [vmem:[#allocation3 + $0x12c4] ss:$40 sps:$4 sm:$0xff]  }
  0x98   :  { %4056 = vmatpush2.bf16.msra.mxu0 %v7069_v13  ;;  %v7138_v13 = vld [vmem:[#allocation3 + $0xdc0] ss:$40 sps:$4 sm:$0xff]  }
  0x99   :  { %4097 = vmatpush2.bf16.msra.mxu1 %v7070_v14  ;;  %4107 = vmatprep.subr.bf16.mxu0 %v7074_v15  ;;  %v7141_v14 = vld [vmem:[#allocation3 + $0x12c0] ss:$40 sps:$4 sm:$0xff]   ;;  %v7146_v15 = vld [vmem:[#allocation3 + $0xd74] ss:$40 sps:$4 sm:$0xff]  }
  0x9a   :  { %4148 = vmatprep.subr.bf16.mxu1 %v7077_v16  ;;  %v7149_v16 = vld [vmem:[#allocation3 + $0x1274] ss:$40 sps:$4 sm:$0xff]  }
  0x9b   :  { %4058 = vmatmul.mubr.bf16.vlgmr.msra.gmra.mxu0 %v8234_v17 }
  0x9c   :  { %4099 = vmatmul.mubr.bf16.vlgmr.msra.gmra.mxu1 %v8238_v18  ;;  %4108 = vmatpush1.bf16.msra.mxu0 %v7072_v19  ;;  %v7144_v19 = vld [vmem:[#allocation3 + $0xd70] ss:$40 sps:$4 sm:$0xff]  }
  0x9d   :  { %4149 = vmatpush1.bf16.msra.mxu1 %v7075_v20  ;;  %4109 = vmatprep.subr.bf16.mxu0 %v7080_v21  ;;  %v7147_v20 = vld [vmem:[#allocation3 + $0x1270] ss:$40 sps:$4 sm:$0xff]   ;;  %v7152_v21 = vld [vmem:[#allocation3 + $0xd24] ss:$40 sps:$4 sm:$0xff]  }
  0x9e   :  { %4150 = vmatprep.subr.bf16.mxu1 %v7083_v22  ;;  %4139 = vmatprep.mubr.bf16.mxu0 %v8257_v53  ;;  %v7155_v22 = vld [vmem:[#allocation3 + $0x1224] ss:$40 sps:$4 sm:$0xff]  }
  0x9f   :  { %4180 = vmatprep.mubr.bf16.mxu1 %v8265_v50 }
  0xa0   :  { %4110 = vmatpush1.bf16.msra.mxu0 %v7078_v23  ;;  %v7150_v23 = vld [vmem:[#allocation3 + $0xd20] ss:$40 sps:$4 sm:$0xff]  }
  0xa1   :  { %4151 = vmatpush1.bf16.msra.mxu1 %v7081_v24  ;;  %4111 = vmatprep.subr.bf16.mxu0 %v7086_v25  ;;  %v7153_v24 = vld [vmem:[#allocation3 + $0x1220] ss:$40 sps:$4 sm:$0xff]   ;;  %v7158_v25 = vld [vmem:[#allocation3 + $0xcd4] ss:$40 sps:$4 sm:$0xff]  }
  0xa2   :  { %4152 = vmatprep.subr.bf16.mxu1 %v7089_v26  ;;  %v7161_v26 = vld [vmem:[#allocation3 + $0x11d4] ss:$40 sps:$4 sm:$0xff]  }
  0xa4   :  { %4112 = vmatpush1.bf16.msra.mxu0 %v7084_v27  ;;  %v7156_v27 = vld [vmem:[#allocation3 + $0xcd0] ss:$40 sps:$4 sm:$0xff]  }
  0xa5   :  { %4153 = vmatpush1.bf16.msra.mxu1 %v7087_v28  ;;  %4113 = vmatprep.subr.bf16.mxu0 %v7092_v29  ;;  %v7159_v28 = vld [vmem:[#allocation3 + $0x11d0] ss:$40 sps:$4 sm:$0xff]   ;;  %v7164_v29 = vld [vmem:[#allocation3 + $0xc84] ss:$40 sps:$4 sm:$0xff]  }
  0xa6   :  { %4154 = vmatprep.subr.bf16.mxu1 %v7095_v30  ;;  %v7167_v30 = vld [vmem:[#allocation3 + $0x1184] ss:$40 sps:$4 sm:$0xff]  }
  0xa8   :  { %4114 = vmatpush1.bf16.msra.mxu0 %v7090_v31  ;;  %v7162_v31 = vld [vmem:[#allocation3 + $0xc80] ss:$40 sps:$4 sm:$0xff]  }
  0xa9   :  { %4155 = vmatpush1.bf16.msra.mxu1 %v7093_v32  ;;  %4115 = vmatprep.subr.bf16.mxu0 %v7098_v33  ;;  %v7165_v32 = vld [vmem:[#allocation3 + $0x1180] ss:$40 sps:$4 sm:$0xff]   ;;  %v7171_v33 = vld [vmem:[#allocation3 + $0x23c] ss:$40 sps:$4 sm:$0xff]  }
  0xaa   :  { %4156 = vmatprep.subr.bf16.mxu1 %v7101_v34  ;;  %v7174_v34 = vld [vmem:[#allocation3 + $0x73c] ss:$40 sps:$4 sm:$0xff]  }
  0xac   :  { %4116 = vmatpush1.bf16.msra.mxu0 %v7096_v35  ;;  %v8271_v35 = vpack.c.bf16 %v8246_v44, %v8246_v44 }
  0xad   :  { %4157 = vmatpush1.bf16.msra.mxu1 %v7099_v36  ;;  %4117 = vmatprep.subr.bf16.mxu0 %v7104_v37  ;;  %v8275_v36 = vpack.c.bf16 %v8253_v49, %v8253_v49  ;;  %v7169_v37 = vld [vmem:[#allocation3 + $0x238] ss:$40 sps:$4 sm:$0xff]  }
  0xae   :  { %4158 = vmatprep.subr.bf16.mxu1 %v7107_v38  ;;  %v7172_v38 = vld [vmem:[#allocation3 + $0x738] ss:$40 sps:$4 sm:$0xff]  }
  0xb0   :  { %4118 = vmatpush1.bf16.msra.mxu0 %v7102_v39  ;;  %v7177_v39 = vld [vmem:[#allocation3 + $0x1ec] ss:$40 sps:$4 sm:$0xff]  }
  0xb1   :  { %4159 = vmatpush1.bf16.msra.mxu1 %v7105_v40  ;;  %4119 = vmatprep.subr.bf16.mxu0 %v7110_v41  ;;  %v7180_v40 = vld [vmem:[#allocation3 + $0x6ec] ss:$40 sps:$4 sm:$0xff]   ;;  %v7175_v41 = vld [vmem:[#allocation3 + $0x1e8] ss:$40 sps:$4 sm:$0xff]  }
  0xb2   :  { %4160 = vmatprep.subr.bf16.mxu1 %v7113_v42  ;;  %v7178_v42 = vld [vmem:[#allocation3 + $0x6e8] ss:$40 sps:$4 sm:$0xff]  }
  0xb4   :  { %4120 = vmatpush1.bf16.msra.mxu0 %v7108_v46  ;;  %v7181_v46 = vld [vmem:[#allocation3 + $0x198] ss:$40 sps:$4 sm:$0xff]  }
  0xb5   :  { %4161 = vmatpush1.bf16.msra.mxu1 %v7111_v47  ;;  %4121 = vmatprep.subr.bf16.mxu0 %v7116_v51  ;;  %v7184_v47 = vld [vmem:[#allocation3 + $0x698] ss:$40 sps:$4 sm:$0xff]   ;;  %v7189_v51 = vld [vmem:[#allocation3 + $0x14c] ss:$40 sps:$4 sm:$0xff]  }
  0xb6   :  { %4162 = vmatprep.subr.bf16.mxu1 %v7119_v52  ;;  %v7192_v52 = vld [vmem:[#allocation3 + $0x64c] ss:$40 sps:$4 sm:$0xff]  }
  0xb8   :  { %4122 = vmatpush1.bf16.msra.mxu0 %v7114_v56  ;;  %v7187_v56 = vld [vmem:[#allocation3 + $0x148] ss:$40 sps:$4 sm:$0xff]  }
  0xb9   :  { %4163 = vmatpush1.bf16.msra.mxu1 %v7117_v57  ;;  %4123 = vmatprep.subr.bf16.mxu0 %v7122_v58  ;;  %v7190_v57 = vld [vmem:[#allocation3 + $0x648] ss:$40 sps:$4 sm:$0xff]   ;;  %v7195_v58 = vld [vmem:[#allocation3 + $0xfc] ss:$40 sps:$4 sm:$0xff]  }
  0xba   :  { %4164 = vmatprep.subr.bf16.mxu1 %v7125_v59  ;;  %v7198_v59 = vld [vmem:[#allocation3 + $0x5fc] ss:$40 sps:$4 sm:$0xff]  }
  0xbc   :  { %4124 = vmatpush2.bf16.msra.mxu0 %v7120_v62  ;;  %v7193_v62 = vld [vmem:[#allocation3 + $0xf8] ss:$40 sps:$4 sm:$0xff]  }
  0xbd   :  { %4165 = vmatpush2.bf16.msra.mxu1 %v7123_v1  ;;  %4125 = vmatprep.subr.bf16.mxu0 %v7128_v2  ;;  %v7196_v1 = vld [vmem:[#allocation3 + $0x5f8] ss:$40 sps:$4 sm:$0xff]   ;;  %v7201_v2 = vld [vmem:[#allocation3 + $0xac] ss:$40 sps:$4 sm:$0xff]  }
  0xbe   :  { %4166 = vmatprep.subr.bf16.mxu1 %v7131_v3  ;;  %v7204_v3 = vld [vmem:[#allocation3 + $0x5ac] ss:$40 sps:$4 sm:$0xff]  }
  0xc0   :  { %4126 = vmatpush2.bf16.msra.mxu0 %v7126_v5  ;;  %v7199_v5 = vld [vmem:[#allocation3 + $0xa8] ss:$40 sps:$4 sm:$0xff]  }
  0xc1   :  { %4167 = vmatpush2.bf16.msra.mxu1 %v7129_v6  ;;  %4127 = vmatprep.subr.bf16.mxu0 %v7134_v7  ;;  %v7202_v6 = vld [vmem:[#allocation3 + $0x5a8] ss:$40 sps:$4 sm:$0xff]   ;;  %v7207_v7 = vld [vmem:[#allocation3 + $0x5c] ss:$40 sps:$4 sm:$0xff]  }
  0xc2   :  { %4168 = vmatprep.subr.bf16.mxu1 %v7137_v8  ;;  %v7210_v8 = vld [vmem:[#allocation3 + $0x55c] ss:$40 sps:$4 sm:$0xff]  }
  0xc4   :  { %4128 = vmatpush2.bf16.msra.mxu0 %v7132_v9  ;;  %v7205_v9 = vld [vmem:[#allocation3 + $0x58] ss:$40 sps:$4 sm:$0xff]  }
  0xc5   :  { %4169 = vmatpush2.bf16.msra.mxu1 %v7135_v10  ;;  %4129 = vmatprep.subr.bf16.mxu0 %v7140_v11  ;;  %v7208_v10 = vld [vmem:[#allocation3 + $0x558] ss:$40 sps:$4 sm:$0xff]   ;;  %v7213_v11 = vld [vmem:[#allocation3 + $0xc] ss:$40 sps:$4 sm:$0xff]  }
  0xc6   :  { %4170 = vmatprep.subr.bf16.mxu1 %v7143_v12  ;;  %v7216_v12 = vld [vmem:[#allocation3 + $0x50c] ss:$40 sps:$4 sm:$0xff]  }
  0xc8   :  { %4130 = vmatpush2.bf16.msra.mxu0 %v7138_v13  ;;  %v7211_v13 = vld [vmem:[#allocation3 + $0x8] ss:$40 sps:$4 sm:$0xff]  }
  0xc9   :  { %4171 = vmatpush2.bf16.msra.mxu1 %v7141_v14  ;;  %4131 = vmatprep.subr.bf16.mxu0 %v7146_v15  ;;  %v7214_v14 = vld [vmem:[#allocation3 + $0x508] ss:$40 sps:$4 sm:$0xff]   ;;  %v7219_v15 = vld [vmem:[#allocation3 + $0x4bc] ss:$40 sps:$4 sm:$0xff]  }
  0xca   :  { %4172 = vmatprep.subr.bf16.mxu1 %v7149_v16  ;;  %v7222_v16 = vld [vmem:[#allocation3 + $0x9bc] ss:$40 sps:$4 sm:$0xff]  }
  0xcc   :  { %4132 = vmatpush2.bf16.msra.mxu0 %v7144_v19  ;;  %v7217_v19 = vld [vmem:[#allocation3 + $0x4b8] ss:$40 sps:$4 sm:$0xff]  }
  0xcd   :  { %4173 = vmatpush2.bf16.msra.mxu1 %v7147_v20  ;;  %4133 = vmatprep.subr.bf16.mxu0 %v7152_v21  ;;  %v7220_v20 = vld [vmem:[#allocation3 + $0x9b8] ss:$40 sps:$4 sm:$0xff]   ;;  %v7225_v21 = vld [vmem:[#allocation3 + $0x46c] ss:$40 sps:$4 sm:$0xff]  }
  0xce   :  { %4174 = vmatprep.subr.bf16.mxu1 %v7155_v22  ;;  %v7228_v22 = vld [vmem:[#allocation3 + $0x96c] ss:$40 sps:$4 sm:$0xff]  }
  0xd0   :  { %4134 = vmatpush2.bf16.msra.mxu0 %v7150_v23  ;;  %v7223_v23 = vld [vmem:[#allocation3 + $0x468] ss:$40 sps:$4 sm:$0xff]  }
  0xd1   :  { %4175 = vmatpush2.bf16.msra.mxu1 %v7153_v24  ;;  %4135 = vmatprep.subr.bf16.mxu0 %v7158_v25  ;;  %v7226_v24 = vld [vmem:[#allocation3 + $0x968] ss:$40 sps:$4 sm:$0xff]   ;;  %v7231_v25 = vld [vmem:[#allocation3 + $0x41c] ss:$40 sps:$4 sm:$0xff]  }
  0xd2   :  { %4176 = vmatprep.subr.bf16.mxu1 %v7161_v26  ;;  %v7234_v26 = vld [vmem:[#allocation3 + $0x91c] ss:$40 sps:$4 sm:$0xff]  }
  0xd4   :  { %4136 = vmatpush2.bf16.msra.mxu0 %v7156_v27  ;;  %v7229_v27 = vld [vmem:[#allocation3 + $0x418] ss:$40 sps:$4 sm:$0xff]  }
  0xd5   :  { %4177 = vmatpush2.bf16.msra.mxu1 %v7159_v28  ;;  %4137 = vmatprep.subr.bf16.mxu0 %v7164_v29  ;;  %v7232_v28 = vld [vmem:[#allocation3 + $0x918] ss:$40 sps:$4 sm:$0xff]   ;;  %v7237_v29 = vld [vmem:[#allocation3 + $0x3cc] ss:$40 sps:$4 sm:$0xff]  }
  0xd6   :  { %4178 = vmatprep.subr.bf16.mxu1 %v7167_v30  ;;  %v7240_v30 = vld [vmem:[#allocation3 + $0x8cc] ss:$40 sps:$4 sm:$0xff]  }
  0xd8   :  { %4138 = vmatpush2.bf16.msra.mxu0 %v7162_v31  ;;  %v7235_v31 = vld [vmem:[#allocation3 + $0x3c8] ss:$40 sps:$4 sm:$0xff]  }
  0xd9   :  { %4179 = vmatpush2.bf16.msra.mxu1 %v7165_v32  ;;  %4189 = vmatprep.subr.bf16.mxu0 %v7171_v33  ;;  %v7238_v32 = vld [vmem:[#allocation3 + $0x8c8] ss:$40 sps:$4 sm:$0xff]   ;;  %v7243_v33 = vld [vmem:[#allocation3 + $0x37c] ss:$40 sps:$4 sm:$0xff]  }
  0xda   :  { %4230 = vmatprep.subr.bf16.mxu1 %v7174_v34  ;;  %v7246_v34 = vld [vmem:[#allocation3 + $0x87c] ss:$40 sps:$4 sm:$0xff]  }
  0xdb   :  { %4140 = vmatmul.mubr.bf16.vlgmr.msra.gmra.mxu0 %v8271_v35 }
  0xdc   :  { %4181 = vmatmul.mubr.bf16.vlgmr.msra.gmra.mxu1 %v8275_v36  ;;  %4190 = vmatpush1.bf16.msra.mxu0 %v7169_v37  ;;  %v7241_v37 = vld [vmem:[#allocation3 + $0x378] ss:$40 sps:$4 sm:$0xff]  }
  0xdd   :  { %4231 = vmatpush1.bf16.msra.mxu1 %v7172_v38  ;;  %4191 = vmatprep.subr.bf16.mxu0 %v7177_v39  ;;  %v7244_v38 = vld [vmem:[#allocation3 + $0x878] ss:$40 sps:$4 sm:$0xff]   ;;  %v7249_v39 = vld [vmem:[#allocation3 + $0x32c] ss:$40 sps:$4 sm:$0xff]  }
  0xde   :  { %4232 = vmatprep.subr.bf16.mxu1 %v7180_v40  ;;  %4221 = vmatprep.mubr.bf16.mxu0 %v8220_v63  ;;  %v7252_v40 = vld [vmem:[#allocation3 + $0x82c] ss:$40 sps:$4 sm:$0xff]  }
  0xdf   :  { %4262 = vmatprep.mubr.bf16.mxu1 %v8228_v4 }
  0xe0   :  { %4192 = vmatpush1.bf16.msra.mxu0 %v7175_v41  ;;  %v7247_v41 = vld [vmem:[#allocation3 + $0x328] ss:$40 sps:$4 sm:$0xff]  }
  0xe1   :  { %4233 = vmatpush1.bf16.msra.mxu1 %v7178_v42  ;;  %4193 = vmatprep.subr.bf16.mxu0 %v7183_v43  ;;  %v7250_v42 = vld [vmem:[#allocation3 + $0x828] ss:$40 sps:$4 sm:$0xff]   ;;  %v7255_v43 = vld [vmem:[#allocation3 + $0x2dc] ss:$40 sps:$4 sm:$0xff]  }
  0xe2   :  { %4234 = vmatprep.subr.bf16.mxu1 %v7186_v45  ;;  %v7258_v45 = vld [vmem:[#allocation3 + $0x7dc] ss:$40 sps:$4 sm:$0xff]  }
  0xe4   :  { %4194 = vmatpush1.bf16.msra.mxu0 %v7181_v46  ;;  %v7253_v46 = vld [vmem:[#allocation3 + $0x2d8] ss:$40 sps:$4 sm:$0xff]  }
  0xe5   :  { %4235 = vmatpush1.bf16.msra.mxu1 %v7184_v47  ;;  %4195 = vmatprep.subr.bf16.mxu0 %v7189_v51  ;;  %v7256_v47 = vld [vmem:[#allocation3 + $0x7d8] ss:$40 sps:$4 sm:$0xff]   ;;  %v7261_v51 = vld [vmem:[#allocation3 + $0x28c] ss:$40 sps:$4 sm:$0xff]  }
  0xe6   :  { %4236 = vmatprep.subr.bf16.mxu1 %v7192_v52  ;;  %v7264_v52 = vld [vmem:[#allocation3 + $0x78c] ss:$40 sps:$4 sm:$0xff]  }
  0xe8   :  { %4196 = vmatpush1.bf16.msra.mxu0 %v7187_v56  ;;  %v7259_v56 = vld [vmem:[#allocation3 + $0x288] ss:$40 sps:$4 sm:$0xff]  }
  0xe9   :  { %4237 = vmatpush1.bf16.msra.mxu1 %v7190_v57  ;;  %4197 = vmatprep.subr.bf16.mxu0 %v7195_v58  ;;  %v7262_v57 = vld [vmem:[#allocation3 + $0x788] ss:$40 sps:$4 sm:$0xff]   ;;  %v7267_v58 = vld [vmem:[#allocation3 + $0xc3c] ss:$40 sps:$4 sm:$0xff]  }
  0xea   :  { %4238 = vmatprep.subr.bf16.mxu1 %v7198_v59  ;;  %v7270_v59 = vld [vmem:[#allocation3 + $0x113c] ss:$40 sps:$4 sm:$0xff]  }
  0xec   :  { %4198 = vmatpush1.bf16.msra.mxu0 %v7193_v62  ;;  %v7265_v62 = vld [vmem:[#allocation3 + $0xc38] ss:$40 sps:$4 sm:$0xff]  }
  0xed   :  { %4239 = vmatpush1.bf16.msra.mxu1 %v7196_v1  ;;  %4199 = vmatprep.subr.bf16.mxu0 %v7201_v2  ;;  %v7268_v1 = vld [vmem:[#allocation3 + $0x1138] ss:$40 sps:$4 sm:$0xff]   ;;  %v7273_v2 = vld [vmem:[#allocation3 + $0xbec] ss:$40 sps:$4 sm:$0xff]  }
  0xee   :  { %4240 = vmatprep.subr.bf16.mxu1 %v7204_v3  ;;  %v7276_v3 = vld [vmem:[#allocation3 + $0x10ec] ss:$40 sps:$4 sm:$0xff]  }
  0xf0   :  { %4200 = vmatpush1.bf16.msra.mxu0 %v7199_v5  ;;  %v7271_v5 = vld [vmem:[#allocation3 + $0xbe8] ss:$40 sps:$4 sm:$0xff]  }
  0xf1   :  { %4241 = vmatpush1.bf16.msra.mxu1 %v7202_v6  ;;  %4201 = vmatprep.subr.bf16.mxu0 %v7207_v7  ;;  %v7274_v6 = vld [vmem:[#allocation3 + $0x10e8] ss:$40 sps:$4 sm:$0xff]   ;;  %v7279_v7 = vld [vmem:[#allocation3 + $0xb9c] ss:$40 sps:$4 sm:$0xff]  }
  0xf2   :  { %4242 = vmatprep.subr.bf16.mxu1 %v7210_v8  ;;  %v7282_v8 = vld [vmem:[#allocation3 + $0x109c] ss:$40 sps:$4 sm:$0xff]  }
  0xf4   :  { %4202 = vmatpush1.bf16.msra.mxu0 %v7205_v9  ;;  %v7277_v9 = vld [vmem:[#allocation3 + $0xb98] ss:$40 sps:$4 sm:$0xff]  }
  0xf5   :  { %4243 = vmatpush1.bf16.msra.mxu1 %v7208_v10  ;;  %4203 = vmatprep.subr.bf16.mxu0 %v7213_v11  ;;  %v7280_v10 = vld [vmem:[#allocation3 + $0x1098] ss:$40 sps:$4 sm:$0xff]   ;;  %v7285_v11 = vld [vmem:[#allocation3 + $0xb4c] ss:$40 sps:$4 sm:$0xff]  }
  0xf6   :  { %4244 = vmatprep.subr.bf16.mxu1 %v7216_v12  ;;  %v7288_v12 = vld [vmem:[#allocation3 + $0x104c] ss:$40 sps:$4 sm:$0xff]  }
  0xf8   :  { %4204 = vmatpush1.bf16.msra.mxu0 %v7211_v13  ;;  %v7283_v13 = vld [vmem:[#allocation3 + $0xb48] ss:$40 sps:$4 sm:$0xff]  }
  0xf9   :  { %4245 = vmatpush1.bf16.msra.mxu1 %v7214_v14  ;;  %4205 = vmatprep.subr.bf16.mxu0 %v7219_v15  ;;  %v7286_v14 = vld [vmem:[#allocation3 + $0x1048] ss:$40 sps:$4 sm:$0xff]   ;;  %v7291_v15 = vld [vmem:[#allocation3 + $0xafc] ss:$40 sps:$4 sm:$0xff]  }
  0xfa   :  { %4246 = vmatprep.subr.bf16.mxu1 %v7222_v16  ;;  %v7294_v16 = vld [vmem:[#allocation3 + $0xffc] ss:$40 sps:$4 sm:$0xff]  }
  0xfc   :  { %4206 = vmatpush2.bf16.msra.mxu0 %v7217_v19  ;;  %v7289_v19 = vld [vmem:[#allocation3 + $0xaf8] ss:$40 sps:$4 sm:$0xff]  }
  0xfd   :  { %4247 = vmatpush2.bf16.msra.mxu1 %v7220_v20  ;;  %4207 = vmatprep.subr.bf16.mxu0 %v7225_v21  ;;  %v7292_v20 = vld [vmem:[#allocation3 + $0xff8] ss:$40 sps:$4 sm:$0xff]   ;;  %v7297_v21 = vld [vmem:[#allocation3 + $0xaac] ss:$40 sps:$4 sm:$0xff]  }
  0xfe   :  { %4248 = vmatprep.subr.bf16.mxu1 %v7228_v22  ;;  %v7300_v22 = vld [vmem:[#allocation3 + $0xfac] ss:$40 sps:$4 sm:$0xff]  }
 0x100   :  { %4208 = vmatpush2.bf16.msra.mxu0 %v7223_v23  ;;  %v7295_v23 = vld [vmem:[#allocation3 + $0xaa8] ss:$40 sps:$4 sm:$0xff]  }
 0x101   :  { %4249 = vmatpush2.bf16.msra.mxu1 %v7226_v24  ;;  %4209 = vmatprep.subr.bf16.mxu0 %v7231_v25  ;;  %v7298_v24 = vld [vmem:[#allocation3 + $0xfa8] ss:$40 sps:$4 sm:$0xff]   ;;  %v7303_v25 = vld [vmem:[#allocation3 + $0xa5c] ss:$40 sps:$4 sm:$0xff]  }
 0x102   :  { %4250 = vmatprep.subr.bf16.mxu1 %v7234_v26  ;;  %v7306_v26 = vld [vmem:[#allocation3 + $0xf5c] ss:$40 sps:$4 sm:$0xff]  }
 0x104   :  { %4210 = vmatpush2.bf16.msra.mxu0 %v7229_v27  ;;  %v7301_v27 = vld [vmem:[#allocation3 + $0xa58] ss:$40 sps:$4 sm:$0xff]  }
 0x105   :  { %4251 = vmatpush2.bf16.msra.mxu1 %v7232_v28  ;;  %4211 = vmatprep.subr.bf16.mxu0 %v7237_v29  ;;  %v7304_v28 = vld [vmem:[#allocation3 + $0xf58] ss:$40 sps:$4 sm:$0xff]   ;;  %v7309_v29 = vld [vmem:[#allocation3 + $0xa0c] ss:$40 sps:$4 sm:$0xff]  }
 0x106   :  { %4252 = vmatprep.subr.bf16.mxu1 %v7240_v30  ;;  %v7312_v30 = vld [vmem:[#allocation3 + $0xf0c] ss:$40 sps:$4 sm:$0xff]  }
 0x108   :  { %4212 = vmatpush2.bf16.msra.mxu0 %v7235_v31  ;;  %v7307_v31 = vld [vmem:[#allocation3 + $0xa08] ss:$40 sps:$4 sm:$0xff]  }
 0x109   :  { %4253 = vmatpush2.bf16.msra.mxu1 %v7238_v32  ;;  %4213 = vmatprep.subr.bf16.mxu0 %v7243_v33  ;;  %v7310_v32 = vld [vmem:[#allocation3 + $0xf08] ss:$40 sps:$4 sm:$0xff]   ;;  %v7315_v33 = vld [vmem:[#allocation3 + $0xebc] ss:$40 sps:$4 sm:$0xff]  }
 0x10a   :  { %4254 = vmatprep.subr.bf16.mxu1 %v7246_v34  ;;  %v7318_v34 = vld [vmem:[#allocation3 + $0x13bc] ss:$40 sps:$4 sm:$0xff]  }
 0x10c   :  { %4214 = vmatpush2.bf16.msra.mxu0 %v7241_v37  ;;  %v7313_v37 = vld [vmem:[#allocation3 + $0xeb8] ss:$40 sps:$4 sm:$0xff]  }
 0x10d   :  { %4255 = vmatpush2.bf16.msra.mxu1 %v7244_v38  ;;  %4215 = vmatprep.subr.bf16.mxu0 %v7249_v39  ;;  %v7316_v38 = vld [vmem:[#allocation3 + $0x13b8] ss:$40 sps:$4 sm:$0xff]   ;;  %v7321_v39 = vld [vmem:[#allocation3 + $0xe6c] ss:$40 sps:$4 sm:$0xff]  }
 0x10e   :  { %4256 = vmatprep.subr.bf16.mxu1 %v7252_v40  ;;  %v7324_v40 = vld [vmem:[#allocation3 + $0x136c] ss:$40 sps:$4 sm:$0xff]  }
 0x110   :  { %4216 = vmatpush2.bf16.msra.mxu0 %v7247_v41  ;;  %v7319_v41 = vld [vmem:[#allocation3 + $0xe68] ss:$40 sps:$4 sm:$0xff]  }
 0x111   :  { %4257 = vmatpush2.bf16.msra.mxu1 %v7250_v42  ;;  %4217 = vmatprep.subr.bf16.mxu0 %v7255_v43  ;;  %v7322_v42 = vld [vmem:[#allocation3 + $0x1368] ss:$40 sps:$4 sm:$0xff]   ;;  %v7327_v43 = vld [vmem:[#allocation3 + $0xe1c] ss:$40 sps:$4 sm:$0xff]  }
 0x112   :  { %4258 = vmatprep.subr.bf16.mxu1 %v7258_v45  ;;  %v7330_v45 = vld [vmem:[#allocation3 + $0x131c] ss:$40 sps:$4 sm:$0xff]  }
 0x114   :  { %4218 = vmatpush2.bf16.msra.mxu0 %v7253_v46  ;;  %v7325_v46 = vld [vmem:[#allocation3 + $0xe18] ss:$40 sps:$4 sm:$0xff]  }
 0x115   :  { %4259 = vmatpush2.bf16.msra.mxu1 %v7256_v47  ;;  %4219 = vmatprep.subr.bf16.mxu0 %v7261_v51  ;;  %v7328_v47 = vld [vmem:[#allocation3 + $0x1318] ss:$40 sps:$4 sm:$0xff]   ;;  %v7333_v51 = vld [vmem:[#allocation3 + $0xdcc] ss:$40 sps:$4 sm:$0xff]  }
 0x116   :  { %4260 = vmatprep.subr.bf16.mxu1 %v7264_v52  ;;  %v7336_v52 = vld [vmem:[#allocation3 + $0x12cc] ss:$40 sps:$4 sm:$0xff]  }
 0x118   :  { %4220 = vmatpush2.bf16.msra.mxu0 %v7259_v56  ;;  %v7331_v56 = vld [vmem:[#allocation3 + $0xdc8] ss:$40 sps:$4 sm:$0xff]  }
 0x119   :  { %4261 = vmatpush2.bf16.msra.mxu1 %v7262_v57  ;;  %4271 = vmatprep.subr.bf16.mxu0 %v7267_v58  ;;  %v7334_v57 = vld [vmem:[#allocation3 + $0x12c8] ss:$40 sps:$4 sm:$0xff]   ;;  %v7339_v58 = vld [vmem:[#allocation3 + $0xd7c] ss:$40 sps:$4 sm:$0xff]  }
 0x11a   :  { %4312 = vmatprep.subr.bf16.mxu1 %v7270_v59  ;;  %v7342_v59 = vld [vmem:[#allocation3 + $0x127c] ss:$40 sps:$4 sm:$0xff]  }
 0x11b   :  { %4222 = vmatmul.mubr.bf16.vlgmr.msra.gmra.mxu0 %v8234_v17 }
 0x11c   :  { %4263 = vmatmul.mubr.bf16.vlgmr.msra.gmra.mxu1 %v8238_v18  ;;  %4272 = vmatpush1.bf16.msra.mxu0 %v7265_v62  ;;  %v7337_v62 = vld [vmem:[#allocation3 + $0xd78] ss:$40 sps:$4 sm:$0xff]  }
 0x11d   :  { %4313 = vmatpush1.bf16.msra.mxu1 %v7268_v1  ;;  %4273 = vmatprep.subr.bf16.mxu0 %v7273_v2  ;;  %v7340_v1 = vld [vmem:[#allocation3 + $0x1278] ss:$40 sps:$4 sm:$0xff]   ;;  %v7345_v2 = vld [vmem:[#allocation3 + $0xd2c] ss:$40 sps:$4 sm:$0xff]  }
 0x11e   :  { %4314 = vmatprep.subr.bf16.mxu1 %v7276_v3  ;;  %4303 = vmatprep.mubr.bf16.mxu0 %v8257_v53  ;;  %v7348_v3 = vld [vmem:[#allocation3 + $0x122c] ss:$40 sps:$4 sm:$0xff]  }
 0x11f   :  { %4344 = vmatprep.mubr.bf16.mxu1 %v8265_v50 }
 0x120   :  { %4274 = vmatpush1.bf16.msra.mxu0 %v7271_v5  ;;  %v7343_v5 = vld [vmem:[#allocation3 + $0xd28] ss:$40 sps:$4 sm:$0xff]  }
 0x121   :  { %4315 = vmatpush1.bf16.msra.mxu1 %v7274_v6  ;;  %4275 = vmatprep.subr.bf16.mxu0 %v7279_v7  ;;  %v7346_v6 = vld [vmem:[#allocation3 + $0x1228] ss:$40 sps:$4 sm:$0xff]   ;;  %v7351_v7 = vld [vmem:[#allocation3 + $0xcdc] ss:$40 sps:$4 sm:$0xff]  }
 0x122   :  { %4316 = vmatprep.subr.bf16.mxu1 %v7282_v8  ;;  %v7354_v8 = vld [vmem:[#allocation3 + $0x11dc] ss:$40 sps:$4 sm:$0xff]  }
 0x124   :  { %4276 = vmatpush1.bf16.msra.mxu0 %v7277_v9  ;;  %v7349_v9 = vld [vmem:[#allocation3 + $0xcd8] ss:$40 sps:$4 sm:$0xff]  }
 0x125   :  { %4317 = vmatpush1.bf16.msra.mxu1 %v7280_v10  ;;  %4277 = vmatprep.subr.bf16.mxu0 %v7285_v11  ;;  %v7352_v10 = vld [vmem:[#allocation3 + $0x11d8] ss:$40 sps:$4 sm:$0xff]   ;;  %v7357_v11 = vld [vmem:[#allocation3 + $0xc8c] ss:$40 sps:$4 sm:$0xff]  }
 0x126   :  { %4318 = vmatprep.subr.bf16.mxu1 %v7288_v12  ;;  %v7360_v12 = vld [vmem:[#allocation3 + $0x118c] ss:$40 sps:$4 sm:$0xff]  }
 0x128   :  { %4278 = vmatpush1.bf16.msra.mxu0 %v7283_v13  ;;  %v7355_v13 = vld [vmem:[#allocation3 + $0xc88] ss:$40 sps:$4 sm:$0xff]  }
 0x129   :  { %4319 = vmatpush1.bf16.msra.mxu1 %v7286_v14  ;;  %4279 = vmatprep.subr.bf16.mxu0 %v7291_v15  ;;  %v7358_v14 = vld [vmem:[#allocation3 + $0x1188] ss:$40 sps:$4 sm:$0xff]   ;;  %v7363_v15 = vld [vmem:[#allocation3 + $0x244] ss:$40 sps:$4 sm:$0xff]  }
 0x12a   :  { %4320 = vmatprep.subr.bf16.mxu1 %v7294_v16  ;;  %v7366_v16 = vld [vmem:[#allocation3 + $0x744] ss:$40 sps:$4 sm:$0xff]  }
 0x12c   :  { %4280 = vmatpush1.bf16.msra.mxu0 %v7289_v19  ;;  %v7361_v19 = vld [vmem:[#allocation3 + $0x240] ss:$40 sps:$4 sm:$0xff]  }
 0x12d   :  { %4321 = vmatpush1.bf16.msra.mxu1 %v7292_v20  ;;  %4281 = vmatprep.subr.bf16.mxu0 %v7297_v21  ;;  %v7364_v20 = vld [vmem:[#allocation3 + $0x740] ss:$40 sps:$4 sm:$0xff]   ;;  %v7369_v21 = vld [vmem:[#allocation3 + $0x1f4] ss:$40 sps:$4 sm:$0xff]  }
 0x12e   :  { %4322 = vmatprep.subr.bf16.mxu1 %v7300_v22  ;;  %v7372_v22 = vld [vmem:[#allocation3 + $0x6f4] ss:$40 sps:$4 sm:$0xff]  }
 0x130   :  { %4282 = vmatpush1.bf16.msra.mxu0 %v7295_v23  ;;  %v7367_v23 = vld [vmem:[#allocation3 + $0x1f0] ss:$40 sps:$4 sm:$0xff]  }
 0x131   :  { %4323 = vmatpush1.bf16.msra.mxu1 %v7298_v24  ;;  %4283 = vmatprep.subr.bf16.mxu0 %v7303_v25 }
 0x132   :  { %4324 = vmatprep.subr.bf16.mxu1 %v7306_v26  ;;  %v7370_v26 = vld [vmem:[#allocation3 + $0x6f0] ss:$40 sps:$4 sm:$0xff]  }
 0x134   :  { %4284 = vmatpush1.bf16.msra.mxu0 %v7301_v27 }
 0x135   :  { %4325 = vmatpush1.bf16.msra.mxu1 %v7304_v28  ;;  %4285 = vmatprep.subr.bf16.mxu0 %v7309_v29 }
 0x136   :  { %4326 = vmatprep.subr.bf16.mxu1 %v7312_v30  ;;  %v7375_v30 = vld [vmem:[#allocation3 + $0x1a4] ss:$40 sps:$4 sm:$0xff]  }
 0x138   :  { %4286 = vmatpush1.bf16.msra.mxu0 %v7307_v31  ;;  %v7378_v31 = vld [vmem:[#allocation3 + $0x6a4] ss:$40 sps:$4 sm:$0xff]  }
 0x139   :  { %4327 = vmatpush1.bf16.msra.mxu1 %v7310_v32  ;;  %4287 = vmatprep.subr.bf16.mxu0 %v7315_v33  ;;  %v7373_v33 = vld [vmem:[#allocation3 + $0x1a0] ss:$40 sps:$4 sm:$0xff]  }
 0x13a   :  { %4328 = vmatprep.subr.bf16.mxu1 %v7318_v34  ;;  %v7376_v34 = vld [vmem:[#allocation3 + $0x6a0] ss:$40 sps:$4 sm:$0xff]  }
 0x13c   :  { %4288 = vmatpush2.bf16.msra.mxu0 %v7313_v37 }
 0x13d   :  { %4329 = vmatpush2.bf16.msra.mxu1 %v7316_v38  ;;  %4289 = vmatprep.subr.bf16.mxu0 %v7321_v39 }
 0x13e   :  { %4330 = vmatprep.subr.bf16.mxu1 %v7324_v40 }
 0x140   :  { %4290 = vmatpush2.bf16.msra.mxu0 %v7319_v41  ;;  %v7381_v41 = vld [vmem:[#allocation3 + $0x154] ss:$40 sps:$4 sm:$0xff]  }
 0x141   :  { %4331 = vmatpush2.bf16.msra.mxu1 %v7322_v42  ;;  %4291 = vmatprep.subr.bf16.mxu0 %v7327_v43  ;;  %v7384_v42 = vld [vmem:[#allocation3 + $0x654] ss:$40 sps:$4 sm:$0xff]   ;;  %v7379_v43 = vld [vmem:[#allocation3 + $0x150] ss:$40 sps:$4 sm:$0xff]  }
 0x142   :  { %4332 = vmatprep.subr.bf16.mxu1 %v7330_v45  ;;  %v7382_v45 = vld [vmem:[#allocation3 + $0x650] ss:$40 sps:$4 sm:$0xff]  }
 0x144   :  { %4292 = vmatpush2.bf16.msra.mxu0 %v7325_v46  ;;  %v7387_v46 = vld [vmem:[#allocation3 + $0x104] ss:$40 sps:$4 sm:$0xff]  }
 0x145   :  { %4333 = vmatpush2.bf16.msra.mxu1 %v7328_v47  ;;  %4293 = vmatprep.subr.bf16.mxu0 %v7333_v51  ;;  %v7390_v47 = vld [vmem:[#allocation3 + $0x604] ss:$40 sps:$4 sm:$0xff]   ;;  %v7385_v51 = vld [vmem:[#allocation3 + $0x100] ss:$40 sps:$4 sm:$0xff]  }
 0x146   :  { %4334 = vmatprep.subr.bf16.mxu1 %v7336_v52  ;;  %v7388_v52 = vld [vmem:[#allocation3 + $0x600] ss:$40 sps:$4 sm:$0xff]  }
 0x148   :  { %4294 = vmatpush2.bf16.msra.mxu0 %v7331_v56  ;;  %v7393_v56 = vld [vmem:[#allocation3 + $0xb4] ss:$40 sps:$4 sm:$0xff]  }
 0x149   :  { %4335 = vmatpush2.bf16.msra.mxu1 %v7334_v57  ;;  %4295 = vmatprep.subr.bf16.mxu0 %v7339_v58  ;;  %v7396_v57 = vld [vmem:[#allocation3 + $0x5b4] ss:$40 sps:$4 sm:$0xff]   ;;  %v7391_v58 = vld [vmem:[#allocation3 + $0xb0] ss:$40 sps:$4 sm:$0xff]  }
 0x14a   :  { %4336 = vmatprep.subr.bf16.mxu1 %v7342_v59  ;;  %v7394_v59 = vld [vmem:[#allocation3 + $0x5b0] ss:$40 sps:$4 sm:$0xff]  }
 0x14c   :  { %4296 = vmatpush2.bf16.msra.mxu0 %v7337_v62  ;;  %v7399_v62 = vld [vmem:[#allocation3 + $0x64] ss:$40 sps:$4 sm:$0xff]  }
 0x14d   :  { %4337 = vmatpush2.bf16.msra.mxu1 %v7340_v1  ;;  %4297 = vmatprep.subr.bf16.mxu0 %v7345_v2  ;;  %v7402_v1 = vld [vmem:[#allocation3 + $0x564] ss:$40 sps:$4 sm:$0xff]   ;;  %v7397_v2 = vld [vmem:[#allocation3 + $0x60] ss:$40 sps:$4 sm:$0xff]  }
 0x14e   :  { %4338 = vmatprep.subr.bf16.mxu1 %v7348_v3  ;;  %v7400_v3 = vld [vmem:[#allocation3 + $0x560] ss:$40 sps:$4 sm:$0xff]  }
 0x150   :  { %4298 = vmatpush2.bf16.msra.mxu0 %v7343_v5  ;;  %v7405_v5 = vld [vmem:[#allocation3 + $0x14] ss:$40 sps:$4 sm:$0xff]  }
 0x151   :  { %4339 = vmatpush2.bf16.msra.mxu1 %v7346_v6  ;;  %4299 = vmatprep.subr.bf16.mxu0 %v7351_v7  ;;  %v7408_v6 = vld [vmem:[#allocation3 + $0x514] ss:$40 sps:$4 sm:$0xff]   ;;  %v7403_v7 = vld [vmem:[#allocation3 + $0x10] ss:$40 sps:$4 sm:$0xff]  }
 0x152   :  { %4340 = vmatprep.subr.bf16.mxu1 %v7354_v8  ;;  %v7406_v8 = vld [vmem:[#allocation3 + $0x510] ss:$40 sps:$4 sm:$0xff]  }
 0x154   :  { %4300 = vmatpush2.bf16.msra.mxu0 %v7349_v9  ;;  %v7411_v9 = vld [vmem:[#allocation3 + $0x4c4] ss:$40 sps:$4 sm:$0xff]  }
 0x155   :  { %4341 = vmatpush2.bf16.msra.mxu1 %v7352_v10  ;;  %4301 = vmatprep.subr.bf16.mxu0 %v7357_v11  ;;  %v7414_v10 = vld [vmem:[#allocation3 + $0x9c4] ss:$40 sps:$4 sm:$0xff]   ;;  %v7409_v11 = vld [vmem:[#allocation3 + $0x4c0] ss:$40 sps:$4 sm:$0xff]  }
 0x156   :  { %4342 = vmatprep.subr.bf16.mxu1 %v7360_v12  ;;  %v7412_v12 = vld [vmem:[#allocation3 + $0x9c0] ss:$40 sps:$4 sm:$0xff]  }
 0x158   :  { %4302 = vmatpush2.bf16.msra.mxu0 %v7355_v13  ;;  %v7417_v13 = vld [vmem:[#allocation3 + $0x474] ss:$40 sps:$4 sm:$0xff]  }
 0x159   :  { %4343 = vmatpush2.bf16.msra.mxu1 %v7358_v14  ;;  %4353 = vmatprep.subr.bf16.mxu0 %v7363_v15  ;;  %v7420_v14 = vld [vmem:[#allocation3 + $0x974] ss:$40 sps:$4 sm:$0xff]   ;;  %v7415_v15 = vld [vmem:[#allocation3 + $0x470] ss:$40 sps:$4 sm:$0xff]  }
 0x15a   :  { %4394 = vmatprep.subr.bf16.mxu1 %v7366_v16  ;;  %v7418_v16 = vld [vmem:[#allocation3 + $0x970] ss:$40 sps:$4 sm:$0xff]  }
 0x15b   :  { %v4059_v24 = vpop.f32.mrf.mxu0  ;;  %4304 = vmatmul.mubr.bf16.vlgmr.msra.gmra.mxu0 %v8271_v35 }
 0x15c   :  { %v4100_v25 = vpop.f32.mrf.mxu1  ;;  %4345 = vmatmul.mubr.bf16.vlgmr.msra.gmra.mxu1 %v8275_v36  ;;  %4354 = vmatpush1.bf16.msra.mxu0 %v7361_v19  ;;  %v7423_v19 = vld [vmem:[#allocation3 + $0x424] ss:$40 sps:$4 sm:$0xff]  }
 0x15d   :  { %v8287_v27 = vadd.f32 %v4100_v25, %v4059_v24  ;;  %4395 = vmatpush1.bf16.msra.mxu1 %v7364_v20  ;;  %v4061_v28 = vpop.f32.mrf.mxu0  ;;  %4355 = vmatprep.subr.bf16.mxu0 %v7369_v21  ;;  %v7426_v20 = vld [vmem:[#allocation3 + $0x924] ss:$40 sps:$4 sm:$0xff]   ;;  %v7421_v21 = vld [vmem:[#allocation3 + $0x420] ss:$40 sps:$4 sm:$0xff]   ;;  %v7432_v24 = vld [vmem:[#allocation3 + $0x8d4] ss:$40 sps:$4 sm:$0xff]  }
 0x15e   :  { %v4102_v29 = vpop.f32.mrf.mxu1  ;;  %4396 = vmatprep.subr.bf16.mxu1 %v7372_v22  ;;  %4385 = vmatprep.mubr.bf16.mxu0 %v8220_v63  ;;  %v7424_v22 = vld [vmem:[#allocation3 + $0x920] ss:$40 sps:$4 sm:$0xff]   ;;  %v7427_v25 = vld [vmem:[#allocation3 + $0x3d0] ss:$40 sps:$4 sm:$0xff]  }
 0x15f   :  { %v8289_v32 = vadd.f32 %v4102_v29, %v4061_v28  ;;  %4426 = vmatprep.mubr.bf16.mxu1 %v8228_v4  ;;  %v4063_v37 = vpop.f32.mrf.mxu0  ;;  %v7435_v28 = vld [vmem:[#allocation3 + $0x384] ss:$40 sps:$4 sm:$0xff]  }
 0x160   :  { %v4104_v38 = vpop.f32.mrf.mxu1  ;;  %4356 = vmatpush1.bf16.msra.mxu0 %v7367_v23  ;;  %v7429_v23 = vld [vmem:[#allocation3 + $0x3d4] ss:$40 sps:$4 sm:$0xff]   ;;  %v7438_v29 = vld [vmem:[#allocation3 + $0x884] ss:$40 sps:$4 sm:$0xff]   ;;  %v7439_v37 = vld [vmem:[#allocation3 + $0x330] ss:$40 sps:$4 sm:$0xff]  }
 0x161   :  { %4397 = vmatpush1.bf16.msra.mxu1 %v7370_v26  ;;  %v4064_v39 = vpop.f32.mrf.mxu0  ;;  %4357 = vmatprep.subr.bf16.mxu0 %v7375_v30  ;;  %v7430_v26 = vld [vmem:[#allocation3 + $0x8d0] ss:$40 sps:$4 sm:$0xff]   ;;  %v7433_v30 = vld [vmem:[#allocation3 + $0x380] ss:$40 sps:$4 sm:$0xff]  }
 0x162   :  { %v4105_v40 = vpop.f32.mrf.mxu1  ;;  %4398 = vmatprep.subr.bf16.mxu1 %v7378_v31  ;;  %v7436_v31 = vld [vmem:[#allocation3 + $0x880] ss:$40 sps:$4 sm:$0xff]   ;;  %v7442_v38 = vld [vmem:[#allocation3 + $0x830] ss:$40 sps:$4 sm:$0xff]   ;;  %v7447_v39 = vld [vmem:[#allocation3 + $0x2e4] ss:$40 sps:$4 sm:$0xff]  }
 0x163   :  { %v7450_v40 = vld [vmem:[#allocation3 + $0x7e4] ss:$40 sps:$4 sm:$0xff]  }
 0x164   :  { %4358 = vmatpush1.bf16.msra.mxu0 %v7373_v33  ;;  %v7441_v33 = vld [vmem:[#allocation3 + $0x334] ss:$40 sps:$4 sm:$0xff]  }
 0x165   :  { %4399 = vmatpush1.bf16.msra.mxu1 %v7376_v34  ;;  %4359 = vmatprep.subr.bf16.mxu0 %v7381_v41  ;;  %v7444_v34 = vld [vmem:[#allocation3 + $0x834] ss:$40 sps:$4 sm:$0xff]   ;;  %v7445_v41 = vld [vmem:[#allocation3 + $0x2e0] ss:$40 sps:$4 sm:$0xff]  }
 0x166   :  { %4400 = vmatprep.subr.bf16.mxu1 %v7384_v42  ;;  %v7448_v42 = vld [vmem:[#allocation3 + $0x7e0] ss:$40 sps:$4 sm:$0xff]  }
 0x168   :  { %4360 = vmatpush1.bf16.msra.mxu0 %v7379_v43  ;;  %v7453_v43 = vld [vmem:[#allocation3 + $0x294] ss:$40 sps:$4 sm:$0xff]  }
 0x169   :  { %4401 = vmatpush1.bf16.msra.mxu1 %v7382_v45  ;;  %4361 = vmatprep.subr.bf16.mxu0 %v7387_v46  ;;  %v7456_v45 = vld [vmem:[#allocation3 + $0x794] ss:$40 sps:$4 sm:$0xff]   ;;  %v7451_v46 = vld [vmem:[#allocation3 + $0x290] ss:$40 sps:$4 sm:$0xff]  }
 0x16a   :  { %4402 = vmatprep.subr.bf16.mxu1 %v7390_v47  ;;  %v7454_v47 = vld [vmem:[#allocation3 + $0x790] ss:$40 sps:$4 sm:$0xff]  }
 0x16c   :  { %4362 = vmatpush1.bf16.msra.mxu0 %v7385_v51  ;;  %v7459_v51 = vld [vmem:[#allocation3 + $0xc44] ss:$40 sps:$4 sm:$0xff]  }
 0x16d   :  { %4403 = vmatpush1.bf16.msra.mxu1 %v7388_v52  ;;  %4363 = vmatprep.subr.bf16.mxu0 %v7393_v56  ;;  %v7462_v52 = vld [vmem:[#allocation3 + $0x1144] ss:$40 sps:$4 sm:$0xff]   ;;  %v7457_v56 = vld [vmem:[#allocation3 + $0xc40] ss:$40 sps:$4 sm:$0xff]  }
 0x16e   :  { %4404 = vmatprep.subr.bf16.mxu1 %v7396_v57  ;;  %v7460_v57 = vld [vmem:[#allocation3 + $0x1140] ss:$40 sps:$4 sm:$0xff]  }
 0x170   :  { %4364 = vmatpush1.bf16.msra.mxu0 %v7391_v58  ;;  %v7465_v58 = vld [vmem:[#allocation3 + $0xbf4] ss:$40 sps:$4 sm:$0xff]  }
 0x171   :  { %4405 = vmatpush1.bf16.msra.mxu1 %v7394_v59  ;;  %4365 = vmatprep.subr.bf16.mxu0 %v7399_v62  ;;  %v7468_v59 = vld [vmem:[#allocation3 + $0x10f4] ss:$40 sps:$4 sm:$0xff]   ;;  %v7463_v62 = vld [vmem:[#allocation3 + $0xbf0] ss:$40 sps:$4 sm:$0xff]  }
 0x172   :  { %4406 = vmatprep.subr.bf16.mxu1 %v7402_v1  ;;  %v7466_v1 = vld [vmem:[#allocation3 + $0x10f0] ss:$40 sps:$4 sm:$0xff]  }
 0x174   :  { %4366 = vmatpush1.bf16.msra.mxu0 %v7397_v2 }
 0x175   :  { %4407 = vmatpush1.bf16.msra.mxu1 %v7400_v3  ;;  %4367 = vmatprep.subr.bf16.mxu0 %v7405_v5 }
 0x176   :  { %4408 = vmatprep.subr.bf16.mxu1 %v7408_v6 }
 0x178   :  { %4368 = vmatpush1.bf16.msra.mxu0 %v7403_v7 }
 0x179   :  { %4409 = vmatpush1.bf16.msra.mxu1 %v7406_v8  ;;  %4369 = vmatprep.subr.bf16.mxu0 %v7411_v9  ;;  %v7471_v8 = vld [vmem:[#allocation3 + $0xba4] ss:$40 sps:$4 sm:$0xff]  }
 0x17a   :  { %4410 = vmatprep.subr.bf16.mxu1 %v7414_v10  ;;  %v7474_v9 = vld [vmem:[#allocation3 + $0x10a4] ss:$40 sps:$4 sm:$0xff]  }
 0x17c   :  { %4370 = vmatpush2.bf16.msra.mxu0 %v7409_v11 }
 0x17d   :  { %4411 = vmatpush2.bf16.msra.mxu1 %v7412_v12  ;;  %4371 = vmatprep.subr.bf16.mxu0 %v7417_v13  ;;  %v7469_v12 = vld [vmem:[#allocation3 + $0xba0] ss:$40 sps:$4 sm:$0xff]  }
 0x17e   :  { %4412 = vmatprep.subr.bf16.mxu1 %v7420_v14  ;;  %v7472_v13 = vld [vmem:[#allocation3 + $0x10a0] ss:$40 sps:$4 sm:$0xff]  }
 0x180   :  { %4372 = vmatpush2.bf16.msra.mxu0 %v7415_v15 }
 0x181   :  { %4413 = vmatpush2.bf16.msra.mxu1 %v7418_v16  ;;  %4373 = vmatprep.subr.bf16.mxu0 %v7423_v19 }
 0x182   :  { %4414 = vmatprep.subr.bf16.mxu1 %v7426_v20  ;;  %v7477_v20 = vld [vmem:[#allocation3 + $0xb54] ss:$40 sps:$4 sm:$0xff]  }
 0x184   :  { %4374 = vmatpush2.bf16.msra.mxu0 %v7421_v21  ;;  %v7480_v21 = vld [vmem:[#allocation3 + $0x1054] ss:$40 sps:$4 sm:$0xff]  }
 0x185   :  { %4415 = vmatpush2.bf16.msra.mxu1 %v7424_v22  ;;  %4375 = vmatprep.subr.bf16.mxu0 %v7429_v23  ;;  %v7478_v22 = vld [vmem:[#allocation3 + $0x1050] ss:$40 sps:$4 sm:$0xff]   ;;  %v7483_v23 = vld [vmem:[#allocation3 + $0xb04] ss:$40 sps:$4 sm:$0xff]  }
 0x186   :  { %4416 = vmatprep.subr.bf16.mxu1 %v7432_v24  ;;  %v7486_v24 = vld [vmem:[#allocation3 + $0x1004] ss:$40 sps:$4 sm:$0xff]  }
 0x188   :  { %4376 = vmatpush2.bf16.msra.mxu0 %v7427_v25  ;;  %v7481_v25 = vld [vmem:[#allocation3 + $0xb00] ss:$40 sps:$4 sm:$0xff]  }
 0x189   :  { %4417 = vmatpush2.bf16.msra.mxu1 %v7430_v26  ;;  %4377 = vmatprep.subr.bf16.mxu0 %v7435_v28  ;;  %v7484_v26 = vld [vmem:[#allocation3 + $0x1000] ss:$40 sps:$4 sm:$0xff]   ;;  %v7489_v28 = vld [vmem:[#allocation3 + $0xab4] ss:$40 sps:$4 sm:$0xff]  }
 0x18a   :  { %4418 = vmatprep.subr.bf16.mxu1 %v7438_v29  ;;  %v7492_v29 = vld [vmem:[#allocation3 + $0xfb4] ss:$40 sps:$4 sm:$0xff]  }
 0x18c   :  { %4378 = vmatpush2.bf16.msra.mxu0 %v7433_v30  ;;  %v7487_v30 = vld [vmem:[#allocation3 + $0xab0] ss:$40 sps:$4 sm:$0xff]  }
 0x18d   :  { %4419 = vmatpush2.bf16.msra.mxu1 %v7436_v31  ;;  %4379 = vmatprep.subr.bf16.mxu0 %v7441_v33  ;;  %v7490_v31 = vld [vmem:[#allocation3 + $0xfb0] ss:$40 sps:$4 sm:$0xff]   ;;  %v7495_v33 = vld [vmem:[#allocation3 + $0xa64] ss:$40 sps:$4 sm:$0xff]  }
 0x18e   :  { %4420 = vmatprep.subr.bf16.mxu1 %v7444_v34  ;;  %v7498_v34 = vld [vmem:[#allocation3 + $0xf64] ss:$40 sps:$4 sm:$0xff]  }
 0x190   :  { %4380 = vmatpush2.bf16.msra.mxu0 %v7439_v37  ;;  %v7493_v37 = vld [vmem:[#allocation3 + $0xa60] ss:$40 sps:$4 sm:$0xff]  }
 0x191   :  { %4421 = vmatpush2.bf16.msra.mxu1 %v7442_v38  ;;  %4381 = vmatprep.subr.bf16.mxu0 %v7447_v39  ;;  %v7496_v38 = vld [vmem:[#allocation3 + $0xf60] ss:$40 sps:$4 sm:$0xff]   ;;  %v7501_v39 = vld [vmem:[#allocation3 + $0xa14] ss:$40 sps:$4 sm:$0xff]  }
 0x192   :  { %4422 = vmatprep.subr.bf16.mxu1 %v7450_v40  ;;  %v7504_v40 = vld [vmem:[#allocation3 + $0xf14] ss:$40 sps:$4 sm:$0xff]  }
 0x194   :  { %4382 = vmatpush2.bf16.msra.mxu0 %v7445_v41  ;;  %v7499_v41 = vld [vmem:[#allocation3 + $0xa10] ss:$40 sps:$4 sm:$0xff]  }
 0x195   :  { %4423 = vmatpush2.bf16.msra.mxu1 %v7448_v42  ;;  %4383 = vmatprep.subr.bf16.mxu0 %v7453_v43  ;;  %v7502_v42 = vld [vmem:[#allocation3 + $0xf10] ss:$40 sps:$4 sm:$0xff]   ;;  %v7507_v43 = vld [vmem:[#allocation3 + $0xec4] ss:$40 sps:$4 sm:$0xff]  }
 0x196   :  { %4424 = vmatprep.subr.bf16.mxu1 %v7456_v45  ;;  %v7510_v45 = vld [vmem:[#allocation3 + $0x13c4] ss:$40 sps:$4 sm:$0xff]  }
 0x198   :  { %4384 = vmatpush2.bf16.msra.mxu0 %v7451_v46  ;;  %v7505_v46 = vld [vmem:[#allocation3 + $0xec0] ss:$40 sps:$4 sm:$0xff]  }
 0x199   :  { %4425 = vmatpush2.bf16.msra.mxu1 %v7454_v47  ;;  %4435 = vmatprep.subr.bf16.mxu0 %v7459_v51  ;;  %v7508_v47 = vld [vmem:[#allocation3 + $0x13c0] ss:$40 sps:$4 sm:$0xff]   ;;  %v7513_v51 = vld [vmem:[#allocation3 + $0xe74] ss:$40 sps:$4 sm:$0xff]  }
 0x19a   :  { %4476 = vmatprep.subr.bf16.mxu1 %v7462_v52  ;;  %v7516_v52 = vld [vmem:[#allocation3 + $0x1374] ss:$40 sps:$4 sm:$0xff]  }
 0x19b   :  { %v4141_v2 = vpop.f32.mrf.mxu0  ;;  %4386 = vmatmul.mubr.bf16.vlgmr.msra.gmra.mxu0 %v8234_v17 }
 0x19c   :  { %v4182_v3 = vpop.f32.mrf.mxu1  ;;  %4427 = vmatmul.mubr.bf16.vlgmr.msra.gmra.mxu1 %v8238_v18  ;;  %v4142_v5 = vadd.f32 %v4141_v2, %v8287_v27  ;;  %4436 = vmatpush1.bf16.msra.mxu0 %v7457_v56  ;;  %v7511_v56 = vld [vmem:[#allocation3 + $0xe70] ss:$40 sps:$4 sm:$0xff]   ;;  %v7525_v2 = vld [vmem:[#allocation3 + $0xdd4] ss:$40 sps:$4 sm:$0xff]  }
 0x19d   :  { %4477 = vmatpush1.bf16.msra.mxu1 %v7460_v57  ;;  %v4143_v6 = vpop.f32.mrf.mxu0  ;;  %4437 = vmatprep.subr.bf16.mxu0 %v7465_v58  ;;  %v7514_v57 = vld [vmem:[#allocation3 + $0x1370] ss:$40 sps:$4 sm:$0xff]   ;;  %v7519_v58 = vld [vmem:[#allocation3 + $0xe24] ss:$40 sps:$4 sm:$0xff]  }
 0x19e   :  { %v4184_v7 = vpop.f32.mrf.mxu1  ;;  %4478 = vmatprep.subr.bf16.mxu1 %v7468_v59  ;;  %v8296_v10 = vadd.f32 %v4182_v3, %v4142_v5  ;;  %v4144_v11 = vadd.f32 %v4143_v6, %v8289_v32  ;;  %4467 = vmatprep.mubr.bf16.mxu0 %v8257_v53  ;;  %v7475_v32 = vld [vmem:[#allocation3 + $0xb50] ss:$40 sps:$4 sm:$0xff]   ;;  %v7522_v59 = vld [vmem:[#allocation3 + $0x1324] ss:$40 sps:$4 sm:$0xff]   ;;  %v7528_v3 = vld [vmem:[#allocation3 + $0x12d4] ss:$40 sps:$4 sm:$0xff]  }
 0x19f   :  { %4508 = vmatprep.mubr.bf16.mxu1 %v8265_v50  ;;  %v4145_v14 = vpop.f32.mrf.mxu0  ;;  %v7523_v5 = vld [vmem:[#allocation3 + $0xdd0] ss:$40 sps:$4 sm:$0xff]  }
 0x1a0   :  { %v4186_v27 = vpop.f32.mrf.mxu1  ;;  %v8301_v15 = vadd.f32 %v4184_v7, %v4144_v11  ;;  %4438 = vmatpush1.bf16.msra.mxu0 %v7463_v62  ;;  %v7517_v62 = vld [vmem:[#allocation3 + $0xe20] ss:$40 sps:$4 sm:$0xff]   ;;  %v7526_v6 = vld [vmem:[#allocation3 + $0x12d0] ss:$40 sps:$4 sm:$0xff]   ;;  %v7531_v7 = vld [vmem:[#allocation3 + $0xd84] ss:$40 sps:$4 sm:$0xff]  }
 0x1a1   :  { %4479 = vmatpush1.bf16.msra.mxu1 %v7466_v1  ;;  %v4146_v16 = vpop.f32.mrf.mxu0  ;;  %4439 = vmatprep.subr.bf16.mxu0 %v7471_v8  ;;  %v7520_v1 = vld [vmem:[#allocation3 + $0x1320] ss:$40 sps:$4 sm:$0xff]   ;;  %v7534_v8 = vld [vmem:[#allocation3 + $0x1284] ss:$40 sps:$4 sm:$0xff]   ;;  %v7535_v14 = vld [vmem:[#allocation3 + $0xd30] ss:$40 sps:$4 sm:$0xff]  }
 0x1a2   :  { %v4187_v19 = vpop.f32.mrf.mxu1  ;;  %4480 = vmatprep.subr.bf16.mxu1 %v7474_v9  ;;  %v7529_v9 = vld [vmem:[#allocation3 + $0xd80] ss:$40 sps:$4 sm:$0xff]   ;;  %v7538_v27 = vld [vmem:[#allocation3 + $0x1230] ss:$40 sps:$4 sm:$0xff]   ;;  %v7543_v16 = vld [vmem:[#allocation3 + $0xce4] ss:$40 sps:$4 sm:$0xff]  }
 0x1a3   :  { %v7532_v11 = vld [vmem:[#allocation3 + $0x1280] ss:$40 sps:$4 sm:$0xff]   ;;  %v7546_v19 = vld [vmem:[#allocation3 + $0x11e4] ss:$40 sps:$4 sm:$0xff]  }
 0x1a4   :  { %4440 = vmatpush1.bf16.msra.mxu0 %v7469_v12  ;;  %v7537_v12 = vld [vmem:[#allocation3 + $0xd34] ss:$40 sps:$4 sm:$0xff]  }
 0x1a5   :  { %4481 = vmatpush1.bf16.msra.mxu1 %v7472_v13  ;;  %4441 = vmatprep.subr.bf16.mxu0 %v7477_v20  ;;  %v7540_v13 = vld [vmem:[#allocation3 + $0x1234] ss:$40 sps:$4 sm:$0xff]   ;;  %v7541_v20 = vld [vmem:[#allocation3 + $0xce0] ss:$40 sps:$4 sm:$0xff]  }
 0x1a6   :  { %4482 = vmatprep.subr.bf16.mxu1 %v7480_v21  ;;  %v7544_v21 = vld [vmem:[#allocation3 + $0x11e0] ss:$40 sps:$4 sm:$0xff]  }
 0x1a8   :  { %4442 = vmatpush1.bf16.msra.mxu0 %v7475_v32  ;;  %v7549_v32 = vld [vmem:[#allocation3 + $0xc94] ss:$40 sps:$4 sm:$0xff]  }
 0x1a9   :  { %4483 = vmatpush1.bf16.msra.mxu1 %v7478_v22  ;;  %4443 = vmatprep.subr.bf16.mxu0 %v7483_v23  ;;  %v7552_v22 = vld [vmem:[#allocation3 + $0x1194] ss:$40 sps:$4 sm:$0xff]   ;;  %v7547_v23 = vld [vmem:[#allocation3 + $0xc90] ss:$40 sps:$4 sm:$0xff]  }
 0x1aa   :  { %4484 = vmatprep.subr.bf16.mxu1 %v7486_v24  ;;  %v7550_v24 = vld [vmem:[#allocation3 + $0x1190] ss:$40 sps:$4 sm:$0xff]  }
 0x1ac   :  { %4444 = vmatpush1.bf16.msra.mxu0 %v7481_v25  ;;  %v7555_v25 = vld [vmem:[#allocation3 + $0x24c] ss:$40 sps:$4 sm:$0xff]  }
 0x1ad   :  { %4485 = vmatpush1.bf16.msra.mxu1 %v7484_v26  ;;  %4445 = vmatprep.subr.bf16.mxu0 %v7489_v28  ;;  %v7558_v26 = vld [vmem:[#allocation3 + $0x74c] ss:$40 sps:$4 sm:$0xff]   ;;  %v7553_v28 = vld [vmem:[#allocation3 + $0x248] ss:$40 sps:$4 sm:$0xff]  }
 0x1ae   :  { %4486 = vmatprep.subr.bf16.mxu1 %v7492_v29  ;;  %v7556_v29 = vld [vmem:[#allocation3 + $0x748] ss:$40 sps:$4 sm:$0xff]  }
 0x1b0   :  { %4446 = vmatpush1.bf16.msra.mxu0 %v7487_v30  ;;  %v7561_v30 = vld [vmem:[#allocation3 + $0x1fc] ss:$40 sps:$4 sm:$0xff]  }
 0x1b1   :  { %4487 = vmatpush1.bf16.msra.mxu1 %v7490_v31  ;;  %4447 = vmatprep.subr.bf16.mxu0 %v7495_v33  ;;  %v7564_v31 = vld [vmem:[#allocation3 + $0x6fc] ss:$40 sps:$4 sm:$0xff]  }
 0x1b2   :  { %4488 = vmatprep.subr.bf16.mxu1 %v7498_v34 }
 0x1b4   :  { %4448 = vmatpush1.bf16.msra.mxu0 %v7493_v37 }
 0x1b5   :  { %4489 = vmatpush1.bf16.msra.mxu1 %v7496_v38  ;;  %4449 = vmatprep.subr.bf16.mxu0 %v7501_v39  ;;  %v7559_v38 = vld [vmem:[#allocation3 + $0x1f8] ss:$40 sps:$4 sm:$0xff]  }
 0x1b6   :  { %4490 = vmatprep.subr.bf16.mxu1 %v7504_v40  ;;  %v7562_v39 = vld [vmem:[#allocation3 + $0x6f8] ss:$40 sps:$4 sm:$0xff]  }
 0x1b8   :  { %4450 = vmatpush1.bf16.msra.mxu0 %v7499_v41 }
 0x1b9   :  { %4491 = vmatpush1.bf16.msra.mxu1 %v7502_v42  ;;  %4451 = vmatprep.subr.bf16.mxu0 %v7507_v43  ;;  %v7567_v42 = vld [vmem:[#allocation3 + $0x1ac] ss:$40 sps:$4 sm:$0xff]  }
 0x1ba   :  { %4492 = vmatprep.subr.bf16.mxu1 %v7510_v45  ;;  %v7570_v43 = vld [vmem:[#allocation3 + $0x6ac] ss:$40 sps:$4 sm:$0xff]  }
 0x1bc   :  { %4452 = vmatpush2.bf16.msra.mxu0 %v7505_v46 }
 0x1bd   :  { %4493 = vmatpush2.bf16.msra.mxu1 %v7508_v47  ;;  %4453 = vmatprep.subr.bf16.mxu0 %v7513_v51  ;;  %v7565_v51 = vld [vmem:[#allocation3 + $0x1a8] ss:$40 sps:$4 sm:$0xff]  }
 0x1be   :  { %4494 = vmatprep.subr.bf16.mxu1 %v7516_v52  ;;  %v7568_v52 = vld [vmem:[#allocation3 + $0x6a8] ss:$40 sps:$4 sm:$0xff]  }
 0x1c0   :  { %4454 = vmatpush2.bf16.msra.mxu0 %v7511_v56 }
 0x1c1   :  { %4495 = vmatpush2.bf16.msra.mxu1 %v7514_v57  ;;  %4455 = vmatprep.subr.bf16.mxu0 %v7519_v58  ;;  %v7573_v58 = vld [vmem:[#allocation3 + $0x15c] ss:$40 sps:$4 sm:$0xff]  }
 0x1c2   :  { %4496 = vmatprep.subr.bf16.mxu1 %v7522_v59  ;;  %v7576_v59 = vld [vmem:[#allocation3 + $0x65c] ss:$40 sps:$4 sm:$0xff]  }
 0x1c4   :  { %4456 = vmatpush2.bf16.msra.mxu0 %v7517_v62  ;;  %v7571_v62 = vld [vmem:[#allocation3 + $0x158] ss:$40 sps:$4 sm:$0xff]  }
 0x1c5   :  { %4497 = vmatpush2.bf16.msra.mxu1 %v7520_v1  ;;  %4457 = vmatprep.subr.bf16.mxu0 %v7525_v2  ;;  %v7574_v1 = vld [vmem:[#allocation3 + $0x658] ss:$40 sps:$4 sm:$0xff]   ;;  %v7579_v2 = vld [vmem:[#allocation3 + $0x10c] ss:$40 sps:$4 sm:$0xff]  }
 0x1c6   :  { %4498 = vmatprep.subr.bf16.mxu1 %v7528_v3  ;;  %v7582_v3 = vld [vmem:[#allocation3 + $0x60c] ss:$40 sps:$4 sm:$0xff]  }
 0x1c8   :  { %4458 = vmatpush2.bf16.msra.mxu0 %v7523_v5  ;;  %v7577_v5 = vld [vmem:[#allocation3 + $0x108] ss:$40 sps:$4 sm:$0xff]  }
 0x1c9   :  { %4499 = vmatpush2.bf16.msra.mxu1 %v7526_v6  ;;  %4459 = vmatprep.subr.bf16.mxu0 %v7531_v7  ;;  %v7580_v6 = vld [vmem:[#allocation3 + $0x608] ss:$40 sps:$4 sm:$0xff]   ;;  %v7585_v7 = vld [vmem:[#allocation3 + $0xbc] ss:$40 sps:$4 sm:$0xff]  }
 0x1ca   :  { %4500 = vmatprep.subr.bf16.mxu1 %v7534_v8  ;;  %v7588_v8 = vld [vmem:[#allocation3 + $0x5bc] ss:$40 sps:$4 sm:$0xff]  }
 0x1cc   :  { %4460 = vmatpush2.bf16.msra.mxu0 %v7529_v9  ;;  %v7583_v9 = vld [vmem:[#allocation3 + $0xb8] ss:$40 sps:$4 sm:$0xff]  }
 0x1cd   :  { %4501 = vmatpush2.bf16.msra.mxu1 %v7532_v11  ;;  %4461 = vmatprep.subr.bf16.mxu0 %v7537_v12  ;;  %v7586_v11 = vld [vmem:[#allocation3 + $0x5b8] ss:$40 sps:$4 sm:$0xff]   ;;  %v7591_v12 = vld [vmem:[#allocation3 + $0x6c] ss:$40 sps:$4 sm:$0xff]  }
 0x1ce   :  { %4502 = vmatprep.subr.bf16.mxu1 %v7540_v13  ;;  %v7594_v13 = vld [vmem:[#allocation3 + $0x56c] ss:$40 sps:$4 sm:$0xff]  }
 0x1d0   :  { %4462 = vmatpush2.bf16.msra.mxu0 %v7535_v14  ;;  %v7589_v14 = vld [vmem:[#allocation3 + $0x68] ss:$40 sps:$4 sm:$0xff]  }
 0x1d1   :  { %4503 = vmatpush2.bf16.msra.mxu1 %v7538_v27  ;;  %4463 = vmatprep.subr.bf16.mxu0 %v7543_v16  ;;  %v7592_v27 = vld [vmem:[#allocation3 + $0x568] ss:$40 sps:$4 sm:$0xff]   ;;  %v7597_v16 = vld [vmem:[#allocation3 + $0x1c] ss:$40 sps:$4 sm:$0xff]  }
 0x1d2   :  { %4504 = vmatprep.subr.bf16.mxu1 %v7546_v19  ;;  %v7600_v19 = vld [vmem:[#allocation3 + $0x51c] ss:$40 sps:$4 sm:$0xff]  }
 0x1d4   :  { %4464 = vmatpush2.bf16.msra.mxu0 %v7541_v20  ;;  %v7595_v20 = vld [vmem:[#allocation3 + $0x18] ss:$40 sps:$4 sm:$0xff]  }
 0x1d5   :  { %4505 = vmatpush2.bf16.msra.mxu1 %v7544_v21  ;;  %4465 = vmatprep.subr.bf16.mxu0 %v7549_v32  ;;  %v7598_v21 = vld [vmem:[#allocation3 + $0x518] ss:$40 sps:$4 sm:$0xff]   ;;  %v7603_v32 = vld [vmem:[#allocation3 + $0x4cc] ss:$40 sps:$4 sm:$0xff]  }
 0x1d6   :  { %4506 = vmatprep.subr.bf16.mxu1 %v7552_v22  ;;  %v7606_v22 = vld [vmem:[#allocation3 + $0x9cc] ss:$40 sps:$4 sm:$0xff]  }
 0x1d8   :  { %4466 = vmatpush2.bf16.msra.mxu0 %v7547_v23  ;;  %v7601_v23 = vld [vmem:[#allocation3 + $0x4c8] ss:$40 sps:$4 sm:$0xff]  }
 0x1d9   :  { %4507 = vmatpush2.bf16.msra.mxu1 %v7550_v24  ;;  %4517 = vmatprep.subr.bf16.mxu0 %v7555_v25  ;;  %v7604_v24 = vld [vmem:[#allocation3 + $0x9c8] ss:$40 sps:$4 sm:$0xff]   ;;  %v7609_v25 = vld [vmem:[#allocation3 + $0x47c] ss:$40 sps:$4 sm:$0xff]  }
 0x1da   :  { %4558 = vmatprep.subr.bf16.mxu1 %v7558_v26  ;;  %v7612_v26 = vld [vmem:[#allocation3 + $0x97c] ss:$40 sps:$4 sm:$0xff]  }
 0x1db   :  { %v4223_v33 = vpop.f32.mrf.mxu0  ;;  %4468 = vmatmul.mubr.bf16.vlgmr.msra.gmra.mxu0 %v8271_v35 }
 0x1dc   :  { %v4264_v34 = vpop.f32.mrf.mxu1  ;;  %4509 = vmatmul.mubr.bf16.vlgmr.msra.gmra.mxu1 %v8275_v36  ;;  %4518 = vmatpush1.bf16.msra.mxu0 %v7553_v28  ;;  %v7607_v28 = vld [vmem:[#allocation3 + $0x478] ss:$40 sps:$4 sm:$0xff]  }
 0x1dd   :  { %v8305_v37 = vadd.f32 %v4264_v34, %v4223_v33  ;;  %4559 = vmatpush1.bf16.msra.mxu1 %v7556_v29  ;;  %v4225_v40 = vpop.f32.mrf.mxu0  ;;  %4519 = vmatprep.subr.bf16.mxu0 %v7561_v30  ;;  %v7610_v29 = vld [vmem:[#allocation3 + $0x978] ss:$40 sps:$4 sm:$0xff]   ;;  %v7615_v30 = vld [vmem:[#allocation3 + $0x42c] ss:$40 sps:$4 sm:$0xff]   ;;  %v7613_v33 = vld [vmem:[#allocation3 + $0x428] ss:$40 sps:$4 sm:$0xff]  }
 0x1de   :  { %v4266_v41 = vpop.f32.mrf.mxu1  ;;  %4560 = vmatprep.subr.bf16.mxu1 %v7564_v31  ;;  %4549 = vmatprep.mubr.bf16.mxu0 %v8220_v63  ;;  %v7618_v31 = vld [vmem:[#allocation3 + $0x92c] ss:$40 sps:$4 sm:$0xff]   ;;  %v7616_v34 = vld [vmem:[#allocation3 + $0x928] ss:$40 sps:$4 sm:$0xff]  }
 0x1df   :  { %v8307_v45 = vadd.f32 %v4266_v41, %v4225_v40  ;;  %4590 = vmatprep.mubr.bf16.mxu1 %v8228_v4  ;;  %v4227_v46 = vpop.f32.mrf.mxu0  ;;  %v7619_v40 = vld [vmem:[#allocation3 + $0x3d8] ss:$40 sps:$4 sm:$0xff]  }
 0x1e0   :  { %v4268_v47 = vpop.f32.mrf.mxu1  ;;  %4520 = vmatpush1.bf16.msra.mxu0 %v7559_v38  ;;  %v7621_v38 = vld [vmem:[#allocation3 + $0x3dc] ss:$40 sps:$4 sm:$0xff]   ;;  %v7622_v41 = vld [vmem:[#allocation3 + $0x8d8] ss:$40 sps:$4 sm:$0xff]   ;;  %v7625_v46 = vld [vmem:[#allocation3 + $0x388] ss:$40 sps:$4 sm:$0xff]  }
 0x1e1   :  { %4561 = vmatpush1.bf16.msra.mxu1 %v7562_v39  ;;  %v4228_v56 = vpop.f32.mrf.mxu0  ;;  %4521 = vmatprep.subr.bf16.mxu0 %v7567_v42  ;;  %v7624_v39 = vld [vmem:[#allocation3 + $0x8dc] ss:$40 sps:$4 sm:$0xff]   ;;  %v7627_v42 = vld [vmem:[#allocation3 + $0x38c] ss:$40 sps:$4 sm:$0xff]   ;;  %v7628_v47 = vld [vmem:[#allocation3 + $0x888] ss:$40 sps:$4 sm:$0xff]  }
 0x1e2   :  { %v4269_v57 = vpop.f32.mrf.mxu1  ;;  %4562 = vmatprep.subr.bf16.mxu1 %v7570_v43  ;;  %v7630_v43 = vld [vmem:[#allocation3 + $0x88c] ss:$40 sps:$4 sm:$0xff]   ;;  %v7631_v56 = vld [vmem:[#allocation3 + $0x338] ss:$40 sps:$4 sm:$0xff]  }
 0x1e3   :  { %v7634_v57 = vld [vmem:[#allocation3 + $0x838] ss:$40 sps:$4 sm:$0xff]  }
 0x1e4   :  { %4522 = vmatpush1.bf16.msra.mxu0 %v7565_v51  ;;  %v7633_v51 = vld [vmem:[#allocation3 + $0x33c] ss:$40 sps:$4 sm:$0xff]  }
 0x1e5   :  { %4563 = vmatpush1.bf16.msra.mxu1 %v7568_v52  ;;  %4523 = vmatprep.subr.bf16.mxu0 %v7573_v58  ;;  %v7636_v52 = vld [vmem:[#allocation3 + $0x83c] ss:$40 sps:$4 sm:$0xff]   ;;  %v7639_v58 = vld [vmem:[#allocation3 + $0x2ec] ss:$40 sps:$4 sm:$0xff]  }
 0x1e6   :  { %4564 = vmatprep.subr.bf16.mxu1 %v7576_v59  ;;  %v7642_v59 = vld [vmem:[#allocation3 + $0x7ec] ss:$40 sps:$4 sm:$0xff]  }
 0x1e8   :  { %4524 = vmatpush1.bf16.msra.mxu0 %v7571_v62  ;;  %v7637_v62 = vld [vmem:[#allocation3 + $0x2e8] ss:$40 sps:$4 sm:$0xff]  }
 0x1e9   :  { %4565 = vmatpush1.bf16.msra.mxu1 %v7574_v1  ;;  %4525 = vmatprep.subr.bf16.mxu0 %v7579_v2  ;;  %v7640_v1 = vld [vmem:[#allocation3 + $0x7e8] ss:$40 sps:$4 sm:$0xff]   ;;  %v7645_v2 = vld [vmem:[#allocation3 + $0x29c] ss:$40 sps:$4 sm:$0xff]  }
 0x1ea   :  { %4566 = vmatprep.subr.bf16.mxu1 %v7582_v3  ;;  %v7648_v3 = vld [vmem:[#allocation3 + $0x79c] ss:$40 sps:$4 sm:$0xff]  }
 0x1ec   :  { %4526 = vmatpush1.bf16.msra.mxu0 %v7577_v5  ;;  %v7643_v5 = vld [vmem:[#allocation3 + $0x298] ss:$40 sps:$4 sm:$0xff]  }
 0x1ed   :  { %4567 = vmatpush1.bf16.msra.mxu1 %v7580_v6  ;;  %4527 = vmatprep.subr.bf16.mxu0 %v7585_v7  ;;  %v7646_v6 = vld [vmem:[#allocation3 + $0x798] ss:$40 sps:$4 sm:$0xff]   ;;  %v7651_v7 = vld [vmem:[#allocation3 + $0xc4c] ss:$40 sps:$4 sm:$0xff]  }
 0x1ee   :  { %4568 = vmatprep.subr.bf16.mxu1 %v7588_v8  ;;  %v7654_v8 = vld [vmem:[#allocation3 + $0x114c] ss:$40 sps:$4 sm:$0xff]  }
 0x1f0   :  { %4528 = vmatpush1.bf16.msra.mxu0 %v7583_v9  ;;  %v7649_v9 = vld [vmem:[#allocation3 + $0xc48] ss:$40 sps:$4 sm:$0xff]  }
 0x1f1   :  { %4569 = vmatpush1.bf16.msra.mxu1 %v7586_v11  ;;  %4529 = vmatprep.subr.bf16.mxu0 %v7591_v12  ;;  %v7652_v11 = vld [vmem:[#allocation3 + $0x1148] ss:$40 sps:$4 sm:$0xff]   ;;  %v7657_v12 = vld [vmem:[#allocation3 + $0xbfc] ss:$40 sps:$4 sm:$0xff]  }
 0x1f2   :  { %4570 = vmatprep.subr.bf16.mxu1 %v7594_v13  ;;  %v7660_v13 = vld [vmem:[#allocation3 + $0x10fc] ss:$40 sps:$4 sm:$0xff]  }
 0x1f4   :  { %4530 = vmatpush1.bf16.msra.mxu0 %v7589_v14 }
 0x1f5   :  { %4571 = vmatpush1.bf16.msra.mxu1 %v7592_v27  ;;  %4531 = vmatprep.subr.bf16.mxu0 %v7597_v16 }
 0x1f6   :  { %4572 = vmatprep.subr.bf16.mxu1 %v7600_v19  ;;  %v7655_v19 = vld [vmem:[#allocation3 + $0xbf8] ss:$40 sps:$4 sm:$0xff]  }
 0x1f8   :  { %4532 = vmatpush1.bf16.msra.mxu0 %v7595_v20  ;;  %v7658_v20 = vld [vmem:[#allocation3 + $0x10f8] ss:$40 sps:$4 sm:$0xff]  }
 0x1f9   :  { %4573 = vmatpush1.bf16.msra.mxu1 %v7598_v21  ;;  %4533 = vmatprep.subr.bf16.mxu0 %v7603_v32 }
 0x1fa   :  { %4574 = vmatprep.subr.bf16.mxu1 %v7606_v22  ;;  %v7663_v22 = vld [vmem:[#allocation3 + $0xbac] ss:$40 sps:$4 sm:$0xff]  }
 0x1fc   :  { %4534 = vmatpush2.bf16.msra.mxu0 %v7601_v23  ;;  %v7666_v23 = vld [vmem:[#allocation3 + $0x10ac] ss:$40 sps:$4 sm:$0xff]  }
 0x1fd   :  { %4575 = vmatpush2.bf16.msra.mxu1 %v7604_v24  ;;  %4535 = vmatprep.subr.bf16.mxu0 %v7609_v25 }
 0x1fe   :  { %4576 = vmatprep.subr.bf16.mxu1 %v7612_v26 }
 0x200   :  { %4536 = vmatpush2.bf16.msra.mxu0 %v7607_v28 }
 0x201   :  { %4577 = vmatpush2.bf16.msra.mxu1 %v7610_v29  ;;  %4537 = vmatprep.subr.bf16.mxu0 %v7615_v30  ;;  %v7661_v29 = vld [vmem:[#allocation3 + $0xba8] ss:$40 sps:$4 sm:$0xff]  }
 0x202   :  { %4578 = vmatprep.subr.bf16.mxu1 %v7618_v31  ;;  %v7664_v30 = vld [vmem:[#allocation3 + $0x10a8] ss:$40 sps:$4 sm:$0xff]  }
 0x204   :  { %4538 = vmatpush2.bf16.msra.mxu0 %v7613_v33 }
 0x205   :  { %4579 = vmatpush2.bf16.msra.mxu1 %v7616_v34  ;;  %4539 = vmatprep.subr.bf16.mxu0 %v7621_v38  ;;  %v7669_v34 = vld [vmem:[#allocation3 + $0xb5c] ss:$40 sps:$4 sm:$0xff]  }
 0x206   :  { %4580 = vmatprep.subr.bf16.mxu1 %v7624_v39  ;;  %v7672_v38 = vld [vmem:[#allocation3 + $0x105c] ss:$40 sps:$4 sm:$0xff]   ;;  %v7670_v39 = vld [vmem:[#allocation3 + $0x1058] ss:$40 sps:$4 sm:$0xff]  }
 0x208   :  { %4540 = vmatpush2.bf16.msra.mxu0 %v7619_v40  ;;  %v7675_v40 = vld [vmem:[#allocation3 + $0xb0c] ss:$40 sps:$4 sm:$0xff]  }
 0x209   :  { %4581 = vmatpush2.bf16.msra.mxu1 %v7622_v41  ;;  %4541 = vmatprep.subr.bf16.mxu0 %v7627_v42  ;;  %v7678_v41 = vld [vmem:[#allocation3 + $0x100c] ss:$40 sps:$4 sm:$0xff]   ;;  %v7673_v42 = vld [vmem:[#allocation3 + $0xb08] ss:$40 sps:$4 sm:$0xff]  }
 0x20a   :  { %4582 = vmatprep.subr.bf16.mxu1 %v7630_v43  ;;  %v7676_v43 = vld [vmem:[#allocation3 + $0x1008] ss:$40 sps:$4 sm:$0xff]  }
 0x20c   :  { %4542 = vmatpush2.bf16.msra.mxu0 %v7625_v46  ;;  %v7681_v46 = vld [vmem:[#allocation3 + $0xabc] ss:$40 sps:$4 sm:$0xff]  }
 0x20d   :  { %4583 = vmatpush2.bf16.msra.mxu1 %v7628_v47  ;;  %4543 = vmatprep.subr.bf16.mxu0 %v7633_v51  ;;  %v7684_v47 = vld [vmem:[#allocation3 + $0xfbc] ss:$40 sps:$4 sm:$0xff]   ;;  %v7679_v51 = vld [vmem:[#allocation3 + $0xab8] ss:$40 sps:$4 sm:$0xff]  }
 0x20e   :  { %4584 = vmatprep.subr.bf16.mxu1 %v7636_v52  ;;  %v7682_v52 = vld [vmem:[#allocation3 + $0xfb8] ss:$40 sps:$4 sm:$0xff]  }
 0x210   :  { %4544 = vmatpush2.bf16.msra.mxu0 %v7631_v56  ;;  %v7687_v56 = vld [vmem:[#allocation3 + $0xa6c] ss:$40 sps:$4 sm:$0xff]  }
 0x211   :  { %4585 = vmatpush2.bf16.msra.mxu1 %v7634_v57  ;;  %4545 = vmatprep.subr.bf16.mxu0 %v7639_v58  ;;  %v7690_v57 = vld [vmem:[#allocation3 + $0xf6c] ss:$40 sps:$4 sm:$0xff]   ;;  %v7685_v58 = vld [vmem:[#allocation3 + $0xa68] ss:$40 sps:$4 sm:$0xff]  }
 0x212   :  { %4586 = vmatprep.subr.bf16.mxu1 %v7642_v59  ;;  %v7688_v59 = vld [vmem:[#allocation3 + $0xf68] ss:$40 sps:$4 sm:$0xff]  }
 0x214   :  { %4546 = vmatpush2.bf16.msra.mxu0 %v7637_v62  ;;  %v7693_v62 = vld [vmem:[#allocation3 + $0xa1c] ss:$40 sps:$4 sm:$0xff]  }
 0x215   :  { %4587 = vmatpush2.bf16.msra.mxu1 %v7640_v1  ;;  %4547 = vmatprep.subr.bf16.mxu0 %v7645_v2  ;;  %v7696_v1 = vld [vmem:[#allocation3 + $0xf1c] ss:$40 sps:$4 sm:$0xff]   ;;  %v7691_v2 = vld [vmem:[#allocation3 + $0xa18] ss:$40 sps:$4 sm:$0xff]  }
 0x216   :  { %4588 = vmatprep.subr.bf16.mxu1 %v7648_v3  ;;  %v7694_v3 = vld [vmem:[#allocation3 + $0xf18] ss:$40 sps:$4 sm:$0xff]  }
 0x218   :  { %4548 = vmatpush2.bf16.msra.mxu0 %v7643_v5  ;;  %v7699_v5 = vld [vmem:[#allocation3 + $0xecc] ss:$40 sps:$4 sm:$0xff]  }
 0x219   :  { %4589 = vmatpush2.bf16.msra.mxu1 %v7646_v6  ;;  %4599 = vmatprep.subr.bf16.mxu0 %v7651_v7  ;;  %v7702_v6 = vld [vmem:[#allocation3 + $0x13cc] ss:$40 sps:$4 sm:$0xff]   ;;  %v7697_v7 = vld [vmem:[#allocation3 + $0xec8] ss:$40 sps:$4 sm:$0xff]  }
 0x21a   :  { %4640 = vmatprep.subr.bf16.mxu1 %v7654_v8  ;;  %v7700_v8 = vld [vmem:[#allocation3 + $0x13c8] ss:$40 sps:$4 sm:$0xff]  }
 0x21b   :  { %v4305_v14 = vpop.f32.mrf.mxu0  ;;  %4550 = vmatmul.mubr.bf16.vlgmr.msra.gmra.mxu0 %v8234_v17 }
 0x21c   :  { %v4346_v27 = vpop.f32.mrf.mxu1  ;;  %4591 = vmatmul.mubr.bf16.vlgmr.msra.gmra.mxu1 %v8238_v18  ;;  %v4306_v16 = vadd.f32 %v4305_v14, %v8305_v37  ;;  %4600 = vmatpush1.bf16.msra.mxu0 %v7649_v9  ;;  %v7705_v9 = vld [vmem:[#allocation3 + $0xe7c] ss:$40 sps:$4 sm:$0xff]   ;;  %v7711_v14 = vld [vmem:[#allocation3 + $0xe2c] ss:$40 sps:$4 sm:$0xff]  }
 0x21d   :  { %4641 = vmatpush1.bf16.msra.mxu1 %v7652_v11  ;;  %v4307_v21 = vpop.f32.mrf.mxu0  ;;  %4601 = vmatprep.subr.bf16.mxu0 %v7657_v12  ;;  %v7708_v11 = vld [vmem:[#allocation3 + $0x137c] ss:$40 sps:$4 sm:$0xff]   ;;  %v7703_v12 = vld [vmem:[#allocation3 + $0xe78] ss:$40 sps:$4 sm:$0xff]  }
 0x21e   :  { %v4348_v32 = vpop.f32.mrf.mxu1  ;;  %4642 = vmatprep.subr.bf16.mxu1 %v7660_v13  ;;  %v8314_v24 = vadd.f32 %v4346_v27, %v4306_v16  ;;  %v4308_v25 = vadd.f32 %v4307_v21, %v8307_v45  ;;  %4631 = vmatprep.mubr.bf16.mxu0 %v8257_v53  ;;  %v7667_v45 = vld [vmem:[#allocation3 + $0xb58] ss:$40 sps:$4 sm:$0xff]   ;;  %v7714_v27 = vld [vmem:[#allocation3 + $0x132c] ss:$40 sps:$4 sm:$0xff]   ;;  %v7709_v16 = vld [vmem:[#allocation3 + $0xe28] ss:$40 sps:$4 sm:$0xff]  }
 0x21f   :  { %4672 = vmatprep.mubr.bf16.mxu1 %v8265_v50  ;;  %v4309_v26 = vpop.f32.mrf.mxu0  ;;  %v7706_v13 = vld [vmem:[#allocation3 + $0x1378] ss:$40 sps:$4 sm:$0xff]   ;;  %v7720_v21 = vld [vmem:[#allocation3 + $0x12dc] ss:$40 sps:$4 sm:$0xff]  }
 0x220   :  { %v4350_v37 = vpop.f32.mrf.mxu1  ;;  %v8319_v28 = vadd.f32 %v4348_v32, %v4308_v25  ;;  %4602 = vmatpush1.bf16.msra.mxu0 %v7655_v19  ;;  %v7712_v19 = vld [vmem:[#allocation3 + $0x1328] ss:$40 sps:$4 sm:$0xff]   ;;  %v7715_v32 = vld [vmem:[#allocation3 + $0xdd8] ss:$40 sps:$4 sm:$0xff]   ;;  %v7726_v25 = vld [vmem:[#allocation3 + $0x128c] ss:$40 sps:$4 sm:$0xff]  }
 0x221   :  { %4643 = vmatpush1.bf16.msra.mxu1 %v7658_v20  ;;  %v4310_v31 = vpop.f32.mrf.mxu0  ;;  %4603 = vmatprep.subr.bf16.mxu0 %v7663_v22  ;;  %v7717_v20 = vld [vmem:[#allocation3 + $0xddc] ss:$40 sps:$4 sm:$0xff]   ;;  %v7718_v22 = vld [vmem:[#allocation3 + $0x12d8] ss:$40 sps:$4 sm:$0xff]   ;;  %v7721_v26 = vld [vmem:[#allocation3 + $0xd88] ss:$40 sps:$4 sm:$0xff]  }
 0x222   :  { %v4351_v33 = vpop.f32.mrf.mxu1  ;;  %4644 = vmatprep.subr.bf16.mxu1 %v7666_v23  ;;  %v7723_v23 = vld [vmem:[#allocation3 + $0xd8c] ss:$40 sps:$4 sm:$0xff]   ;;  %v7724_v37 = vld [vmem:[#allocation3 + $0x1288] ss:$40 sps:$4 sm:$0xff]   ;;  %v7727_v31 = vld [vmem:[#allocation3 + $0xd38] ss:$40 sps:$4 sm:$0xff]  }
 0x223   :  { %v7730_v33 = vld [vmem:[#allocation3 + $0x1238] ss:$40 sps:$4 sm:$0xff]  }
 0x224   :  { %4604 = vmatpush1.bf16.msra.mxu0 %v7661_v29  ;;  %v7729_v29 = vld [vmem:[#allocation3 + $0xd3c] ss:$40 sps:$4 sm:$0xff]  }
 0x225   :  { %4645 = vmatpush1.bf16.msra.mxu1 %v7664_v30  ;;  %4605 = vmatprep.subr.bf16.mxu0 %v7669_v34  ;;  %v7732_v30 = vld [vmem:[#allocation3 + $0x123c] ss:$40 sps:$4 sm:$0xff]   ;;  %v7735_v34 = vld [vmem:[#allocation3 + $0xcec] ss:$40 sps:$4 sm:$0xff]  }
 0x226   :  { %4646 = vmatprep.subr.bf16.mxu1 %v7672_v38  ;;  %v7738_v38 = vld [vmem:[#allocation3 + $0x11ec] ss:$40 sps:$4 sm:$0xff]  }
 0x228   :  { %4606 = vmatpush1.bf16.msra.mxu0 %v7667_v45  ;;  %v7733_v45 = vld [vmem:[#allocation3 + $0xce8] ss:$40 sps:$4 sm:$0xff]  }
 0x229   :  { %4647 = vmatpush1.bf16.msra.mxu1 %v7670_v39  ;;  %4607 = vmatprep.subr.bf16.mxu0 %v7675_v40  ;;  %v7736_v39 = vld [vmem:[#allocation3 + $0x11e8] ss:$40 sps:$4 sm:$0xff]   ;;  %v7741_v40 = vld [vmem:[#allocation3 + $0xc9c] ss:$40 sps:$4 sm:$0xff]  }
 0x22a   :  { %4648 = vmatprep.subr.bf16.mxu1 %v7678_v41  ;;  %v7744_v41 = vld [vmem:[#allocation3 + $0x119c] ss:$40 sps:$4 sm:$0xff]  }
 0x22c   :  { %4608 = vmatpush1.bf16.msra.mxu0 %v7673_v42  ;;  %v7739_v42 = vld [vmem:[#allocation3 + $0xc98] ss:$40 sps:$4 sm:$0xff]  }
 0x22d   :  { %4649 = vmatpush1.bf16.msra.mxu1 %v7676_v43  ;;  %4609 = vmatprep.subr.bf16.mxu0 %v7681_v46  ;;  %v7742_v43 = vld [vmem:[#allocation3 + $0x1198] ss:$40 sps:$4 sm:$0xff]   ;;  %v7747_v46 = vld [vmem:[#allocation3 + $0x254] ss:$40 sps:$4 sm:$0xff]  }
 0x22e   :  { %4650 = vmatprep.subr.bf16.mxu1 %v7684_v47  ;;  %v7750_v47 = vld [vmem:[#allocation3 + $0x754] ss:$40 sps:$4 sm:$0xff]  }
 0x230   :  { %4610 = vmatpush1.bf16.msra.mxu0 %v7679_v51  ;;  %v7745_v51 = vld [vmem:[#allocation3 + $0x250] ss:$40 sps:$4 sm:$0xff]  }
 0x231   :  { %4651 = vmatpush1.bf16.msra.mxu1 %v7682_v52  ;;  %4611 = vmatprep.subr.bf16.mxu0 %v7687_v56  ;;  %v7748_v52 = vld [vmem:[#allocation3 + $0x750] ss:$40 sps:$4 sm:$0xff]   ;;  %v7753_v56 = vld [vmem:[#allocation3 + $0x204] ss:$40 sps:$4 sm:$0xff]  }
 0x232   :  { %4652 = vmatprep.subr.bf16.mxu1 %v7690_v57  ;;  %v7756_v57 = vld [vmem:[#allocation3 + $0x704] ss:$40 sps:$4 sm:$0xff]  }
 0x234   :  { %4612 = vmatpush1.bf16.msra.mxu0 %v7685_v58 }
 0x235   :  { %4653 = vmatpush1.bf16.msra.mxu1 %v7688_v59  ;;  %4613 = vmatprep.subr.bf16.mxu0 %v7693_v62 }
 0x236   :  { %4654 = vmatprep.subr.bf16.mxu1 %v7696_v1  ;;  %v7751_v1 = vld [vmem:[#allocation3 + $0x200] ss:$40 sps:$4 sm:$0xff]  }
 0x238   :  { %4614 = vmatpush1.bf16.msra.mxu0 %v7691_v2  ;;  %v7754_v2 = vld [vmem:[#allocation3 + $0x700] ss:$40 sps:$4 sm:$0xff]  }
 0x239   :  { %4655 = vmatpush1.bf16.msra.mxu1 %v7694_v3  ;;  %4615 = vmatprep.subr.bf16.mxu0 %v7699_v5 }
 0x23a   :  { %4656 = vmatprep.subr.bf16.mxu1 %v7702_v6  ;;  %v7759_v6 = vld [vmem:[#allocation3 + $0x1b4] ss:$40 sps:$4 sm:$0xff]  }
 0x23c   :  { %4616 = vmatpush2.bf16.msra.mxu0 %v7697_v7  ;;  %v7762_v7 = vld [vmem:[#allocation3 + $0x6b4] ss:$40 sps:$4 sm:$0xff]  }
 0x23d   :  { %4657 = vmatpush2.bf16.msra.mxu1 %v7700_v8  ;;  %4617 = vmatprep.subr.bf16.mxu0 %v7705_v9 }
 0x23e   :  { %4658 = vmatprep.subr.bf16.mxu1 %v7708_v11 }
 0x240   :  { %4618 = vmatpush2.bf16.msra.mxu0 %v7703_v12  ;;  %v7757_v12 = vld [vmem:[#allocation3 + $0x1b0] ss:$40 sps:$4 sm:$0xff]  }
 0x241   :  { %4659 = vmatpush2.bf16.msra.mxu1 %v7706_v13  ;;  %4619 = vmatprep.subr.bf16.mxu0 %v7711_v14  ;;  %v7760_v13 = vld [vmem:[#allocation3 + $0x6b0] ss:$40 sps:$4 sm:$0xff]  }
 0x242   :  { %4660 = vmatprep.subr.bf16.mxu1 %v7714_v27 }
 0x244   :  { %4620 = vmatpush2.bf16.msra.mxu0 %v7709_v16  ;;  %v7765_v16 = vld [vmem:[#allocation3 + $0x164] ss:$40 sps:$4 sm:$0xff]  }
 0x245   :  { %4661 = vmatpush2.bf16.msra.mxu1 %v7712_v19  ;;  %4621 = vmatprep.subr.bf16.mxu0 %v7717_v20  ;;  %v7768_v19 = vld [vmem:[#allocation3 + $0x664] ss:$40 sps:$4 sm:$0xff]   ;;  %v7763_v20 = vld [vmem:[#allocation3 + $0x160] ss:$40 sps:$4 sm:$0xff]  }
 0x246   :  { %4662 = vmatprep.subr.bf16.mxu1 %v7720_v21  ;;  %v7766_v21 = vld [vmem:[#allocation3 + $0x660] ss:$40 sps:$4 sm:$0xff]  }
 0x248   :  { %4622 = vmatpush2.bf16.msra.mxu0 %v7715_v32  ;;  %v7769_v32 = vld [vmem:[#allocation3 + $0x110] ss:$40 sps:$4 sm:$0xff]  }
 0x249   :  { %4663 = vmatpush2.bf16.msra.mxu1 %v7718_v22  ;;  %4623 = vmatprep.subr.bf16.mxu0 %v7723_v23  ;;  %v7772_v22 = vld [vmem:[#allocation3 + $0x610] ss:$40 sps:$4 sm:$0xff]   ;;  %v7777_v23 = vld [vmem:[#allocation3 + $0xc4] ss:$40 sps:$4 sm:$0xff]  }
 0x24a   :  { %4664 = vmatprep.subr.bf16.mxu1 %v7726_v25  ;;  %v7780_v25 = vld [vmem:[#allocation3 + $0x5c4] ss:$40 sps:$4 sm:$0xff]  }
 0x24c   :  { %4624 = vmatpush2.bf16.msra.mxu0 %v7721_v26  ;;  %v7775_v26 = vld [vmem:[#allocation3 + $0xc0] ss:$40 sps:$4 sm:$0xff]  }
 0x24d   :  { %4665 = vmatpush2.bf16.msra.mxu1 %v7724_v37  ;;  %4625 = vmatprep.subr.bf16.mxu0 %v7729_v29  ;;  %v7778_v37 = vld [vmem:[#allocation3 + $0x5c0] ss:$40 sps:$4 sm:$0xff]   ;;  %v7783_v29 = vld [vmem:[#allocation3 + $0x74] ss:$40 sps:$4 sm:$0xff]  }
 0x24e   :  { %4666 = vmatprep.subr.bf16.mxu1 %v7732_v30  ;;  %v7786_v30 = vld [vmem:[#allocation3 + $0x574] ss:$40 sps:$4 sm:$0xff]  }
 0x250   :  { %4626 = vmatpush2.bf16.msra.mxu0 %v7727_v31  ;;  %v7781_v31 = vld [vmem:[#allocation3 + $0x70] ss:$40 sps:$4 sm:$0xff]  }
 0x251   :  { %4667 = vmatpush2.bf16.msra.mxu1 %v7730_v33  ;;  %4627 = vmatprep.subr.bf16.mxu0 %v7735_v34  ;;  %v7784_v33 = vld [vmem:[#allocation3 + $0x570] ss:$40 sps:$4 sm:$0xff]   ;;  %v7789_v34 = vld [vmem:[#allocation3 + $0x24] ss:$40 sps:$4 sm:$0xff]  }
 0x252   :  { %4668 = vmatprep.subr.bf16.mxu1 %v7738_v38  ;;  %v7792_v38 = vld [vmem:[#allocation3 + $0x524] ss:$40 sps:$4 sm:$0xff]  }
 0x254   :  { %4628 = vmatpush2.bf16.msra.mxu0 %v7733_v45  ;;  %v7787_v45 = vld [vmem:[#allocation3 + $0x20] ss:$40 sps:$4 sm:$0xff]  }
 0x255   :  { %4669 = vmatpush2.bf16.msra.mxu1 %v7736_v39  ;;  %4629 = vmatprep.subr.bf16.mxu0 %v7741_v40  ;;  %v7790_v39 = vld [vmem:[#allocation3 + $0x520] ss:$40 sps:$4 sm:$0xff]   ;;  %v7795_v40 = vld [vmem:[#allocation3 + $0x4d4] ss:$40 sps:$4 sm:$0xff]  }
 0x256   :  { %4670 = vmatprep.subr.bf16.mxu1 %v7744_v41  ;;  %v7798_v41 = vld [vmem:[#allocation3 + $0x9d4] ss:$40 sps:$4 sm:$0xff]  }
 0x258   :  { %4630 = vmatpush2.bf16.msra.mxu0 %v7739_v42  ;;  %v7793_v42 = vld [vmem:[#allocation3 + $0x4d0] ss:$40 sps:$4 sm:$0xff]  }
 0x259   :  { %4671 = vmatpush2.bf16.msra.mxu1 %v7742_v43  ;;  %4681 = vmatprep.subr.bf16.mxu0 %v7747_v46  ;;  %v7796_v43 = vld [vmem:[#allocation3 + $0x9d0] ss:$40 sps:$4 sm:$0xff]   ;;  %v7801_v46 = vld [vmem:[#allocation3 + $0x484] ss:$40 sps:$4 sm:$0xff]  }
 0x25a   :  { %4722 = vmatprep.subr.bf16.mxu1 %v7750_v47  ;;  %v7804_v47 = vld [vmem:[#allocation3 + $0x984] ss:$40 sps:$4 sm:$0xff]  }
 0x25b   :  { %v4387_v58 = vpop.f32.mrf.mxu0  ;;  %4632 = vmatmul.mubr.bf16.vlgmr.msra.gmra.mxu0 %v8271_v35 }
 0x25c   :  { %v4428_v59 = vpop.f32.mrf.mxu1  ;;  %4673 = vmatmul.mubr.bf16.vlgmr.msra.gmra.mxu1 %v8275_v36  ;;  %4682 = vmatpush1.bf16.msra.mxu0 %v7745_v51  ;;  %v7799_v51 = vld [vmem:[#allocation3 + $0x480] ss:$40 sps:$4 sm:$0xff]  }
 0x25d   :  { %v8323_v62 = vadd.f32 %v4428_v59, %v4387_v58  ;;  %4723 = vmatpush1.bf16.msra.mxu1 %v7748_v52  ;;  %v4389_v3 = vpop.f32.mrf.mxu0  ;;  %4683 = vmatprep.subr.bf16.mxu0 %v7753_v56  ;;  %v7802_v52 = vld [vmem:[#allocation3 + $0x980] ss:$40 sps:$4 sm:$0xff]   ;;  %v7807_v56 = vld [vmem:[#allocation3 + $0x434] ss:$40 sps:$4 sm:$0xff]   ;;  %v7805_v58 = vld [vmem:[#allocation3 + $0x430] ss:$40 sps:$4 sm:$0xff]  }
 0x25e   :  { %v4430_v5 = vpop.f32.mrf.mxu1  ;;  %4724 = vmatprep.subr.bf16.mxu1 %v7756_v57  ;;  %4713 = vmatprep.mubr.bf16.mxu0 %v8220_v63  ;;  %v7771_v63 = vld [vmem:[#allocation3 + $0x114] ss:$40 sps:$4 sm:$0xff]   ;;  %v7808_v59 = vld [vmem:[#allocation3 + $0x930] ss:$40 sps:$4 sm:$0xff]  }
 0x25f   :  { %v8325_v8 = vadd.f32 %v4430_v5, %v4389_v3  ;;  %4754 = vmatprep.mubr.bf16.mxu1 %v8228_v4  ;;  %v4391_v9 = vpop.f32.mrf.mxu0  ;;  %v7774_v4 = vld [vmem:[#allocation3 + $0x614] ss:$40 sps:$4 sm:$0xff]   ;;  %v7811_v3 = vld [vmem:[#allocation3 + $0x3e0] ss:$40 sps:$4 sm:$0xff]  }
 0x260   :  { %v4432_v11 = vpop.f32.mrf.mxu1  ;;  %4684 = vmatpush1.bf16.msra.mxu0 %v7751_v1  ;;  %v7810_v57 = vld [vmem:[#allocation3 + $0x934] ss:$40 sps:$4 sm:$0xff]   ;;  %v7813_v1 = vld [vmem:[#allocation3 + $0x3e4] ss:$40 sps:$4 sm:$0xff]   ;;  %v7814_v5 = vld [vmem:[#allocation3 + $0x8e0] ss:$40 sps:$4 sm:$0xff]  }
 0x261   :  { %4725 = vmatpush1.bf16.msra.mxu1 %v7754_v2  ;;  %v4392_v14 = vpop.f32.mrf.mxu0  ;;  %4685 = vmatprep.subr.bf16.mxu0 %v7759_v6  ;;  %v7816_v2 = vld [vmem:[#allocation3 + $0x8e4] ss:$40 sps:$4 sm:$0xff]   ;;  %v7819_v6 = vld [vmem:[#allocation3 + $0x394] ss:$40 sps:$4 sm:$0xff]   ;;  %v7817_v9 = vld [vmem:[#allocation3 + $0x390] ss:$40 sps:$4 sm:$0xff]  }
 0x262   :  { %v4433_v27 = vpop.f32.mrf.mxu1  ;;  %4726 = vmatprep.subr.bf16.mxu1 %v7762_v7  ;;  %v7822_v7 = vld [vmem:[#allocation3 + $0x894] ss:$40 sps:$4 sm:$0xff]   ;;  %v7820_v11 = vld [vmem:[#allocation3 + $0x890] ss:$40 sps:$4 sm:$0xff]   ;;  %v7823_v14 = vld [vmem:[#allocation3 + $0x340] ss:$40 sps:$4 sm:$0xff]  }
 0x263   :  { %v7826_v27 = vld [vmem:[#allocation3 + $0x840] ss:$40 sps:$4 sm:$0xff]  }
 0x264   :  { %4686 = vmatpush1.bf16.msra.mxu0 %v7757_v12  ;;  %v7825_v12 = vld [vmem:[#allocation3 + $0x344] ss:$40 sps:$4 sm:$0xff]  }
 0x265   :  { %4727 = vmatpush1.bf16.msra.mxu1 %v7760_v13  ;;  %4687 = vmatprep.subr.bf16.mxu0 %v7765_v16  ;;  %v7828_v13 = vld [vmem:[#allocation3 + $0x844] ss:$40 sps:$4 sm:$0xff]   ;;  %v7831_v16 = vld [vmem:[#allocation3 + $0x2f4] ss:$40 sps:$4 sm:$0xff]  }
 0x266   :  { %4728 = vmatprep.subr.bf16.mxu1 %v7768_v19  ;;  %v7834_v19 = vld [vmem:[#allocation3 + $0x7f4] ss:$40 sps:$4 sm:$0xff]  }
 0x268   :  { %4688 = vmatpush1.bf16.msra.mxu0 %v7763_v20  ;;  %v7829_v20 = vld [vmem:[#allocation3 + $0x2f0] ss:$40 sps:$4 sm:$0xff]  }
 0x269   :  { %4729 = vmatpush1.bf16.msra.mxu1 %v7766_v21  ;;  %4689 = vmatprep.subr.bf16.mxu0 %v7771_v63  ;;  %v7832_v21 = vld [vmem:[#allocation3 + $0x7f0] ss:$40 sps:$4 sm:$0xff]   ;;  %v7837_v63 = vld [vmem:[#allocation3 + $0x2a4] ss:$40 sps:$4 sm:$0xff]  }
 0x26a   :  { %4730 = vmatprep.subr.bf16.mxu1 %v7774_v4  ;;  %v7840_v4 = vld [vmem:[#allocation3 + $0x7a4] ss:$40 sps:$4 sm:$0xff]  }
 0x26c   :  { %4690 = vmatpush1.bf16.msra.mxu0 %v7769_v32  ;;  %v7835_v32 = vld [vmem:[#allocation3 + $0x2a0] ss:$40 sps:$4 sm:$0xff]  }
 0x26d   :  { %4731 = vmatpush1.bf16.msra.mxu1 %v7772_v22  ;;  %4691 = vmatprep.subr.bf16.mxu0 %v7777_v23  ;;  %v7838_v22 = vld [vmem:[#allocation3 + $0x7a0] ss:$40 sps:$4 sm:$0xff]   ;;  %v7843_v23 = vld [vmem:[#allocation3 + $0xc54] ss:$40 sps:$4 sm:$0xff]  }
 0x26e   :  { %4732 = vmatprep.subr.bf16.mxu1 %v7780_v25  ;;  %v7846_v25 = vld [vmem:[#allocation3 + $0x1154] ss:$40 sps:$4 sm:$0xff]  }
 0x270   :  { %4692 = vmatpush1.bf16.msra.mxu0 %v7775_v26  ;;  %v7841_v26 = vld [vmem:[#allocation3 + $0xc50] ss:$40 sps:$4 sm:$0xff]  }
 0x271   :  { %4733 = vmatpush1.bf16.msra.mxu1 %v7778_v37  ;;  %4693 = vmatprep.subr.bf16.mxu0 %v7783_v29  ;;  %v7844_v37 = vld [vmem:[#allocation3 + $0x1150] ss:$40 sps:$4 sm:$0xff]   ;;  %v7849_v29 = vld [vmem:[#allocation3 + $0xc04] ss:$40 sps:$4 sm:$0xff]  }
 0x272   :  { %4734 = vmatprep.subr.bf16.mxu1 %v7786_v30  ;;  %v7852_v30 = vld [vmem:[#allocation3 + $0x1104] ss:$40 sps:$4 sm:$0xff]  }
 0x274   :  { %4694 = vmatpush1.bf16.msra.mxu0 %v7781_v31 }
 0x275   :  { %4735 = vmatpush1.bf16.msra.mxu1 %v7784_v33  ;;  %4695 = vmatprep.subr.bf16.mxu0 %v7789_v34 }
 0x276   :  { %4736 = vmatprep.subr.bf16.mxu1 %v7792_v38  ;;  %v7847_v38 = vld [vmem:[#allocation3 + $0xc00] ss:$40 sps:$4 sm:$0xff]  }
 0x278   :  { %4696 = vmatpush1.bf16.msra.mxu0 %v7787_v45  ;;  %v7850_v45 = vld [vmem:[#allocation3 + $0x1100] ss:$40 sps:$4 sm:$0xff]  }
 0x279   :  { %4737 = vmatpush1.bf16.msra.mxu1 %v7790_v39  ;;  %4697 = vmatprep.subr.bf16.mxu0 %v7795_v40 }
 0x27a   :  { %4738 = vmatprep.subr.bf16.mxu1 %v7798_v41  ;;  %v7855_v41 = vld [vmem:[#allocation3 + $0xbb4] ss:$40 sps:$4 sm:$0xff]  }
 0x27c   :  { %4698 = vmatpush2.bf16.msra.mxu0 %v7793_v42  ;;  %v7858_v42 = vld [vmem:[#allocation3 + $0x10b4] ss:$40 sps:$4 sm:$0xff]  }
 0x27d   :  { %4739 = vmatpush2.bf16.msra.mxu1 %v7796_v43  ;;  %4699 = vmatprep.subr.bf16.mxu0 %v7801_v46 }
 0x27e   :  { %4740 = vmatprep.subr.bf16.mxu1 %v7804_v47  ;;  %v7853_v47 = vld [vmem:[#allocation3 + $0xbb0] ss:$40 sps:$4 sm:$0xff]  }
 0x280   :  { %4700 = vmatpush2.bf16.msra.mxu0 %v7799_v51  ;;  %v7856_v51 = vld [vmem:[#allocation3 + $0x10b0] ss:$40 sps:$4 sm:$0xff]  }
 0x281   :  { %4741 = vmatpush2.bf16.msra.mxu1 %v7802_v52  ;;  %4701 = vmatprep.subr.bf16.mxu0 %v7807_v56 }
 0x282   :  { %4742 = vmatprep.subr.bf16.mxu1 %v7810_v57  ;;  %v7861_v57 = vld [vmem:[#allocation3 + $0xb64] ss:$40 sps:$4 sm:$0xff]  }
 0x284   :  { %4702 = vmatpush2.bf16.msra.mxu0 %v7805_v58  ;;  %v7864_v58 = vld [vmem:[#allocation3 + $0x1064] ss:$40 sps:$4 sm:$0xff]  }
 0x285   :  { %4743 = vmatpush2.bf16.msra.mxu1 %v7808_v59  ;;  %4703 = vmatprep.subr.bf16.mxu0 %v7813_v1  ;;  %v7862_v1 = vld [vmem:[#allocation3 + $0x1060] ss:$40 sps:$4 sm:$0xff]  }
 0x286   :  { %4744 = vmatprep.subr.bf16.mxu1 %v7816_v2  ;;  %v7867_v2 = vld [vmem:[#allocation3 + $0xb14] ss:$40 sps:$4 sm:$0xff]  }
 0x288   :  { %4704 = vmatpush2.bf16.msra.mxu0 %v7811_v3  ;;  %v7870_v3 = vld [vmem:[#allocation3 + $0x1014] ss:$40 sps:$4 sm:$0xff]  }
 0x289   :  { %4745 = vmatpush2.bf16.msra.mxu1 %v7814_v5  ;;  %4705 = vmatprep.subr.bf16.mxu0 %v7819_v6  ;;  %v7865_v5 = vld [vmem:[#allocation3 + $0xb10] ss:$40 sps:$4 sm:$0xff]  }
 0x28a   :  { %4746 = vmatprep.subr.bf16.mxu1 %v7822_v7  ;;  %v7868_v6 = vld [vmem:[#allocation3 + $0x1010] ss:$40 sps:$4 sm:$0xff]   ;;  %v7873_v7 = vld [vmem:[#allocation3 + $0xac4] ss:$40 sps:$4 sm:$0xff]  }
 0x28c   :  { %4706 = vmatpush2.bf16.msra.mxu0 %v7817_v9  ;;  %v7876_v9 = vld [vmem:[#allocation3 + $0xfc4] ss:$40 sps:$4 sm:$0xff]  }
 0x28d   :  { %4747 = vmatpush2.bf16.msra.mxu1 %v7820_v11  ;;  %4707 = vmatprep.subr.bf16.mxu0 %v7825_v12  ;;  %v7874_v11 = vld [vmem:[#allocation3 + $0xfc0] ss:$40 sps:$4 sm:$0xff]   ;;  %v7879_v12 = vld [vmem:[#allocation3 + $0xa74] ss:$40 sps:$4 sm:$0xff]  }
 0x28e   :  { %4748 = vmatprep.subr.bf16.mxu1 %v7828_v13  ;;  %v7882_v13 = vld [vmem:[#allocation3 + $0xf74] ss:$40 sps:$4 sm:$0xff]  }
 0x290   :  { %4708 = vmatpush2.bf16.msra.mxu0 %v7823_v14  ;;  %v7877_v14 = vld [vmem:[#allocation3 + $0xa70] ss:$40 sps:$4 sm:$0xff]  }
 0x291   :  { %4749 = vmatpush2.bf16.msra.mxu1 %v7826_v27  ;;  %4709 = vmatprep.subr.bf16.mxu0 %v7831_v16  ;;  %v7880_v27 = vld [vmem:[#allocation3 + $0xf70] ss:$40 sps:$4 sm:$0xff]   ;;  %v7885_v16 = vld [vmem:[#allocation3 + $0xa24] ss:$40 sps:$4 sm:$0xff]  }
 0x292   :  { %4750 = vmatprep.subr.bf16.mxu1 %v7834_v19  ;;  %v7888_v19 = vld [vmem:[#allocation3 + $0xf24] ss:$40 sps:$4 sm:$0xff]  }
 0x294   :  { %4710 = vmatpush2.bf16.msra.mxu0 %v7829_v20  ;;  %v7883_v20 = vld [vmem:[#allocation3 + $0xa20] ss:$40 sps:$4 sm:$0xff]  }
 0x295   :  { %4751 = vmatpush2.bf16.msra.mxu1 %v7832_v21  ;;  %4711 = vmatprep.subr.bf16.mxu0 %v7837_v63  ;;  %v7886_v21 = vld [vmem:[#allocation3 + $0xf20] ss:$40 sps:$4 sm:$0xff]   ;;  %v7891_v63 = vld [vmem:[#allocation3 + $0xed4] ss:$40 sps:$4 sm:$0xff]  }
 0x296   :  { %4752 = vmatprep.subr.bf16.mxu1 %v7840_v4  ;;  %v7894_v4 = vld [vmem:[#allocation3 + $0x13d4] ss:$40 sps:$4 sm:$0xff]  }
 0x298   :  { %4712 = vmatpush2.bf16.msra.mxu0 %v7835_v32  ;;  %v7889_v32 = vld [vmem:[#allocation3 + $0xed0] ss:$40 sps:$4 sm:$0xff]  }
 0x299   :  { %4753 = vmatpush2.bf16.msra.mxu1 %v7838_v22  ;;  %4763 = vmatprep.subr.bf16.mxu0 %v7843_v23  ;;  %v7892_v22 = vld [vmem:[#allocation3 + $0x13d0] ss:$40 sps:$4 sm:$0xff]   ;;  %v7897_v23 = vld [vmem:[#allocation3 + $0xe84] ss:$40 sps:$4 sm:$0xff]  }
 0x29a   :  { %4804 = vmatprep.subr.bf16.mxu1 %v7846_v25  ;;  %v7900_v25 = vld [vmem:[#allocation3 + $0x1384] ss:$40 sps:$4 sm:$0xff]  }
 0x29b   :  { %v4469_v31 = vpop.f32.mrf.mxu0  ;;  %4714 = vmatmul.mubr.bf16.vlgmr.msra.gmra.mxu0 %v8234_v17 }
 0x29c   :  { %v4510_v33 = vpop.f32.mrf.mxu1  ;;  %4755 = vmatmul.mubr.bf16.vlgmr.msra.gmra.mxu1 %v8238_v18  ;;  %v4470_v34 = vadd.f32 %v4469_v31, %v8323_v62  ;;  %4764 = vmatpush1.bf16.msra.mxu0 %v7841_v26  ;;  %v7895_v26 = vld [vmem:[#allocation3 + $0xe80] ss:$40 sps:$4 sm:$0xff]   ;;  %v7901_v31 = vld [vmem:[#allocation3 + $0xe30] ss:$40 sps:$4 sm:$0xff]  }
 0x29d   :  { %4805 = vmatpush1.bf16.msra.mxu1 %v7844_v37  ;;  %v4471_v39 = vpop.f32.mrf.mxu0  ;;  %4765 = vmatprep.subr.bf16.mxu0 %v7849_v29  ;;  %v7898_v37 = vld [vmem:[#allocation3 + $0x1380] ss:$40 sps:$4 sm:$0xff]   ;;  %v7903_v29 = vld [vmem:[#allocation3 + $0xe34] ss:$40 sps:$4 sm:$0xff]  }
 0x29e   :  { %v4512_v40 = vpop.f32.mrf.mxu1  ;;  %4806 = vmatprep.subr.bf16.mxu1 %v7852_v30  ;;  %v8332_v43 = vadd.f32 %v4510_v33, %v4470_v34  ;;  %v4472_v46 = vadd.f32 %v4471_v39, %v8325_v8  ;;  %4795 = vmatprep.mubr.bf16.mxu0 %v8257_v53  ;;  %v4845_v8 = vmul.f32 %v8296_v10, %v8296_v10  ;;  %v7871_v10 = vld [vmem:[#allocation3 + $0xac0] ss:$40 sps:$4 sm:$0xff]   ;;  %v7906_v30 = vld [vmem:[#allocation3 + $0x1334] ss:$40 sps:$4 sm:$0xff]   ;;  %v7904_v33 = vld [vmem:[#allocation3 + $0x1330] ss:$40 sps:$4 sm:$0xff]  }
 0x29f   :  { %4836 = vmatprep.mubr.bf16.mxu1 %v8265_v50  ;;  %v4473_v17 = vpop.f32.mrf.mxu0  ;;  %v7859_v50 = vld [vmem:[#allocation3 + $0xb60] ss:$40 sps:$4 sm:$0xff]   ;;  %v7909_v34 = vld [vmem:[#allocation3 + $0xde4] ss:$40 sps:$4 sm:$0xff]  }
 0x2a0   :  { %v4514_v18 = vpop.f32.mrf.mxu1  ;;  %v4513_v62 = vadd.f32 %v4512_v40, %v4472_v46  ;;  %4766 = vmatpush1.bf16.msra.mxu0 %v7847_v38  ;;  %v7912_v38 = vld [vmem:[#allocation3 + $0x12e4] ss:$40 sps:$4 sm:$0xff]   ;;  %v7910_v39 = vld [vmem:[#allocation3 + $0x12e0] ss:$40 sps:$4 sm:$0xff]   ;;  %v7915_v40 = vld [vmem:[#allocation3 + $0xd94] ss:$40 sps:$4 sm:$0xff]  }
 0x2a1   :  { %4807 = vmatpush1.bf16.msra.mxu1 %v7850_v45  ;;  %v4474_v52 = vpop.f32.mrf.mxu0  ;;  %4767 = vmatprep.subr.bf16.mxu0 %v7855_v41  ;;  %v7907_v45 = vld [vmem:[#allocation3 + $0xde0] ss:$40 sps:$4 sm:$0xff]   ;;  %v7918_v41 = vld [vmem:[#allocation3 + $0x1294] ss:$40 sps:$4 sm:$0xff]   ;;  %v7916_v46 = vld [vmem:[#allocation3 + $0x1290] ss:$40 sps:$4 sm:$0xff]  }
 0x2a2   :  { %v4515_v56 = vpop.f32.mrf.mxu1  ;;  %4808 = vmatprep.subr.bf16.mxu1 %v7858_v42  ;;  %v4850_v59 = vmul.f32 %v4513_v62, %v4513_v62  ;;  %v7913_v42 = vld [vmem:[#allocation3 + $0xd90] ss:$40 sps:$4 sm:$0xff]   ;;  %v7921_v17 = vld [vmem:[#allocation3 + $0xd44] ss:$40 sps:$4 sm:$0xff]   ;;  %v7919_v62 = vld [vmem:[#allocation3 + $0xd40] ss:$40 sps:$4 sm:$0xff]  }
 0x2a3   :  { %v7924_v18 = vld [vmem:[#allocation3 + $0x1244] ss:$40 sps:$4 sm:$0xff]   ;;  %v7930_v52 = vld [vmem:[#allocation3 + $0x11f4] ss:$40 sps:$4 sm:$0xff]   ;;  %v7925_v56 = vld [vmem:[#allocation3 + $0xcf0] ss:$40 sps:$4 sm:$0xff]  }
 0x2a4   :  { %v8339_v53 = vadd.f32 %v4850_v59, %v4845_v8  ;;  %4768 = vmatpush1.bf16.msra.mxu0 %v7853_v47  ;;  %v7922_v47 = vld [vmem:[#allocation3 + $0x1240] ss:$40 sps:$4 sm:$0xff]   ;;  %v7936_v8 = vld [vmem:[#allocation3 + $0x11a4] ss:$40 sps:$4 sm:$0xff]  }
 0x2a5   :  { %4809 = vmatpush1.bf16.msra.mxu1 %v7856_v51  ;;  %4769 = vmatprep.subr.bf16.mxu0 %v7861_v57  ;;  %v7927_v51 = vld [vmem:[#allocation3 + $0xcf4] ss:$40 sps:$4 sm:$0xff]   ;;  %v7928_v57 = vld [vmem:[#allocation3 + $0x11f0] ss:$40 sps:$4 sm:$0xff]   ;;  %v7931_v59 = vld [vmem:[#allocation3 + $0xca0] ss:$40 sps:$4 sm:$0xff]  }
 0x2a6   :  { %4810 = vmatprep.subr.bf16.mxu1 %v7864_v58  ;;  %v7933_v58 = vld [vmem:[#allocation3 + $0xca4] ss:$40 sps:$4 sm:$0xff]   ;;  %7937 = vrsqrt.f32 %v8339_v53  ;;  %vm4862_vm2 = vcmp.eq.f32.partialorder %v8339_v53, inf  ;;  %vm4864_vm3 = vcmp.eq.f32.partialorder %v8339_v53, 0.0 }
 0x2a8   :  { %4770 = vmatpush1.bf16.msra.mxu0 %v7859_v50  ;;  %v7934_v50 = vld [vmem:[#allocation3 + $0x11a0] ss:$40 sps:$4 sm:$0xff]  }
 0x2a9   :  { %4811 = vmatpush1.bf16.msra.mxu1 %v7862_v1  ;;  %4771 = vmatprep.subr.bf16.mxu0 %v7867_v2  ;;  %v4926_v1 = vld [vmem:[%s9128_s2 + $0xf8] sm:$0xff] }
 0x2aa   :  { %4812 = vmatprep.subr.bf16.mxu1 %v7870_v3  ;;  %v4958_v2 = vld [vmem:[%s9128_s2 + $0x1f8] sm:$0xff] }
 0x2ab   :  { %v4910_v3 = vld [vmem:[%s9128_s2 + $0x78] sm:$0xff] }
 0x2ac   :  { %4772 = vmatpush1.bf16.msra.mxu0 %v7865_v5  ;;  %v4925_v5 = vld [vmem:[%s9128_s2 + $0xf0] sm:$0xff] }
 0x2ad   :  { %4813 = vmatpush1.bf16.msra.mxu1 %v7868_v6  ;;  %4773 = vmatprep.subr.bf16.mxu0 %v7873_v7  ;;  %v4942_v6 = vld [vmem:[%s9128_s2 + $0x178] sm:$0xff] }
 0x2ae   :  { %4814 = vmatprep.subr.bf16.mxu1 %v7876_v9 }
 0x2b0   :  { %4774 = vmatpush1.bf16.msra.mxu0 %v7871_v10  ;;  %v4909_v10 = vld [vmem:[%s9128_s2 + $0x70] sm:$0xff] }
 0x2b1   :  { %4815 = vmatpush1.bf16.msra.mxu1 %v7874_v11  ;;  %4775 = vmatprep.subr.bf16.mxu0 %v7879_v12  ;;  %v4957_v11 = vld [vmem:[%s9128_s2 + $0x1f0] sm:$0xff]  ;;  %v4924_v12 = vld [vmem:[%s9128_s2 + $0xe8] sm:$0xff] }
 0x2b2   :  { %4816 = vmatprep.subr.bf16.mxu1 %v7882_v13 }
 0x2b4   :  { %4776 = vmatpush1.bf16.msra.mxu0 %v7877_v14  ;;  %v4908_v14 = vld [vmem:[%s9128_s2 + $0x68] sm:$0xff] }
 0x2b5   :  { %4817 = vmatpush1.bf16.msra.mxu1 %v7880_v27  ;;  %4777 = vmatprep.subr.bf16.mxu0 %v7885_v16  ;;  %v4956_v27 = vld [vmem:[%s9128_s2 + $0x1e8] sm:$0xff] }
 0x2b6   :  { %4818 = vmatprep.subr.bf16.mxu1 %v7888_v19  ;;  %v4940_v19 = vld [vmem:[%s9128_s2 + $0x168] sm:$0xff] }
 0x2b8   :  { %4778 = vmatpush1.bf16.msra.mxu0 %v7883_v20 }
 0x2b9   :  { %4819 = vmatpush1.bf16.msra.mxu1 %v7886_v21  ;;  %4779 = vmatprep.subr.bf16.mxu0 %v7891_v63  ;;  %v4907_v63 = vld [vmem:[%s9128_s2 + $0x60] sm:$0xff] }
 0x2ba   :  { %4820 = vmatprep.subr.bf16.mxu1 %v7894_v4  ;;  %v4955_v4 = vld [vmem:[%s9128_s2 + $0x1e0] sm:$0xff] }
 0x2bc   :  { %4780 = vmatpush2.bf16.msra.mxu0 %v7889_v32  ;;  %v4922_v32 = vld [vmem:[%s9128_s2 + $0xd8] sm:$0xff] }
 0x2bd   :  { %4821 = vmatpush2.bf16.msra.mxu1 %v7892_v22  ;;  %4781 = vmatprep.subr.bf16.mxu0 %v7897_v23  ;;  %v4939_v22 = vld [vmem:[%s9128_s2 + $0x160] sm:$0xff] }
 0x2be   :  { %4822 = vmatprep.subr.bf16.mxu1 %v7900_v25 }
 0x2c0   :  { %4782 = vmatpush2.bf16.msra.mxu0 %v7895_v26  ;;  %v4906_v26 = vld [vmem:[%s9128_s2 + $0x58] sm:$0xff] }
 0x2c1   :  { %4823 = vmatpush2.bf16.msra.mxu1 %v7898_v37  ;;  %4783 = vmatprep.subr.bf16.mxu0 %v7903_v29  ;;  %v4954_v37 = vld [vmem:[%s9128_s2 + $0x1d8] sm:$0xff]  ;;  %v4921_v29 = vld [vmem:[%s9128_s2 + $0xd0] sm:$0xff] }
 0x2c2   :  { %4824 = vmatprep.subr.bf16.mxu1 %v7906_v30  ;;  %v4938_v30 = vld [vmem:[%s9128_s2 + $0x158] sm:$0xff] }
 0x2c4   :  { %4784 = vmatpush2.bf16.msra.mxu0 %v7901_v31  ;;  %v4905_v31 = vld [vmem:[%s9128_s2 + $0x50] sm:$0xff] }
 0x2c5   :  { %4825 = vmatpush2.bf16.msra.mxu1 %v7904_v33  ;;  %4785 = vmatprep.subr.bf16.mxu0 %v7909_v34  ;;  %v4953_v33 = vld [vmem:[%s9128_s2 + $0x1d0] sm:$0xff]  ;;  %v4920_v34 = vld [vmem:[%s9128_s2 + $0xc8] sm:$0xff] }
 0x2c6   :  { %4826 = vmatprep.subr.bf16.mxu1 %v7912_v38  ;;  %v4937_v38 = vld [vmem:[%s9128_s2 + $0x150] sm:$0xff] }
 0x2c8   :  { %4786 = vmatpush2.bf16.msra.mxu0 %v7907_v45  ;;  %v4904_v45 = vld [vmem:[%s9128_s2 + $0x48] sm:$0xff] }
 0x2c9   :  { %4827 = vmatpush2.bf16.msra.mxu1 %v7910_v39  ;;  %4787 = vmatprep.subr.bf16.mxu0 %v7915_v40  ;;  %v4952_v39 = vld [vmem:[%s9128_s2 + $0x1c8] sm:$0xff]  ;;  %v4919_v40 = vld [vmem:[%s9128_s2 + $0xc0] sm:$0xff] }
 0x2ca   :  { %4828 = vmatprep.subr.bf16.mxu1 %v7918_v41  ;;  %v4936_v41 = vld [vmem:[%s9128_s2 + $0x148] sm:$0xff] }
 0x2cc   :  { %4788 = vmatpush2.bf16.msra.mxu0 %v7913_v42  ;;  %v4903_v42 = vld [vmem:[%s9128_s2 + $0x40] sm:$0xff] }
 0x2cd   :  { %4829 = vmatpush2.bf16.msra.mxu1 %v7916_v46  ;;  %4789 = vmatprep.subr.bf16.mxu0 %v7921_v17  ;;  %v4951_v46 = vld [vmem:[%s9128_s2 + $0x1c0] sm:$0xff]  ;;  %v4918_v17 = vld [vmem:[%s9128_s2 + $0xb8] sm:$0xff] }
 0x2ce   :  { %4830 = vmatprep.subr.bf16.mxu1 %v7924_v18  ;;  %v4935_v18 = vld [vmem:[%s9128_s2 + $0x140] sm:$0xff] }
 0x2d0   :  { %4790 = vmatpush2.bf16.msra.mxu0 %v7919_v62  ;;  %v4902_v62 = vld [vmem:[%s9128_s2 + $0x38] sm:$0xff] }
 0x2d1   :  { %4831 = vmatpush2.bf16.msra.mxu1 %v7922_v47  ;;  %4791 = vmatprep.subr.bf16.mxu0 %v7927_v51  ;;  %v4950_v47 = vld [vmem:[%s9128_s2 + $0x1b8] sm:$0xff]  ;;  %v4917_v51 = vld [vmem:[%s9128_s2 + $0xb0] sm:$0xff] }
 0x2d2   :  { %4832 = vmatprep.subr.bf16.mxu1 %v7930_v52  ;;  %v4934_v52 = vld [vmem:[%s9128_s2 + $0x138] sm:$0xff] }
 0x2d4   :  { %4792 = vmatpush2.bf16.msra.mxu0 %v7925_v56  ;;  %v4901_v56 = vld [vmem:[%s9128_s2 + $0x30] sm:$0xff] }
 0x2d5   :  { %4833 = vmatpush2.bf16.msra.mxu1 %v7928_v57  ;;  %4793 = vmatprep.subr.bf16.mxu0 %v7933_v58  ;;  %v4949_v57 = vld [vmem:[%s9128_s2 + $0x1b0] sm:$0xff]  ;;  %v4916_v58 = vld [vmem:[%s9128_s2 + $0xa8] sm:$0xff] }
 0x2d6   :  { %4834 = vmatprep.subr.bf16.mxu1 %v7936_v8  ;;  %v4933_v8 = vld [vmem:[%s9128_s2 + $0x130] sm:$0xff] }
 0x2d8   :  { %4794 = vmatpush2.bf16.msra.mxu0 %v7931_v59  ;;  %v4900_v59 = vld [vmem:[%s9128_s2 + $0x28] sm:$0xff] }
 0x2d9   :  { %4835 = vmatpush2.bf16.msra.mxu1 %v7934_v50  ;;  %6614 = vmatprep.subr.mxu0 %v4926_v1  ;;  %v4948_v50 = vld [vmem:[%s9128_s2 + $0x1a8] sm:$0xff]  ;;  %v4915_v1 = vld [vmem:[%s9128_s2 + $0xa0] sm:$0xff] }
 0x2da   :  { %6649 = vmatprep.subr.mxu1 %v4958_v2  ;;  %v4932_v2 = vld [vmem:[%s9128_s2 + $0x128] sm:$0xff] }
 0x2db   :  { %v8356_v7 = vpop.f32.mrf.mxu0  ;;  %4796 = vmatmul.mubr.bf16.vlgmr.msra.gmra.mxu0 %v8271_v35  ;;  %v4941_v35 = vld [vmem:[%s9128_s2 + $0x170] sm:$0xff] }
 0x2dc   :  { %v8358_v9 = vpop.f32.mrf.mxu1  ;;  %4837 = vmatmul.mubr.bf16.vlgmr.msra.gmra.mxu1 %v8275_v36  ;;  %6615 = vmatpush3.msra.mxu0 %v4910_v3  ;;  %v4899_v3 = vld [vmem:[%s9128_s2 + $0x20] sm:$0xff] }
 0x2dd   :  { %5094 = vmatprep.mubr.f32.mxu0 %v8213_v60  ;;  %v4553_v36 = vpop.f32.mrf.mxu0  ;;  %6616 = vmatprep.subr.mxu0 %v4925_v5  ;;  %v4923_v60 = vld [vmem:[%s9128_s2 + $0xe0] sm:$0xff] }
 0x2de   :  { %v4594_v13 = vpop.f32.mrf.mxu1  ;;  %6650 = vmatpush3.msra.mxu1 %v4942_v6  ;;  %6617 = vmatpush3.msra.mxu0 %v4909_v10  ;;  %v4947_v5 = vld [vmem:[%s9128_s2 + $0x1a0] sm:$0xff]  ;;  %v4914_v6 = vld [vmem:[%s9128_s2 + $0x98] sm:$0xff] }
 0x2df   :  { %v8381_v16 = vadd.f32 %v4594_v13, %v4553_v36  ;;  %6651 = vmatprep.subr.mxu1 %v4957_v11  ;;  %v4555_v20 = vpop.f32.mrf.mxu0  ;;  %6618 = vmatprep.subr.mxu0 %v4924_v12  ;;  %v4931_v10 = vld [vmem:[%s9128_s2 + $0x120] sm:$0xff]  ;;  %v4898_v11 = vld [vmem:[%s9128_s2 + $0x18] sm:$0xff]  ;;  %v4897_v13 = vld [vmem:[%s9128_s2 + $0x10] sm:$0xff] }
 0x2e0   :  { %v4596_v21 = vpop.f32.mrf.mxu1  ;;  %6652 = vmatpush3.msra.mxu1 %v4941_v35  ;;  %6619 = vmatpush3.msra.mxu0 %v4908_v14  ;;  %v4946_v12 = vld [vmem:[%s9128_s2 + $0x198] sm:$0xff]  ;;  %v4913_v35 = vld [vmem:[%s9128_s2 + $0x90] sm:$0xff]  ;;  %v4944_v20 = vld [vmem:[%s9128_s2 + $0x188] sm:$0xff] }
 0x2e1   :  { %6653 = vmatprep.subr.mxu1 %v4956_v27  ;;  %v4556_v23 = vpop.f32.mrf.mxu0  ;;  %6620 = vmatprep.subr.mxu0 %v4923_v60  ;;  %v4930_v36 = vld [vmem:[%s9128_s2 + $0x118] sm:$0xff]  ;;  %v4945_v14 = vld [vmem:[%s9128_s2 + $0x190] sm:$0xff]  ;;  %v4912_v27 = vld [vmem:[%s9128_s2 + $0x88] sm:$0xff] }
 0x2e2   :  { %v4597_v25 = vpop.f32.mrf.mxu1  ;;  %6654 = vmatpush3.msra.mxu1 %v4940_v19  ;;  %6621 = vmatpush3.msra.mxu0 %v4907_v63  ;;  %v4929_v60 = vld [vmem:[%s9128_s2 + $0x110] sm:$0xff]  ;;  %v4896_v19 = vld [vmem:[%s9128_s2 + $0x8] sm:$0xff]  ;;  %v4911_v21 = vld [vmem:[%s9128_s2 + $0x80] sm:$0xff] }
 0x2e3   :  { %6655 = vmatprep.subr.mxu1 %v4955_v4  ;;  %6622 = vmatprep.subr.mxu0 %v4922_v32  ;;  %v4928_v63 = vld [vmem:[%s9128_s2 + $0x108] sm:$0xff]  ;;  %v4895_v4 = vld [vmem:[%s9128_s2] sm:$0xff]  ;;  %v4974_v23 = vld [vmem:[%s9128_s2 + $0x278] sm:$0xff] }
 0x2e4   :  { %6656 = vmatpush3.msra.mxu1 %v4939_v22  ;;  %6623 = vmatpush3.msra.mxu0 %v4906_v26  ;;  %v4943_v32 = vld [vmem:[%s9128_s2 + $0x180] sm:$0xff]  ;;  %v4990_v22 = vld [vmem:[%s9128_s2 + $0x2f8] sm:$0xff]  ;;  %v4989_v25 = vld [vmem:[%s9128_s2 + $0x2f0] sm:$0xff] }
 0x2e5   :  { %6657 = vmatprep.subr.mxu1 %v4954_v37  ;;  %6624 = vmatprep.subr.mxu0 %v4921_v29  ;;  %v4927_v26 = vld [vmem:[%s9128_s2 + $0x100] sm:$0xff]  ;;  %v4973_v37 = vld [vmem:[%s9128_s2 + $0x270] sm:$0xff]  ;;  %v4988_v29 = vld [vmem:[%s9128_s2 + $0x2e8] sm:$0xff] }
 0x2e6   :  { %6658 = vmatpush3.msra.mxu1 %v4938_v30  ;;  %6625 = vmatpush3.msra.mxu0 %v4905_v31  ;;  %v5022_v30 = vld [vmem:[%s9128_s2 + $0x3f8] sm:$0xff]  ;;  %v4987_v31 = vld [vmem:[%s9128_s2 + $0x2e0] sm:$0xff] }
 0x2e7   :  { %6659 = vmatprep.subr.mxu1 %v4953_v33  ;;  %6626 = vmatprep.subr.mxu0 %v4920_v34  ;;  %v4971_v33 = vld [vmem:[%s9128_s2 + $0x260] sm:$0xff]  ;;  %v5021_v34 = vld [vmem:[%s9128_s2 + $0x3f0] sm:$0xff] }
 0x2e8   :  { %6660 = vmatpush3.msra.mxu1 %v4937_v38  ;;  %6627 = vmatpush3.msra.mxu0 %v4904_v45  ;;  %v4986_v38 = vld [vmem:[%s9128_s2 + $0x2d8] sm:$0xff] }
 0x2e9   :  { %6661 = vmatprep.subr.mxu1 %v4952_v39  ;;  %6628 = vmatprep.subr.mxu0 %v4919_v40  ;;  %v4970_v45 = vld [vmem:[%s9128_s2 + $0x258] sm:$0xff]  ;;  %v5020_v39 = vld [vmem:[%s9128_s2 + $0x3e8] sm:$0xff]  ;;  %v4985_v40 = vld [vmem:[%s9128_s2 + $0x2d0] sm:$0xff] }
 0x2ea   :  { %6662 = vmatpush3.msra.mxu1 %v4936_v41  ;;  %6629 = vmatpush3.msra.mxu0 %v4903_v42  ;;  %v4969_v41 = vld [vmem:[%s9128_s2 + $0x250] sm:$0xff]  ;;  %v5019_v42 = vld [vmem:[%s9128_s2 + $0x3e0] sm:$0xff] }
 0x2eb   :  { %6663 = vmatprep.subr.mxu1 %v4951_v46  ;;  %6630 = vmatprep.subr.mxu0 %v4918_v17  ;;  %v4984_v46 = vld [vmem:[%s9128_s2 + $0x2c8] sm:$0xff]  ;;  %v5003_v17 = vld [vmem:[%s9128_s2 + $0x360] sm:$0xff] }
 0x2ec   :  { %6664 = vmatpush3.msra.mxu1 %v4935_v18  ;;  %6631 = vmatpush3.msra.mxu0 %v4902_v62  ;;  %v4968_v18 = vld [vmem:[%s9128_s2 + $0x248] sm:$0xff]  ;;  %v5018_v62 = vld [vmem:[%s9128_s2 + $0x3d8] sm:$0xff] }
 0x2ed   :  { %6665 = vmatprep.subr.mxu1 %v4950_v47  ;;  %6632 = vmatprep.subr.mxu0 %v4917_v51  ;;  %v4983_v47 = vld [vmem:[%s9128_s2 + $0x2c0] sm:$0xff]  ;;  %v5002_v51 = vld [vmem:[%s9128_s2 + $0x358] sm:$0xff] }
 0x2ee   :  { %6666 = vmatpush3.msra.mxu1 %v4934_v52  ;;  %6633 = vmatpush3.msra.mxu0 %v4901_v56  ;;  %v4967_v52 = vld [vmem:[%s9128_s2 + $0x240] sm:$0xff]  ;;  %v5017_v56 = vld [vmem:[%s9128_s2 + $0x3d0] sm:$0xff] }
 0x2ef   :  { %6667 = vmatprep.subr.mxu1 %v4949_v57  ;;  %6634 = vmatprep.subr.mxu0 %v4916_v58  ;;  %v4982_v57 = vld [vmem:[%s9128_s2 + $0x2b8] sm:$0xff]  ;;  %v5001_v58 = vld [vmem:[%s9128_s2 + $0x350] sm:$0xff] }
 0x2f0   :  { %6668 = vmatpush3.msra.mxu1 %v4933_v8  ;;  %6635 = vmatpush3.msra.mxu0 %v4900_v59  ;;  %v4966_v8 = vld [vmem:[%s9128_s2 + $0x238] sm:$0xff]  ;;  %v5016_v59 = vld [vmem:[%s9128_s2 + $0x3c8] sm:$0xff] }
 0x2f1   :  { %6669 = vmatprep.subr.mxu1 %v4948_v50  ;;  %6636 = vmatprep.subr.mxu0 %v4915_v1  ;;  %v4981_v50 = vld [vmem:[%s9128_s2 + $0x2b0] sm:$0xff]  ;;  %v5000_v1 = vld [vmem:[%s9128_s2 + $0x348] sm:$0xff] }
 0x2f2   :  { %6670 = vmatpush3.msra.mxu1 %v4932_v2  ;;  %6637 = vmatpush3.msra.mxu0 %v4899_v3  ;;  %v4965_v2 = vld [vmem:[%s9128_s2 + $0x230] sm:$0xff]  ;;  %v5015_v3 = vld [vmem:[%s9128_s2 + $0x3c0] sm:$0xff] }
 0x2f3   :  { %6671 = vmatprep.subr.mxu1 %v4947_v5  ;;  %6638 = vmatprep.subr.mxu0 %v4914_v6  ;;  %v4980_v5 = vld [vmem:[%s9128_s2 + $0x2a8] sm:$0xff]  ;;  %v4999_v6 = vld [vmem:[%s9128_s2 + $0x340] sm:$0xff] }
 0x2f4   :  { %6672 = vmatpush3.msra.mxu1 %v4931_v10  ;;  %6639 = vmatpush3.msra.mxu0 %v4898_v11  ;;  %v4964_v10 = vld [vmem:[%s9128_s2 + $0x228] sm:$0xff]  ;;  %v5014_v11 = vld [vmem:[%s9128_s2 + $0x3b8] sm:$0xff] }
 0x2f5   :  { %6673 = vmatprep.subr.mxu1 %v4946_v12  ;;  %6640 = vmatprep.subr.mxu0 %v4913_v35  ;;  %v4979_v12 = vld [vmem:[%s9128_s2 + $0x2a0] sm:$0xff]  ;;  %v4998_v35 = vld [vmem:[%s9128_s2 + $0x338] sm:$0xff] }
 0x2f6   :  { %6674 = vmatpush3.msra.mxu1 %v4930_v36  ;;  %6641 = vmatpush3.msra.mxu0 %v4897_v13  ;;  %v4963_v36 = vld [vmem:[%s9128_s2 + $0x220] sm:$0xff]  ;;  %v5013_v13 = vld [vmem:[%s9128_s2 + $0x3b0] sm:$0xff] }
 0x2f7   :  { %6675 = vmatprep.subr.mxu1 %v4945_v14  ;;  %6642 = vmatprep.subr.mxu0 %v4912_v27  ;;  %v4978_v14 = vld [vmem:[%s9128_s2 + $0x298] sm:$0xff]  ;;  %v4997_v27 = vld [vmem:[%s9128_s2 + $0x330] sm:$0xff] }
 0x2f8   :  { %6676 = vmatpush3.msra.mxu1 %v4929_v60  ;;  %6643 = vmatpush3.msra.mxu0 %v4896_v19  ;;  %v4962_v60 = vld [vmem:[%s9128_s2 + $0x218] sm:$0xff]  ;;  %v5012_v19 = vld [vmem:[%s9128_s2 + $0x3a8] sm:$0xff] }
 0x2f9   :  { %6677 = vmatprep.subr.mxu1 %v4944_v20  ;;  %6644 = vmatprep.subr.mxu0 %v4911_v21  ;;  %v4977_v20 = vld [vmem:[%s9128_s2 + $0x290] sm:$0xff]  ;;  %v4996_v21 = vld [vmem:[%s9128_s2 + $0x328] sm:$0xff] }
 0x2fa   :  { %6678 = vmatpush3.msra.mxu1 %v4928_v63  ;;  %6645 = vmatpush3.msra.mxu0 %v4895_v4  ;;  %v4961_v63 = vld [vmem:[%s9128_s2 + $0x210] sm:$0xff]  ;;  %v5011_v4 = vld [vmem:[%s9128_s2 + $0x3a0] sm:$0xff] }
 0x2fb   :  { %6679 = vmatprep.subr.mxu1 %v4943_v32  ;;  %6684 = vmatprep.subr.mxu0 %v4990_v22  ;;  %v4976_v32 = vld [vmem:[%s9128_s2 + $0x288] sm:$0xff]  ;;  %v4995_v22 = vld [vmem:[%s9128_s2 + $0x320] sm:$0xff] }
 0x2fc   :  { %5095 = vmatmul.mubr.f32.vlgmr.msra.gmra.mxu0 %v8209_v55  ;;  %v4972_v55 = vld [vmem:[%s9128_s2 + $0x268] sm:$0xff]  ;;  %6680 = vmatpush3.msra.mxu1 %v4927_v26  ;;  %v4975_v26 = vld [vmem:[%s9128_s2 + $0x280] sm:$0xff] }
 0x2fd   :  { %6685 = vmatpush3.msra.mxu0 %v4974_v23  ;;  %5234 = vmatprep.mubr.f32.mxu0 %v8250_v48  ;;  %v5006_v48 = vld [vmem:[%s9128_s2 + $0x378] sm:$0xff]  ;;  %v4960_v23 = vld [vmem:[%s9128_s2 + $0x208] sm:$0xff] }
 0x2fe   :  { %6686 = vmatprep.subr.mxu0 %v4989_v25  ;;  %5164 = vmatprep.mubr.f32.mxu1 %v8224_v0  ;;  %v5005_v0 = vld [vmem:[%s9128_s2 + $0x370] sm:$0xff]  ;;  %v5010_v25 = vld [vmem:[%s9128_s2 + $0x398] sm:$0xff] }
 0x2ff   :  { %6687 = vmatpush3.msra.mxu0 %v4973_v37  ;;  %6719 = vmatprep.subr.mxu1 %v5022_v30  ;;  %v4994_v37 = vld [vmem:[%s9128_s2 + $0x318] sm:$0xff]  ;;  %v5009_v30 = vld [vmem:[%s9128_s2 + $0x390] sm:$0xff] }
 0x300   :  { %6688 = vmatprep.subr.mxu0 %v4988_v29  ;;  %5165 = vmatmul.mubr.f32.vlgmr.msra.gmra.mxu1 %v8216_v61  ;;  %v5004_v61 = vld [vmem:[%s9128_s2 + $0x368] sm:$0xff]  ;;  %v4959_v29 = vld [vmem:[%s9128_s2 + $0x200] sm:$0xff] }
 0x301   :  { %6689 = vmatpush3.msra.mxu0 %v4972_v55  ;;  %6720 = vmatpush3.msra.mxu1 %v5006_v48  ;;  %v5344_v55 = vld [vmem:[%s9130_s4 + $0xf8] sm:$0xff]  ;;  %v4993_v48 = vld [vmem:[%s9128_s2 + $0x310] sm:$0xff] }
 0x302   :  { %6690 = vmatprep.subr.mxu0 %v4987_v31  ;;  %6721 = vmatprep.subr.mxu1 %v5021_v34  ;;  %v5328_v31 = vld [vmem:[%s9130_s4 + $0x78] sm:$0xff]  ;;  %v5343_v34 = vld [vmem:[%s9130_s4 + $0xf0] sm:$0xff] }
 0x303   :  { %6691 = vmatpush3.msra.mxu0 %v4971_v33  ;;  %6722 = vmatpush3.msra.mxu1 %v5005_v0  ;;  %v4593_v33 = vadd.f32 %v8358_v9, %v8356_v7  ;;  %v4992_v7 = vld [vmem:[%s9128_s2 + $0x308] sm:$0xff] }
 0x304   :  { %6692 = vmatprep.subr.mxu0 %v4986_v38  ;;  %6723 = vmatprep.subr.mxu1 %v5020_v39  ;;  %v5008_v38 = vld [vmem:[%s9128_s2 + $0x388] sm:$0xff]  ;;  %v5327_v39 = vld [vmem:[%s9130_s4 + $0x70] sm:$0xff] }
 0x305   :  { %6693 = vmatpush3.msra.mxu0 %v4970_v45  ;;  %6724 = vmatpush3.msra.mxu1 %v5004_v61  ;;  %v5007_v61 = vld [vmem:[%s9128_s2 + $0x380] sm:$0xff] }
 0x306   :  { %6694 = vmatprep.subr.mxu0 %v4985_v40  ;;  %6725 = vmatprep.subr.mxu1 %v5019_v42  ;;  %v5342_v40 = vld [vmem:[%s9130_s4 + $0xe8] sm:$0xff] }
 0x307   :  { %6695 = vmatpush3.msra.mxu0 %v4969_v41  ;;  %6726 = vmatpush3.msra.mxu1 %v5003_v17  ;;  %v5326_v42 = vld [vmem:[%s9130_s4 + $0x68] sm:$0xff] }
 0x308   :  { %6696 = vmatprep.subr.mxu0 %v4984_v46  ;;  %6727 = vmatprep.subr.mxu1 %v5018_v62  ;;  %v4991_v46 = vld [vmem:[%s9128_s2 + $0x300] sm:$0xff] }
 0x309   :  { %6697 = vmatpush3.msra.mxu0 %v4968_v18  ;;  %6728 = vmatpush3.msra.mxu1 %v5002_v51  ;;  %v5341_v62 = vld [vmem:[%s9130_s4 + $0xe0] sm:$0xff] }
 0x30a   :  { %6698 = vmatprep.subr.mxu0 %v4983_v47  ;;  %6729 = vmatprep.subr.mxu1 %v5017_v56  ;;  %v4846_v56 = vmul.f32 %v8301_v15, %v8301_v15  ;;  %v5360_v15 = vld [vmem:[%s9130_s4 + $0x178] sm:$0xff] }
 0x30b   :  { %6699 = vmatpush3.msra.mxu0 %v4967_v52  ;;  %6730 = vmatpush3.msra.mxu1 %v5001_v58  ;;  %v5325_v52 = vld [vmem:[%s9130_s4 + $0x60] sm:$0xff] }
 0x30c   :  { %6700 = vmatprep.subr.mxu0 %v4982_v57  ;;  %6731 = vmatprep.subr.mxu1 %v5016_v59 }
 0x30d   :  { %6701 = vmatpush3.msra.mxu0 %v4966_v8  ;;  %6732 = vmatpush3.msra.mxu1 %v5000_v1  ;;  %v5376_v8 = vld [vmem:[%s9130_s4 + $0x1f8] sm:$0xff] }
 0x30e   :  { %6702 = vmatprep.subr.mxu0 %v4981_v50  ;;  %6733 = vmatprep.subr.mxu1 %v5015_v3  ;;  %v5324_v1 = vld [vmem:[%s9130_s4 + $0x58] sm:$0xff] }
 0x30f   :  { %6703 = vmatpush3.msra.mxu0 %v4965_v2  ;;  %6734 = vmatpush3.msra.mxu1 %v4999_v6  ;;  %v4847_v2 = vmul.f32 %v8314_v24, %v8314_v24  ;;  %v5339_v6 = vld [vmem:[%s9130_s4 + $0xd0] sm:$0xff] }
 0x310   :  { %6704 = vmatprep.subr.mxu0 %v4980_v5  ;;  %6735 = vmatprep.subr.mxu1 %v5014_v11  ;;  %v5323_v24 = vld [vmem:[%s9130_s4 + $0x50] sm:$0xff] }
 0x311   :  { %6705 = vmatpush3.msra.mxu0 %v4964_v10  ;;  %6736 = vmatpush3.msra.mxu1 %v4998_v35  ;;  %v5359_v10 = vld [vmem:[%s9130_s4 + $0x170] sm:$0xff]  ;;  %v5322_v35 = vld [vmem:[%s9130_s4 + $0x48] sm:$0xff] }
 0x312   :  { %6706 = vmatprep.subr.mxu0 %v4979_v12  ;;  %6737 = vmatprep.subr.mxu1 %v5013_v13  ;;  %v5374_v12 = vld [vmem:[%s9130_s4 + $0x1e8] sm:$0xff]  ;;  %v5337_v13 = vld [vmem:[%s9130_s4 + $0xc0] sm:$0xff] }
 0x313   :  { %6707 = vmatpush3.msra.mxu0 %v4963_v36  ;;  %6738 = vmatpush3.msra.mxu1 %v4997_v27  ;;  %v5358_v36 = vld [vmem:[%s9130_s4 + $0x168] sm:$0xff]  ;;  %v5321_v27 = vld [vmem:[%s9130_s4 + $0x40] sm:$0xff] }
 0x314   :  { %6708 = vmatprep.subr.mxu0 %v4978_v14  ;;  %6739 = vmatprep.subr.mxu1 %v5012_v19  ;;  %v5373_v14 = vld [vmem:[%s9130_s4 + $0x1e0] sm:$0xff]  ;;  %v5336_v19 = vld [vmem:[%s9130_s4 + $0xb8] sm:$0xff] }
 0x315   :  { %6709 = vmatpush3.msra.mxu0 %v4962_v60  ;;  %6740 = vmatpush3.msra.mxu1 %v4996_v21  ;;  %v5357_v60 = vld [vmem:[%s9130_s4 + $0x160] sm:$0xff]  ;;  %v5320_v21 = vld [vmem:[%s9130_s4 + $0x38] sm:$0xff] }
 0x316   :  { %6710 = vmatprep.subr.mxu0 %v4977_v20  ;;  %6741 = vmatprep.subr.mxu1 %v5011_v4  ;;  %v5372_v20 = vld [vmem:[%s9130_s4 + $0x1d8] sm:$0xff]  ;;  %v5335_v4 = vld [vmem:[%s9130_s4 + $0xb0] sm:$0xff] }
 0x317   :  { %6711 = vmatpush3.msra.mxu0 %v4961_v63  ;;  %6742 = vmatpush3.msra.mxu1 %v4995_v22  ;;  %v5356_v63 = vld [vmem:[%s9130_s4 + $0x158] sm:$0xff]  ;;  %v5319_v22 = vld [vmem:[%s9130_s4 + $0x30] sm:$0xff] }
 0x318   :  { %6712 = vmatprep.subr.mxu0 %v4976_v32  ;;  %6743 = vmatprep.subr.mxu1 %v5010_v25  ;;  %v5371_v32 = vld [vmem:[%s9130_s4 + $0x1d0] sm:$0xff]  ;;  %v5334_v25 = vld [vmem:[%s9130_s4 + $0xa8] sm:$0xff] }
 0x319   :  { %6713 = vmatpush3.msra.mxu0 %v4960_v23  ;;  %6744 = vmatpush3.msra.mxu1 %v4994_v37  ;;  %v5355_v23 = vld [vmem:[%s9130_s4 + $0x150] sm:$0xff]  ;;  %v5318_v37 = vld [vmem:[%s9130_s4 + $0x28] sm:$0xff] }
 0x31a   :  { %6714 = vmatprep.subr.mxu0 %v4975_v26  ;;  %6745 = vmatprep.subr.mxu1 %v5009_v30  ;;  %v5370_v26 = vld [vmem:[%s9130_s4 + $0x1c8] sm:$0xff]  ;;  %v5333_v30 = vld [vmem:[%s9130_s4 + $0xa0] sm:$0xff] }
 0x31b   :  { %6715 = vmatpush3.msra.mxu0 %v4959_v29  ;;  %v4633_v0 = vpop.f32.mrf.mxu0  ;;  %6746 = vmatpush3.msra.mxu1 %v4993_v48  ;;  %v5354_v29 = vld [vmem:[%s9130_s4 + $0x148] sm:$0xff]  ;;  %v5353_v48 = vld [vmem:[%s9130_s4 + $0x140] sm:$0xff] }
 0x31c   :  { %v4674_v45 = vpop.f32.mrf.mxu1  ;;  %6754 = vmatprep.subr.mxu0 %v5344_v55  ;;  %5235 = vmatmul.mubr.f32.vlgmr.msra.gmra.mxu0 %v8246_v44  ;;  %v4634_v9 = vadd.f32 %v4633_v0, %v4593_v33  ;;  %v5369_v55 = vld [vmem:[%s9130_s4 + $0x1c0] sm:$0xff]  ;;  %v7938_v33 = vpop.eup %7937 }
 0x31d   :  { %6755 = vmatpush3.msra.mxu0 %v5328_v31  ;;  %v4635_v44 = vpop.f32.mrf.mxu0  ;;  %6747 = vmatprep.subr.mxu1 %v5008_v38  ;;  %v5317_v31 = vld [vmem:[%s9130_s4 + $0x20] sm:$0xff]  ;;  %v5368_v38 = vld [vmem:[%s9130_s4 + $0x1b8] sm:$0xff] }
 0x31e   :  { %v4676_v41 = vpop.f32.mrf.mxu1  ;;  %6756 = vmatprep.subr.mxu0 %v5343_v34  ;;  %v4675_v17 = vadd.f32 %v4674_v45, %v4634_v9  ;;  %v4636_v18 = vadd.f32 %v4635_v44, %v8381_v16  ;;  %6748 = vmatpush3.msra.mxu1 %v4992_v7  ;;  %v5340_v16 = vld [vmem:[%s9130_s4 + $0xd8] sm:$0xff]  ;;  %v5331_v7 = vld [vmem:[%s9130_s4 + $0x90] sm:$0xff] }
 0x31f   :  { %6757 = vmatpush3.msra.mxu0 %v5327_v39  ;;  %v4637_v47 = vpop.f32.mrf.mxu0  ;;  %6749 = vmatprep.subr.mxu1 %v5007_v61  ;;  %v5332_v34 = vld [vmem:[%s9130_s4 + $0x98] sm:$0xff]  ;;  %v5315_v61 = vld [vmem:[%s9130_s4 + $0x10] sm:$0xff] }
 0x320   :  { %v4678_v51 = vpop.f32.mrf.mxu1  ;;  %6758 = vmatprep.subr.mxu0 %v5342_v40  ;;  %v4851_v57 = vmul.f32 %v4675_v17, %v4675_v17  ;;  %v4677_v58 = vadd.f32 %v4676_v41, %v4636_v18  ;;  %6750 = vmatpush3.msra.mxu1 %v4991_v46  ;;  %v5316_v45 = vld [vmem:[%s9130_s4 + $0x18] sm:$0xff]  ;;  %v5367_v40 = vld [vmem:[%s9130_s4 + $0x1b0] sm:$0xff]  ;;  %v4861_v41 = vmul.f32 %v7938_v33, %v8339_v53  ;;  %v5330_v46 = vld [vmem:[%s9130_s4 + $0x88] sm:$0xff] }
 0x321   :  { %6759 = vmatpush3.msra.mxu0 %v5326_v42  ;;  %v4638_v59 = vpop.f32.mrf.mxu0  ;;  %5304 = vmatprep.mubr.f32.mxu1 %v8261_v54  ;;  %v5375_v54 = vld [vmem:[%s9130_s4 + $0x1f0] sm:$0xff]  ;;  %v5352_v39 = vld [vmem:[%s9130_s4 + $0x138] sm:$0xff]  ;;  %v5366_v47 = vld [vmem:[%s9130_s4 + $0x1a8] sm:$0xff] }
 0x322   :  { %v4679_v50 = vpop.f32.mrf.mxu1  ;;  %6760 = vmatprep.subr.mxu0 %v5341_v62  ;;  %v8783_v3 = vadd.f32 %v4851_v57, %v4846_v56  ;;  %v4852_v5 = vmul.f32 %v4677_v58, %v4677_v58  ;;  %5305 = vmatmul.mubr.f32.vlgmr.msra.gmra.mxu1 %v8253_v49  ;;  %v5338_v49 = vld [vmem:[%s9130_s4 + $0xc8] sm:$0xff]  ;;  %v5351_v17 = vld [vmem:[%s9130_s4 + $0x130] sm:$0xff]  ;;  %v5329_v51 = vld [vmem:[%s9130_s4 + $0x80] sm:$0xff]  ;;  %v4863_v57 = vsel %vm4862_vm2, %v8339_v53, %v4861_v41  ;;  %vm5956_vm2 = vcmask 1024  }
 0x323   :  { %6761 = vmatpush3.msra.mxu0 %v5325_v52  ;;  %6789 = vmatprep.subr.mxu1 %v5376_v8  ;;  %v5314_v62 = vld [vmem:[%s9130_s4 + $0x8] sm:$0xff]  ;;  %v5313_v56 = vld [vmem:[%s9130_s4] sm:$0xff]  ;;  %v5392_v8 = vld [vmem:[%s9130_s4 + $0x278] sm:$0xff] }
 0x324   :  { %6762 = vmatprep.subr.mxu0 %v5340_v16  ;;  %7939 = vrsqrt.f32 %v8783_v3  ;;  %v8800_v11 = vadd.f32 %v4852_v5, %v4847_v2  ;;  %6790 = vmatpush3.msra.mxu1 %v5360_v15  ;;  %vm4869_vm0 = vcmp.eq.f32.partialorder %v8783_v3, inf  ;;  %v4872_v44 = vand.u32 2147483648, %v8783_v3  ;;  %v5350_v52 = vld [vmem:[%s9130_s4 + $0x128] sm:$0xff]  ;;  %v5365_v58 = vld [vmem:[%s9130_s4 + $0x1a0] sm:$0xff]  ;;  %v5348_v2 = vld [vmem:[%s9130_s4 + $0x118] sm:$0xff] }
 0x325   :  { %6763 = vmatpush3.msra.mxu0 %v5324_v1  ;;  %6791 = vmatprep.subr.mxu1 %v5375_v54  ;;  %vm4871_vm1 = vcmp.eq.f32.partialorder %v8783_v3, 0.0  ;;  %v4865_v16 = vand.u32 2147483648, %v8339_v53  ;;  %v5349_v59 = vld [vmem:[%s9130_s4 + $0x120] sm:$0xff]  ;;  %v5364_v1 = vld [vmem:[%s9130_s4 + $0x198] sm:$0xff]  ;;  %v8107_v15 = vmov 0.0   ;;  %v5391_v53 = vld [vmem:[%s9130_s4 + $0x270] sm:$0xff] }
 0x326   :  { %6764 = vmatprep.subr.mxu0 %v5339_v6  ;;  %6792 = vmatpush3.msra.mxu1 %v5359_v10  ;;  %v5390_v5 = vld [vmem:[%s9130_s4 + $0x268] sm:$0xff]  ;;  %v5347_v6 = vld [vmem:[%s9130_s4 + $0x110] sm:$0xff]  ;;  %7941 = vrsqrt.f32 %v8800_v11  ;;  %vm4876_vm5 = vcmp.eq.f32.partialorder %v8800_v11, inf  ;;  %vm4878_vm8 = vcmp.eq.f32.partialorder %v8800_v11, 0.0 }
 0x327   :  { %6765 = vmatpush3.msra.mxu0 %v5323_v24  ;;  %6793 = vmatprep.subr.mxu1 %v5374_v12  ;;  %v4866_v50 = vsel %vm4864_vm3, %v4865_v16, %v4863_v57  ;;  %v5362_v54 = vld [vmem:[%s9130_s4 + $0x188] sm:$0xff]  ;;  %v5389_v24 = vld [vmem:[%s9130_s4 + $0x260] sm:$0xff]  ;;  %v5388_v12 = vld [vmem:[%s9130_s4 + $0x258] sm:$0xff] }
 0x328   :  { %6766 = vmatprep.subr.mxu0 %v5338_v49  ;;  %6794 = vmatpush3.msra.mxu1 %v5358_v36  ;;  %v5346_v10 = vld [vmem:[%s9130_s4 + $0x108] sm:$0xff]  ;;  %v5361_v49 = vld [vmem:[%s9130_s4 + $0x180] sm:$0xff]  ;;  %v5387_v36 = vld [vmem:[%s9130_s4 + $0x250] sm:$0xff] }
 0x329   :  { %6767 = vmatpush3.msra.mxu0 %v5322_v35  ;;  %6795 = vmatprep.subr.mxu1 %v5373_v14  ;;  %v5345_v35 = vld [vmem:[%s9130_s4 + $0x100] sm:$0xff] }
 0x32a   :  { %6768 = vmatprep.subr.mxu0 %v5337_v13  ;;  %6796 = vmatpush3.msra.mxu1 %v5357_v60  ;;  %v5386_v13 = vld [vmem:[%s9130_s4 + $0x248] sm:$0xff]  ;;  %v5385_v14 = vld [vmem:[%s9130_s4 + $0x240] sm:$0xff]  ;;  %v5383_v60 = vld [vmem:[%s9130_s4 + $0x230] sm:$0xff] }
 0x32b   :  { %6769 = vmatpush3.msra.mxu0 %v5321_v27  ;;  %6797 = vmatprep.subr.mxu1 %v5372_v20  ;;  %v5384_v27 = vld [vmem:[%s9130_s4 + $0x238] sm:$0xff]  ;;  %v5381_v20 = vld [vmem:[%s9130_s4 + $0x220] sm:$0xff] }
 0x32c   :  { %6770 = vmatprep.subr.mxu0 %v5336_v19  ;;  %6798 = vmatpush3.msra.mxu1 %v5356_v63  ;;  %v5382_v19 = vld [vmem:[%s9130_s4 + $0x228] sm:$0xff]  ;;  %v5379_v63 = vld [vmem:[%s9130_s4 + $0x210] sm:$0xff] }
 0x32d   :  { %6771 = vmatpush3.msra.mxu0 %v5320_v21  ;;  %6799 = vmatprep.subr.mxu1 %v5371_v32  ;;  %v5380_v21 = vld [vmem:[%s9130_s4 + $0x218] sm:$0xff]  ;;  %v5377_v32 = vld [vmem:[%s9130_s4 + $0x200] sm:$0xff] }
 0x32e   :  { %6772 = vmatprep.subr.mxu0 %v5335_v4  ;;  %6800 = vmatpush3.msra.mxu1 %v5355_v23  ;;  %v5378_v4 = vld [vmem:[%s9130_s4 + $0x208] sm:$0xff] }
 0x32f   :  { %6773 = vmatpush3.msra.mxu0 %v5319_v22  ;;  %6801 = vmatprep.subr.mxu1 %v5370_v26 }
 0x330   :  { %6774 = vmatprep.subr.mxu0 %v5334_v25  ;;  %6802 = vmatpush3.msra.mxu1 %v5354_v29 }
 0x331   :  { %6775 = vmatpush3.msra.mxu0 %v5318_v37  ;;  %v7940_v0 = vpop.eup %7939  ;;  %6803 = vmatprep.subr.mxu1 %v5369_v55 }
 0x332   :  { %6776 = vmatprep.subr.mxu0 %v5333_v30  ;;  %v4868_v9 = vmul.f32 %v7940_v0, %v8783_v3  ;;  %6804 = vmatpush3.msra.mxu1 %v5353_v48 }
 0x333   :  { %6777 = vmatpush3.msra.mxu0 %v5317_v31  ;;  %6805 = vmatprep.subr.mxu1 %v5368_v38 }
 0x334   :  { %6778 = vmatprep.subr.mxu0 %v5332_v34  ;;  %v4870_v42 = vsel %vm4869_vm0, %v8783_v3, %v4868_v9  ;;  %6806 = vmatpush3.msra.mxu1 %v5352_v39  ;;  %v5363_v3 = vld [vmem:[%s9130_s4 + $0x190] sm:$0xff] }
 0x335   :  { %6779 = vmatpush3.msra.mxu0 %v5316_v45  ;;  %v4873_v18 = vsel %vm4871_vm1, %v4872_v44, %v4870_v42  ;;  %6807 = vmatprep.subr.mxu1 %v5367_v40  ;;  %vm5882_vm1 = vcmask 261120  }
 0x336   :  { %6780 = vmatprep.subr.mxu0 %v5331_v7  ;;  %5464 = vmatprep.mubr.f32.mxu0 %v4873_v18 }
 0x337   :  { %6781 = vmatpush3.msra.mxu0 %v5315_v61  ;;  %6808 = vmatpush3.msra.mxu1 %v5351_v17  ;;  %v4848_v61 = vmul.f32 %v8319_v28, %v8319_v28  ;;  %v4849_v17 = vmul.f32 %v8332_v43, %v8332_v43  ;;  %v4879_v43 = vand.u32 2147483648, %v8800_v11 }
 0x338   :  { %6782 = vmatprep.subr.mxu0 %v5330_v46  ;;  %6809 = vmatprep.subr.mxu1 %v5366_v47 }
 0x339   :  { %6783 = vmatpush3.msra.mxu0 %v5314_v62  ;;  %6810 = vmatpush3.msra.mxu1 %v5350_v52 }
 0x33a   :  { %6784 = vmatprep.subr.mxu0 %v5329_v51  ;;  %6811 = vmatprep.subr.mxu1 %v5365_v58  ;;  %v7942_v51 = vpop.eup %7941 }
 0x33b   :  { %6785 = vmatpush3.msra.mxu0 %v5313_v56  ;;  %6812 = vmatpush3.msra.mxu1 %v5349_v59  ;;  %v4875_v52 = vmul.f32 %v7942_v51, %v8800_v11  ;;  %v5778_v51 = vld [vmem:[%s9135_s9 + $0x18] sm:$0xff] }
 0x33c   :  { %5465 = vmatmul.mubr.f32.vlgmr.msra.gmra.mxu0 %v4866_v50  ;;  %6868 = vmatprep.subr.mxu0 %v8107_v15 }
 0x33d   :  { %6869 = vmatpush3.msra.mxu0 %v5392_v8  ;;  %6813 = vmatprep.subr.mxu1 %v5364_v1  ;;  %v4877_v16 = vsel %vm4876_vm5, %v8800_v11, %v4875_v52  ;;  %v5777_v52 = vld [vmem:[%s9135_s9 + $0x10] sm:$0xff] }
 0x33e   :  { %6870 = vmatprep.subr.mxu0 %v8107_v15  ;;  %6814 = vmatpush3.msra.mxu1 %v5348_v2 }
 0x33f   :  { %6871 = vmatpush3.msra.mxu0 %v5391_v53  ;;  %6815 = vmatprep.subr.mxu1 %v5363_v3  ;;  %v4880_v53 = vsel %vm4878_vm8, %v4879_v43, %v4877_v16  ;;  %v6610_v43 = vld [vmem:[#allocation11] ss:$0 sm:$0xff] }
 0x340   :  { %6872 = vmatprep.subr.mxu0 %v8107_v15  ;;  %6816 = vmatpush3.msra.mxu1 %v5347_v6 }
 0x341   :  { %6873 = vmatpush3.msra.mxu0 %v5390_v5  ;;  %6817 = vmatprep.subr.mxu1 %v5362_v54  ;;  %v5615_v5 = vld [vmem:[#allocation10] sm:$0xff] }
 0x342   :  { %6874 = vmatprep.subr.mxu0 %v8107_v15  ;;  %6818 = vmatpush3.msra.mxu1 %v5346_v10 }
 0x343   :  { %6875 = vmatpush3.msra.mxu0 %v5389_v24  ;;  %6819 = vmatprep.subr.mxu1 %v5361_v49 }
 0x344   :  { %6876 = vmatprep.subr.mxu0 %v8107_v15  ;;  %6820 = vmatpush3.msra.mxu1 %v5345_v35  ;;  %v6606_v35 = vld [vmem:[#allocation5] ss:$0 sm:$0xff] }
 0x345   :  { %6877 = vmatpush3.msra.mxu0 %v5388_v12  ;;  %6900 = vmatprep.mubr.msk.f32.mxu0 %vm8108_vm4, %v8107_v15 }
 0x346   :  { %6878 = vmatprep.subr.mxu0 %v8107_v15  ;;  %6903 = vmatprep.subr.mxu1 %v8107_v15 }
 0x347   :  { %6879 = vmatpush3.msra.mxu0 %v5387_v36 }
 0x348   :  { %6880 = vmatprep.subr.mxu0 %v8107_v15 }
 0x349   :  { %6881 = vmatpush3.msra.mxu0 %v5386_v13 }
 0x34a   :  { %6882 = vmatprep.subr.mxu0 %v8107_v15 }
 0x34b   :  { %6883 = vmatpush3.msra.mxu0 %v5385_v14 }
 0x34c   :  { %6884 = vmatprep.subr.mxu0 %v8107_v15 }
 0x34d   :  { %6885 = vmatpush3.msra.mxu0 %v5384_v27 }
 0x34e   :  { %6886 = vmatprep.subr.mxu0 %v8107_v15 }
 0x34f   :  { %6887 = vmatpush3.msra.mxu0 %v5383_v60 }
 0x350   :  { %6888 = vmatprep.subr.mxu0 %v8107_v15 }
 0x351   :  { %6889 = vmatpush3.msra.mxu0 %v5382_v19 }
 0x352   :  { %6890 = vmatprep.subr.mxu0 %v8107_v15 }
 0x353   :  { %6891 = vmatpush3.msra.mxu0 %v5381_v20 }
 0x354   :  { %6892 = vmatprep.subr.mxu0 %v8107_v15 }
 0x355   :  { %6893 = vmatpush3.msra.mxu0 %v5380_v21 }
 0x356   :  { %6894 = vmatprep.subr.mxu0 %v8107_v15 }
 0x357   :  { %6895 = vmatpush3.msra.mxu0 %v5379_v63 }
 0x358   :  { %6896 = vmatprep.subr.mxu0 %v8107_v15 }
 0x359   :  { %6897 = vmatpush3.msra.mxu0 %v5378_v4  ;;  %v6607_v4 = vld [vmem:[#allocation7] ss:$0 sm:$0xff] }
 0x35a   :  { %6898 = vmatprep.subr.mxu0 %v8107_v15 }
 0x35b   :  { %6899 = vmatpush3.msra.mxu0 %v5377_v32  ;;  %v4715_v22 = vpop.f32.mrf.mxu0 }
 0x35c   :  { %v4756_v23 = vpop.f32.mrf.mxu1  ;;  %6950 = vmatprep.subr.mxu0 %v8107_v15 }
 0x35d   :  { %v4717_v25 = vpop.f32.mrf.mxu0  ;;  %v4757_v31 = vadd.f32 %v4756_v23, %v4715_v22 }
 0x35e   :  { %v4758_v26 = vpop.f32.mrf.mxu1 }
 0x35f   :  { %v4719_v37 = vpop.f32.mrf.mxu0  ;;  %v4759_v34 = vadd.f32 %v4758_v26, %v4717_v25 }
 0x360   :  { %v4760_v29 = vpop.f32.mrf.mxu1 }
 0x361   :  { %v4720_v30 = vpop.f32.mrf.mxu0 }
 0x362   :  { %v4761_v55 = vpop.f32.mrf.mxu1 }
 0x39b   :  { %v4797_v48 = vpop.f32.mrf.mxu0 }
 0x39c   :  { %v4838_v33 = vpop.f32.mrf.mxu1  ;;  %v4798_v38 = vadd.f32 %v4797_v48, %v4757_v31 }
 0x39d   :  { %v4799_v0 = vpop.f32.mrf.mxu0 }
 0x39e   :  { %v4840_v45 = vpop.f32.mrf.mxu1  ;;  %v4839_v39 = vadd.f32 %v4838_v33, %v4798_v38  ;;  %v4800_v7 = vadd.f32 %v4799_v0, %v4759_v34  ;;  %v5614_v34 = vld [vmem:[#allocation8 + $0x8] sm:$0xff] }
 0x39f   :  { %v4801_v9 = vpop.f32.mrf.mxu0 }
 0x3a0   :  { %v4842_v40 = vpop.f32.mrf.mxu1  ;;  %v4853_v44 = vmul.f32 %v4839_v39, %v4839_v39  ;;  %v4841_v41 = vadd.f32 %v4840_v45, %v4800_v7  ;;  %v5613_v45 = vld [vmem:[#allocation8] sm:$0xff]  ;;  %v5790_v39 = vld [vmem:[%s9135_s9 + $0x78] sm:$0xff]  ;;  %v5789_v9 = vld [vmem:[%s9135_s9 + $0x70] sm:$0xff] }
 0x3a1   :  { %v4802_v42 = vpop.f32.mrf.mxu0  ;;  %v5788_v40 = vld [vmem:[%s9135_s9 + $0x68] sm:$0xff] }
 0x3a2   :  { %v4843_v46 = vpop.f32.mrf.mxu1  ;;  %v4858_v18 = vadd.f32 %v4853_v44, %v4848_v61  ;;  %v4854_v62 = vmul.f32 %v4841_v41, %v4841_v41  ;;  %v5787_v61 = vld [vmem:[%s9135_s9 + $0x60] sm:$0xff]  ;;  %v5786_v44 = vld [vmem:[%s9135_s9 + $0x58] sm:$0xff]  ;;  %v5785_v41 = vld [vmem:[%s9135_s9 + $0x50] sm:$0xff] }
 0x3a3   :  { %v5784_v42 = vld [vmem:[%s9135_s9 + $0x48] sm:$0xff]  ;;  %v5783_v46 = vld [vmem:[%s9135_s9 + $0x40] sm:$0xff] }
 0x3a4   :  { %7943 = vrsqrt.f32 %v4858_v18  ;;  %v4859_v47 = vadd.f32 %v4854_v62, %v4849_v17  ;;  %vm4883_vm6 = vcmp.eq.f32.partialorder %v4858_v18, inf  ;;  %v4886_v58 = vand.u32 2147483648, %v4858_v18  ;;  %v5782_v17 = vld [vmem:[%s9135_s9 + $0x38] sm:$0xff]  ;;  %v5780_v62 = vld [vmem:[%s9135_s9 + $0x28] sm:$0xff] }
 0x3a5   :  { %vm4885_vm7 = vcmp.eq.f32.partialorder %v4858_v18, 0.0 }
 0x3a6   :  { %7945 = vrsqrt.f32 %v4859_v47  ;;  %vm4890_vm9 = vcmp.eq.f32.partialorder %v4859_v47, inf  ;;  %v4893_v1 = vand.u32 2147483648, %v4859_v47  ;;  %vm4892_vm10 = vcmp.eq.f32.partialorder %v4859_v47, 0.0 }
 0x3b1   :  { %v7944_v56 = vpop.eup %7943 }
 0x3b2   :  { %v4882_v57 = vmul.f32 %v7944_v56, %v4858_v18  ;;  %v5776_v56 = vld [vmem:[%s9135_s9 + $0x8] sm:$0xff] }
 0x3b3   :  { %v7946_v28 = vpop.eup %7945 }
 0x3b4   :  { %v4884_v8 = vsel %vm4883_vm6, %v4858_v18, %v4882_v57  ;;  %v4889_v59 = vmul.f32 %v7946_v28, %v4859_v47  ;;  %v5781_v18 = vld [vmem:[%s9135_s9 + $0x30] sm:$0xff]  ;;  %v5775_v57 = vld [vmem:[%s9135_s9] sm:$0xff]  ;;  %v5874_v28 = vld [vmem:[%s9137_s11 + $0x18] sm:$0xff] }
 0x3b5   :  { %v4887_v50 = vsel %vm4885_vm7, %v4886_v58, %v4884_v8 }
 0x3b6   :  { %5534 = vmatprep.mubr.f32.mxu1 %v4887_v50  ;;  %v4891_v2 = vsel %vm4890_vm9, %v4859_v47, %v4889_v59  ;;  %v5779_v47 = vld [vmem:[%s9135_s9 + $0x20] sm:$0xff] }
 0x3b7   :  { %5535 = vmatmul.mubr.f32.vlgmr.msra.gmra.mxu1 %v4880_v53  ;;  %v4894_v3 = vsel %vm4892_vm10, %v4893_v1, %v4891_v2 }
 0x3b8   :  { %6901 = vmatmul.mubr.f32.vlgmr.msra.gmra.mxu0 %v4894_v3  ;;  %6905 = vmatprep.mubr.msk.f32.mxu1 %vm8108_vm4, %v8107_v15  ;;  %v5873_v3 = vld [vmem:[%s9137_s11 + $0x10] sm:$0xff] }
 0x3b9   :  { %6958 = vmatprep.mubr.msk.f32.mxu0 %vm8108_vm4, %v8107_v15  ;;  %6904 = vmatpush3.msra.mxu1 %v5615_v5  ;;  %v5872_v5 = vld [vmem:[%s9137_s11 + $0x8] sm:$0xff] }
 0x3ba   :  { %6908 = vmatprep.subr.mxu1 %v8107_v15  ;;  %6951 = vmatpush3.msra.mxu0 %v5874_v28 }
 0x3bb   :  { %6952 = vmatprep.subr.mxu0 %v8107_v15 }
 0x3bc   :  { %v6646_v11 = vpop.f32.mrf.mxu0  ;;  %6953 = vmatpush3.msra.mxu0 %v5873_v3 }
 0x3bd   :  { %6954 = vmatprep.subr.mxu0 %v8107_v15 }
 0x3be   :  { %v6647_v6 = vpop.f32.mrf.mxu0  ;;  %6955 = vmatpush3.msra.mxu0 %v5872_v5 }
 0x3bf   :  { %v6648_v12 = vadd.f32 %v6647_v6, %v6646_v11  ;;  %6956 = vmatprep.subr.mxu0 %v8107_v15  ;;  %v5871_v11 = vld [vmem:[%s9137_s11] sm:$0xff]  ;;  %v6611_v6 = vld [vmem:[#allocation13] ss:$0 sm:$0xff] }
 0x3c0   :  { %v6681_v24 = vpop.f32.mrf.mxu1  ;;  %6957 = vmatpush3.msra.mxu0 %v5871_v11 }
 0x3c1   :  { %v5097_v14 = vadd.f32 %v6648_v12, %v6606_v35  ;;  %v6612_v35 = vld [vmem:[#allocation2] ss:$0 sm:$0xff] }
 0x3c2   :  { %v6682_v49 = vpop.f32.mrf.mxu1 }
 0x3c3   :  { %v6683_v27 = vadd.f32 %v6682_v49, %v6681_v24 }
 0x3c5   :  { %v5167_v63 = vadd.f32 %v6683_v27, %v5097_v14 }
 0x3dc   :  { %v6716_v54 = vpop.f32.mrf.mxu0 }
 0x3de   :  { %v6717_v10 = vpop.f32.mrf.mxu0 }
 0x3df   :  { %v6718_v20 = vadd.f32 %v6717_v10, %v6716_v54 }
 0x3e1   :  { %v5237_v26 = vadd.f32 %v6718_v20, %v5167_v63 }
 0x3e2   :  { %v6751_v13 = vpop.f32.mrf.mxu1 }
 0x3e4   :  { %v6752_v19 = vpop.f32.mrf.mxu1 }
 0x3e5   :  { %v6753_v37 = vadd.f32 %v6752_v19, %v6751_v13 }
 0x3e7   :  { %v5307_v31 = vadd.f32 %v6753_v37, %v5237_v26 }
 0x3e9   :  { %v5311_v38 = vmul.f32 0.02, %v5307_v31  ;;  %vm5310_vm13 = vcmp.ge.f32.partialorder %v5307_v31, 0.0 }
 0x3eb   :  { %v5312_v7 = vsel %vm5310_vm13, %v5307_v31, %v5311_v38 }
 0x3fc   :  { %v6786_v36 = vpop.f32.mrf.mxu0 }
 0x3fe   :  { %v6787_v60 = vpop.f32.mrf.mxu0 }
 0x3ff   :  { %v6788_v21 = vadd.f32 %v6787_v60, %v6786_v36 }
 0x401   :  { %v5467_v25 = vadd.f32 %v6788_v21, %v6607_v4 }
 0x477   :  { %v6821_v32 = vpop.f32.mrf.mxu1 }
 0x478   :  { %v5606_v22 = vpop.f32.mrf.mxu0 }
 0x479   :  { %v6822_v23 = vpop.f32.mrf.mxu1 }
 0x47a   :  { %v6823_v29 = vadd.f32 %v6822_v23, %v6821_v32  ;;  %v6902_v30 = vpop.f32.mrf.mxu0 }
 0x47c   :  { %v5537_v55 = vadd.f32 %v6823_v29, %v5467_v25 }
 0x47e   :  { %v5607_v48 = vadd.f32 %v5606_v22, %v5537_v55 }
 0x480   :  { %v5611_v33 = vmul.f32 0.02, %v5607_v48  ;;  %vm5610_vm11 = vcmp.ge.f32.partialorder %v5607_v48, 0.0 }
 0x482   :  { %v5612_v0 = vsel %vm5610_vm11, %v5607_v48, %v5611_v33 }
 0x483   :  { %6906 = vmatmul.mubr.msk.f32.vlgmr.msra.gmra.mxu1 %vm5616_vm12, %v5612_v0 }
 0x484   :  { %6909 = vmatpush3.msra.mxu1 %v5614_v34  ;;  %6912 = vmatprep.mubr.msk.f32.mxu1 %vm8108_vm4, %v8107_v15 }
 0x485   :  { %6910 = vmatprep.subr.mxu1 %v8107_v15 }
 0x486   :  { %6911 = vmatpush3.msra.mxu1 %v5613_v45 }
 0x487   :  { %6913 = vmatmul.mubr.msk.f32.vlgmr.msra.gmra.mxu1 %vm5690_vm14, %v5312_v7  ;;  %6915 = vmatprep.subr.mxu1 %v8107_v15 }
 0x488   :  { %6916 = vmatpush3.msra.mxu1 %v5790_v39  ;;  %6947 = vmatprep.mubr.msk.f32.mxu1 %vm8108_vm4, %v8107_v15 }
 0x489   :  { %6917 = vmatprep.subr.mxu1 %v8107_v15 }
 0x48a   :  { %6918 = vmatpush3.msra.mxu1 %v5789_v9 }
 0x48b   :  { %6919 = vmatprep.subr.mxu1 %v8107_v15 }
 0x48c   :  { %6920 = vmatpush3.msra.mxu1 %v5788_v40 }
 0x48d   :  { %6921 = vmatprep.subr.mxu1 %v8107_v15 }
 0x48e   :  { %6922 = vmatpush3.msra.mxu1 %v5787_v61 }
 0x48f   :  { %6923 = vmatprep.subr.mxu1 %v8107_v15 }
 0x490   :  { %6924 = vmatpush3.msra.mxu1 %v5786_v44 }
 0x491   :  { %6925 = vmatprep.subr.mxu1 %v8107_v15 }
 0x492   :  { %6926 = vmatpush3.msra.mxu1 %v5785_v41 }
 0x493   :  { %6927 = vmatprep.subr.mxu1 %v8107_v15 }
 0x494   :  { %6928 = vmatpush3.msra.mxu1 %v5784_v42 }
 0x495   :  { %6929 = vmatprep.subr.mxu1 %v8107_v15 }
 0x496   :  { %6930 = vmatpush3.msra.mxu1 %v5783_v46 }
 0x497   :  { %6931 = vmatprep.subr.mxu1 %v8107_v15 }
 0x498   :  { %6932 = vmatpush3.msra.mxu1 %v5782_v17 }
 0x499   :  { %6933 = vmatprep.subr.mxu1 %v8107_v15 }
 0x49a   :  { %6934 = vmatpush3.msra.mxu1 %v5781_v18 }
 0x49b   :  { %6935 = vmatprep.subr.mxu1 %v8107_v15 }
 0x49c   :  { %6936 = vmatpush3.msra.mxu1 %v5780_v62 }
 0x49d   :  { %6937 = vmatprep.subr.mxu1 %v8107_v15 }
 0x49e   :  { %6938 = vmatpush3.msra.mxu1 %v5779_v47 }
 0x49f   :  { %6939 = vmatprep.subr.mxu1 %v8107_v15 }
 0x4a0   :  { %6940 = vmatpush3.msra.mxu1 %v5778_v51 }
 0x4a1   :  { %6941 = vmatprep.subr.mxu1 %v8107_v15 }
 0x4a2   :  { %6942 = vmatpush3.msra.mxu1 %v5777_v52 }
 0x4a3   :  { %6943 = vmatprep.subr.mxu1 %v8107_v15 }
 0x4a4   :  { %6944 = vmatpush3.msra.mxu1 %v5776_v56 }
 0x4a5   :  { %6945 = vmatprep.subr.mxu1 %v8107_v15 }
 0x4a6   :  { %6946 = vmatpush3.msra.mxu1 %v5775_v57 }
 0x543   :  { %v5686_v58 = vpop.f32.mrf.mxu1 }
 0x545   :  { %v6907_v16 = vpop.f32.mrf.mxu1 }
 0x547   :  { %v5760_v8 = vpop.f32.mrf.mxu1 }
 0x548   :  { %v5761_v59 = vadd.f32 %v5760_v8, %v5686_v58 }
 0x549   :  { %v6914_v50 = vpop.f32.mrf.mxu1 }
 0x54a   :  { %v5771_v1 = vadd.f32 %v6610_v43, %v5761_v59 }
 0x54c   :  { %v5773_v53 = vmul.f32 0.02, %v5771_v1  ;;  %vm5772_vm15 = vcmp.ge.f32.partialorder %v5771_v1, 0.0 }
 0x54e   :  { %v5774_v2 = vsel %vm5772_vm15, %v5771_v1, %v5773_v53 }
 0x54f   :  { %6948 = vmatmul.mubr.f32.vlgmr.msra.gmra.mxu1 %v5774_v2 }
 0x60f   :  { %v5864_v54 = vpop.f32.mrf.mxu1 }
 0x610   :  { %v5865_v24 = vadd.f32 %v6611_v6, %v5864_v54 }
 0x611   :  { %v6949_v10 = vpop.f32.mrf.mxu1 }
 0x612   :  { %vm5868_vm0 = vcmp.ge.f32.partialorder %v5865_v24, 0.0  ;;  %v5869_v49 = vmul.f32 0.02, %v5865_v24 }
 0x614   :  { %v5870_v12 = vsel %vm5868_vm0, %v5865_v24, %v5869_v49 }
 0x615   :  { %6959 = vmatmul.mubr.msk.f32.vlgmr.msra.gmra.mxu0 %vm5882_vm1, %v5870_v12 }
 0x6d5   :  { %v5952_v36 = vpop.f32.mrf.mxu0 }
 0x6d6   :  { %v5953_v13 = vadd.f32 %v6612_v35, %v5952_v36 }
 0x6d7   :  { %v6960_v14 = vpop.f32.mrf.mxu0 }
 0x6d8   :  { %5957 = vst.msk [vmem:[%s9139_s13] sm:$0x3] %vm5956_vm2, %v5953_v13 }
 0x6d9   :  { %5962 = vsyncpa [#allocation4], 1 }
 0x6da   :  { %5963 = vsyncpa [#allocation6], 1 }
 0x6db   :  { %5964 = vsyncpa [#allocation9], 1 }
 0x6dc   :  { %5965 = vsyncpa [#allocation12], 1 }

</bundles_post_ra>
